<compile_context>
chip_gen: v5e
topology: v5e:2x2
jax: 0.10.0
libtpu: 0.0.40
codegen_flags: <defaults>
</compile_context>

<pallas_src>
import functools
import math

import jax
import jax.numpy as jnp
from jax.experimental import pallas as pl
from jax.experimental.pallas import tpu as pltpu

# ---- tiny lane-dense stand-in config ---------------------------------------
VOCAB = 64
TYPE_VOCAB = 2
MAX_POS = 16
HIDDEN = 128                      # lane-dense: minor dims are multiples of 128
NUM_HEADS = 2
HEAD_DIM = HIDDEN // NUM_HEADS    # 64
INTERMEDIATE = 4 * HIDDEN         # 512
NUM_LAYERS = 2
NUM_LABELS = 7
LABEL_PAD = 128                   # lane-dense classifier slab (sliced to 7)
LN_EPS = 1e-12
DROPOUT_P = 0.2
MXU_DTYPE = jnp.bfloat16          # matmul-operand dtype; accumulation is fp32


# ---------------------------------------------------------------------------
# In-kernel helpers (plain jnp / lax only -> lowers on TPU)
# ---------------------------------------------------------------------------
def _layernorm(x, g, b):
    mu = jnp.mean(x, axis=-1, keepdims=True)
    var = jnp.mean(jnp.square(x - mu), axis=-1, keepdims=True)
    return (x - mu) * jax.lax.rsqrt(var + LN_EPS) * g + b


def _erf(x):
    # Abramowitz & Stegun 7.1.26 (max abs error ~1.5e-7); exp/abs/where only.
    a1, a2, a3, a4, a5 = (0.254829592, -0.284496736, 1.421413741,
                          -1.453152027, 1.061405429)
    p = 0.3275911
    sgn = jnp.where(x >= 0.0, 1.0, -1.0)
    ax = jnp.abs(x)
    t = 1.0 / (1.0 + p * ax)
    poly = ((((a5 * t + a4) * t + a3) * t + a2) * t + a1) * t
    return sgn * (1.0 - poly * jnp.exp(-ax * ax))


def _gelu_exact(x):
    # HF BERT "gelu" = exact erf GELU (not the tanh approximation).
    return 0.5 * x * (1.0 + _erf(x * (1.0 / math.sqrt(2.0))))


def _full_spec(shape):
    # Whole-array block; index_map ignores the grid index -> ONLY valid with
    # grid=(1,).  Real-shape tiling must replace this with a real index_map.
    nd = len(shape)
    return pl.BlockSpec(shape, lambda i, _nd=nd: (0,) * _nd)


# ---------------------------------------------------------------------------
# The fused kernel: emb-LN -> L encoder layers -> pooler -> classifier
#                   -> dropout -> mean cross-entropy
# ---------------------------------------------------------------------------
def _fused_model_kernel(emb_ref, bias_ref, eg_ref, eb_ref,
                        wqkv_ref, bqkv_ref, wo_ref, bo_ref,
                        ln1g_ref, ln1b_ref, w1_ref, b1_ref,
                        w2_ref, b2_ref, ln2g_ref, ln2b_ref,
                        pw_ref, pb_ref, cw_ref, cb_ref,
                        drop_ref, onehot_ref,
                        logits_ref, loss_ref, ctx_ref, *, batch, seq):
    B, S, H, dH = batch, seq, HIDDEN, HEAD_DIM
    scale = 1.0 / math.sqrt(dH)

    # ---- embedding LayerNorm (folded; previously its own pallas_call) ------
    x = _layernorm(emb_ref[...], eg_ref[...], eb_ref[...])          # (B*S, H)

    # ---- additive attention-mask bias: built once, reused by every layer ---
    bias3 = bias_ref[...]                                            # (B, 1, S)

    # ---- encoder layers (weights stacked on axis 0, bf16 MXU operands) -----
    for l in range(NUM_LAYERS):
        qkv = jnp.dot(x.astype(MXU_DTYPE), wqkv_ref[l],
                      preferred_element_type=jnp.float32) + bqkv_ref[l]  # (B*S, 3H)

        # Per-head attention, batched over B via 3-D einsums; each head's
        # context is slice-stored into a VMEM slab (no in-kernel concatenate,
        # no per-batch unroll).
        # TODO(synk): at real bert-large head counts replace this unroll with
        # a flash-style kernel tiled over (q-block, kv-block).
        for h in range(NUM_HEADS):
            c0 = h * dH
            q = qkv[:, c0:c0 + dH].reshape(B, S, dH).astype(MXU_DTYPE)
            k = qkv[:, H + c0:H + c0 + dH].reshape(B, S, dH).astype(MXU_DTYPE)
            v = qkv[:, 2 * H + c0:2 * H + c0 + dH].reshape(B, S, dH).astype(MXU_DTYPE)
            s = jnp.einsum("bqd,bkd->bqk", q, k,
                           preferred_element_type=jnp.float32) * scale + bias3
            m = jnp.max(s, axis=-1, keepdims=True)
            p = jnp.exp(s - m)
            p = p / jnp.sum(p, axis=-1, keepdims=True)
            ctx = jnp.einsum("bqk,bkd->bqd", p.astype(MXU_DTYPE), v,
                             preferred_element_type=jnp.float32)         # (B, S, dH)
            ctx_ref[:, c0:c0 + dH] = ctx.reshape(B * S, dH)

        attn = jnp.dot(ctx_ref[...].astype(MXU_DTYPE), wo_ref[l],
                       preferred_element_type=jnp.float32) + bo_ref[l]
        h1 = _layernorm(x + attn, ln1g_ref[l], ln1b_ref[l])

        ff = _gelu_exact(jnp.dot(h1.astype(MXU_DTYPE), w1_ref[l],
                                 preferred_element_type=jnp.float32) + b1_ref[l])
        ff = jnp.dot(ff.astype(MXU_DTYPE), w2_ref[l],
                     preferred_element_type=jnp.float32) + b2_ref[l]
        x = _layernorm(h1 + ff, ln2g_ref[l], ln2b_ref[l])

    # ---- pooler([CLS]) + classifier + dropout(0.2) + mean cross-entropy ----
    x_cls = x.reshape(B, S, H)[:, 0, :]                                  # (B, H)
    pooled = jnp.tanh(jnp.dot(x_cls.astype(MXU_DTYPE), pw_ref[...],
                              preferred_element_type=jnp.float32) + pb_ref[...])
    logits = jnp.dot(pooled.astype(MXU_DTYPE), cw_ref[...],
                     preferred_element_type=jnp.float32) + cb_ref[...]   # (B, 128)
    logits = logits * drop_ref[...]            # dropout(p): pre-scaled keep mask
    logits_ref[...] = logits                   # lane-dense 128-wide slab store

    col = jax.lax.broadcasted_iota(jnp.int32, logits.shape, 1)
    masked = jnp.where(col < NUM_LABELS, logits, -1e30)
    m = jnp.max(masked, axis=-1, keepdims=True)
    lse = jnp.log(jnp.sum(jnp.exp(masked - m), axis=-1, keepdims=True)) + m
    nll = lse - jnp.sum(onehot_ref[...] * logits, axis=-1, keepdims=True)  # (B, 1)
    loss_ref[...] = jnp.sum(nll, axis=0, keepdims=True) * (1.0 / B)        # (1, 1)


def fused_forward(params, emb2d, bias3, drop_mult, onehot, batch, seq):
    in_arrays = [
        emb2d, bias3,
        params["emb_ln_g"], params["emb_ln_b"],
        params["wqkv"], params["bqkv"], params["wo"], params["bo"],
        params["ln1_g"], params["ln1_b"], params["w1"], params["b1"],
        params["w2"], params["b2"], params["ln2_g"], params["ln2_b"],
        params["pool_w"], params["pool_b"],
        params["cls_w_pad"], params["cls_b_pad"],
        drop_mult, onehot,
    ]
    out_shape = (jax.ShapeDtypeStruct((batch, LABEL_PAD), jnp.float32),
                 jax.ShapeDtypeStruct((1, 1), jnp.float32))
    scratch_shapes = [pltpu.VMEM((batch * seq, HIDDEN), jnp.float32)]

    # vmem limit derived from the actual footprint (x2 for double-buffering of
    # the BlockSpec-pipelined inputs/outputs) plus headroom for temporaries.
    in_bytes = sum(int(a.size) * a.dtype.itemsize for a in in_arrays)
    out_bytes = batch * LABEL_PAD * 4 + 4
    scratch_bytes = batch * seq * HIDDEN * 4
    vmem_limit = int(min(64 << 20,
                         2 * (in_bytes + out_bytes) + scratch_bytes + (8 << 20)))

    return pl.pallas_call(
        functools.partial(_fused_model_kernel, batch=batch, seq=seq),
        out_shape=out_shape,
        grid=(1,),
        in_specs=[_full_spec(a.shape) for a in in_arrays],
        out_specs=(_full_spec((batch, LABEL_PAD)), _full_spec((1, 1))),
        scratch_shapes=scratch_shapes,
        compiler_params=pltpu.CompilerParams(
            dimension_semantics=("arbitrary",),
            vmem_limit_bytes=vmem_limit),
    )(*in_arrays)


# ---------------------------------------------------------------------------
# Parameters (deterministic synthetic init; weight matrices stored in bf16,
# per-layer weights stacked on a leading L axis so one kernel sees them all)
# ---------------------------------------------------------------------------
def init_params(key):
    H, I, L = HIDDEN, INTERMEDIATE, NUM_LAYERS

    def nrm(k, shape):
        return 0.02 * jax.random.normal(k, shape, dtype=jnp.float32)

    keys = jax.random.split(key, 6 + L)
    cls_w = nrm(keys[4], (H, NUM_LABELS))
    params = {
        "word_emb": nrm(keys[0], (VOCAB, H)),
        "pos_emb": nrm(keys[1], (MAX_POS, H)),
        "type_emb": nrm(keys[2], (TYPE_VOCAB, H)),
        "emb_ln_g": jnp.ones((1, H), jnp.float32),
        "emb_ln_b": jnp.zeros((1, H), jnp.float32),
        "pool_w": nrm(keys[3], (H, H)).astype(MXU_DTYPE),
        "pool_b": jnp.zeros((1, H), jnp.float32),
        # classifier weights pre-padded to a lane-dense 128-wide slab
        "cls_w_pad": jnp.zeros((H, LABEL_PAD), jnp.float32)
                        .at[:, :NUM_LABELS].set(cls_w).astype(MXU_DTYPE),
        "cls_b_pad": jnp.zeros((1, LABEL_PAD), jnp.float32),
    }

    wqkv, wo, w1, w2 = [], [], [], []
    for l in range(L):
        lk = jax.random.split(keys[6 + l], 6)
        wq, wk, wv = nrm(lk[0], (H, H)), nrm(lk[1], (H, H)), nrm(lk[2], (H, H))
        wqkv.append(jnp.concatenate([wq, wk, wv], axis=1))   # fused (H, 3H)
        wo.append(nrm(lk[3], (H, H)))
        w1.append(nrm(lk[4], (H, I)))
        w2.append(nrm(lk[5], (I, H)))

    params.update({
        "wqkv": jnp.stack(wqkv).astype(MXU_DTYPE),            # (L, H, 3H) bf16
        "bqkv": jnp.zeros((L, 1, 3 * H), jnp.float32),
        "wo": jnp.stack(wo).astype(MXU_DTYPE),                 # (L, H, H)  bf16
        "bo": jnp.zeros((L, 1, H), jnp.float32),
        "ln1_g": jnp.ones((L, 1, H), jnp.float32),
        "ln1_b": jnp.zeros((L, 1, H), jnp.float32),
        "w1": jnp.stack(w1).astype(MXU_DTYPE),                 # (L, H, I)  bf16
        "b1": jnp.zeros((L, 1, I), jnp.float32),
        "w2": jnp.stack(w2).astype(MXU_DTYPE),                 # (L, I, H)  bf16
        "b2": jnp.zeros((L, 1, H), jnp.float32),
        "ln2_g": jnp.ones((L, 1, H), jnp.float32),
        "ln2_b": jnp.zeros((L, 1, H), jnp.float32),
    })
    return params


# ---------------------------------------------------------------------------
# Forward pass (mirrors CustomModel.forward)
# ---------------------------------------------------------------------------
def custom_model_forward(params, input_ids, attention_mask, labels=None,
                         dropout_rng=None):
    B, S = input_ids.shape
    H = HIDDEN
    if dropout_rng is None:
        dropout_rng = jax.random.PRNGKey(0)

    # embeddings (gather is glue, left to XLA — no small-Pallas gather win)
    emb = (jnp.take(params["word_emb"], input_ids, axis=0)
           + params["pos_emb"][:S][None, :, :]
           + params["type_emb"][0][None, None, :])
    emb2d = emb.reshape(B * S, H)

    # additive attention-mask bias, built ONCE (hoisted out of the kernel layers)
    bias3 = ((1.0 - attention_mask.astype(jnp.float32)) * (-1e9)).reshape(B, 1, S)

    # dropout(0.2) keep-mask (training semantics, deterministic) + one-hot labels
    keep = jax.random.bernoulli(dropout_rng, 1.0 - DROPOUT_P, (B, LABEL_PAD))
    drop_mult = keep.astype(jnp.float32) * (1.0 / (1.0 - DROPOUT_P))
    lbl = labels if labels is not None else jnp.zeros((B,), jnp.int32)
    onehot = jax.nn.one_hot(lbl, LABEL_PAD, dtype=jnp.float32)

    logits_pad, loss = fused_forward(params, emb2d, bias3, drop_mult, onehot, B, S)
    logits = logits_pad[:, :NUM_LABELS]

    if labels is not None:
        return loss[0, 0], logits
    return logits


# ---------------------------------------------------------------------------
if __name__ == "__main__":
    params = init_params(jax.random.PRNGKey(0))

    kid, kmask, klab, kdrop = jax.random.split(jax.random.PRNGKey(0), 4)
    B, S = 2, 8
    input_ids = jax.random.randint(kid, (B, S), 0, VOCAB, dtype=jnp.int32)
    attention_mask = jnp.ones((B, S), dtype=jnp.int32).at[1, 6:].set(0)
    labels = jax.random.randint(klab, (B,), 0, NUM_LABELS, dtype=jnp.int32)

    loss, logits = custom_model_forward(params, input_ids, attention_mask,
                                        labels=labels, dropout_rng=kdrop)
    jax.block_until_ready((loss, logits))
    assert logits.shape == (B, NUM_LABELS)
    assert loss.shape == ()
    assert bool(jnp.isfinite(loss))
    print("KERNEL_OK")
</pallas_src>

<mosaic_0001>
module attributes {stable_mosaic.version = 11 : i64} {
  func.func @_fused_model_kernel(%arg0: i32, %arg1: memref<16x128xf32, #tpu.memory_space<vmem>>, %arg2: memref<2x1x8xf32, #tpu.memory_space<vmem>>, %arg3: memref<1x128xf32, #tpu.memory_space<vmem>>, %arg4: memref<1x128xf32, #tpu.memory_space<vmem>>, %arg5: memref<2x128x384xbf16, #tpu.memory_space<vmem>>, %arg6: memref<2x1x384xf32, #tpu.memory_space<vmem>>, %arg7: memref<2x128x128xbf16, #tpu.memory_space<vmem>>, %arg8: memref<2x1x128xf32, #tpu.memory_space<vmem>>, %arg9: memref<2x1x128xf32, #tpu.memory_space<vmem>>, %arg10: memref<2x1x128xf32, #tpu.memory_space<vmem>>, %arg11: memref<2x128x512xbf16, #tpu.memory_space<vmem>>, %arg12: memref<2x1x512xf32, #tpu.memory_space<vmem>>, %arg13: memref<2x512x128xbf16, #tpu.memory_space<vmem>>, %arg14: memref<2x1x128xf32, #tpu.memory_space<vmem>>, %arg15: memref<2x1x128xf32, #tpu.memory_space<vmem>>, %arg16: memref<2x1x128xf32, #tpu.memory_space<vmem>>, %arg17: memref<128x128xbf16, #tpu.memory_space<vmem>>, %arg18: memref<1x128xf32, #tpu.memory_space<vmem>>, %arg19: memref<128x128xbf16, #tpu.memory_space<vmem>>, %arg20: memref<1x128xf32, #tpu.memory_space<vmem>>, %arg21: memref<2x128xf32, #tpu.memory_space<vmem>>, %arg22: memref<2x128xf32, #tpu.memory_space<vmem>>, %arg23: memref<2x128xf32, #tpu.memory_space<vmem>>, %arg24: memref<1x1xf32, #tpu.memory_space<vmem>>, %arg25: memref<16x128xf32, #tpu.memory_space<vmem>>) attributes {dimension_semantics = [#tpu.dimension_semantics<arbitrary>], iteration_bounds = array<i64: 1>, scalar_prefetch = 0 : i64, scratch_operands = 1 : i64, tpu.core_type = #tpu.core_type<tc>, window_params = [{pipeline_mode = #tpu.pipeline_mode<synchronous>, transform_indices = @transform_0, window_bounds = array<i64: 16, 128>}, {pipeline_mode = #tpu.pipeline_mode<synchronous>, transform_indices = @transform_1, window_bounds = array<i64: 2, 1, 8>}, {pipeline_mode = #tpu.pipeline_mode<synchronous>, transform_indices = @transform_2, window_bounds = array<i64: 1, 128>}, {pipeline_mode = #tpu.pipeline_mode<synchronous>, transform_indices = @transform_3, window_bounds = array<i64: 1, 128>}, {pipeline_mode = #tpu.pipeline_mode<synchronous>, transform_indices = @transform_4, window_bounds = array<i64: 2, 128, 384>}, {pipeline_mode = #tpu.pipeline_mode<synchronous>, transform_indices = @transform_5, window_bounds = array<i64: 2, 1, 384>}, {pipeline_mode = #tpu.pipeline_mode<synchronous>, transform_indices = @transform_6, window_bounds = array<i64: 2, 128, 128>}, {pipeline_mode = #tpu.pipeline_mode<synchronous>, transform_indices = @transform_7, window_bounds = array<i64: 2, 1, 128>}, {pipeline_mode = #tpu.pipeline_mode<synchronous>, transform_indices = @transform_8, window_bounds = array<i64: 2, 1, 128>}, {pipeline_mode = #tpu.pipeline_mode<synchronous>, transform_indices = @transform_9, window_bounds = array<i64: 2, 1, 128>}, {pipeline_mode = #tpu.pipeline_mode<synchronous>, transform_indices = @transform_10, window_bounds = array<i64: 2, 128, 512>}, {pipeline_mode = #tpu.pipeline_mode<synchronous>, transform_indices = @transform_11, window_bounds = array<i64: 2, 1, 512>}, {pipeline_mode = #tpu.pipeline_mode<synchronous>, transform_indices = @transform_12, window_bounds = array<i64: 2, 512, 128>}, {pipeline_mode = #tpu.pipeline_mode<synchronous>, transform_indices = @transform_13, window_bounds = array<i64: 2, 1, 128>}, {pipeline_mode = #tpu.pipeline_mode<synchronous>, transform_indices = @transform_14, window_bounds = array<i64: 2, 1, 128>}, {pipeline_mode = #tpu.pipeline_mode<synchronous>, transform_indices = @transform_15, window_bounds = array<i64: 2, 1, 128>}, {pipeline_mode = #tpu.pipeline_mode<synchronous>, transform_indices = @transform_16, window_bounds = array<i64: 128, 128>}, {pipeline_mode = #tpu.pipeline_mode<synchronous>, transform_indices = @transform_17, window_bounds = array<i64: 1, 128>}, {pipeline_mode = #tpu.pipeline_mode<synchronous>, transform_indices = @transform_18, window_bounds = array<i64: 128, 128>}, {pipeline_mode = #tpu.pipeline_mode<synchronous>, transform_indices = @transform_19, window_bounds = array<i64: 1, 128>}, {pipeline_mode = #tpu.pipeline_mode<synchronous>, transform_indices = @transform_20, window_bounds = array<i64: 2, 128>}, {pipeline_mode = #tpu.pipeline_mode<synchronous>, transform_indices = @transform_21, window_bounds = array<i64: 2, 128>}, {pipeline_mode = #tpu.pipeline_mode<synchronous>, transform_indices = @transform_22, window_bounds = array<i64: 2, 128>}, {pipeline_mode = #tpu.pipeline_mode<synchronous>, transform_indices = @transform_23, window_bounds = array<i64: 1, 1>}]} {
    %c0 = arith.constant 0 : index
    %c0_0 = arith.constant 0 : index
    %0 = vector.load %arg1[%c0, %c0_0] : memref<16x128xf32, #tpu.memory_space<vmem>>, vector<16x128xf32>
    %c0_1 = arith.constant 0 : index
    %c0_2 = arith.constant 0 : index
    %1 = vector.load %arg3[%c0_1, %c0_2] : memref<1x128xf32, #tpu.memory_space<vmem>>, vector<1x128xf32>
    %c0_3 = arith.constant 0 : index
    %c0_4 = arith.constant 0 : index
    %2 = vector.load %arg4[%c0_3, %c0_4] : memref<1x128xf32, #tpu.memory_space<vmem>>, vector<1x128xf32>
    %cst = arith.constant dense<0.000000e+00> : vector<16xf32>
    %3 = vector.multi_reduction <add>, %0, %cst [1] : vector<16x128xf32> to vector<16xf32>
    %4 = vector.shape_cast %3 : vector<16xf32> to vector<16x1xf32>
    %cst_5 = arith.constant 1.280000e+02 : f32
    %5 = vector.broadcast %cst_5 : f32 to vector<16x1xf32>
    %6 = arith.divf %4, %5 : vector<16x1xf32>
    %7 = vector.broadcast %6 : vector<16x1xf32> to vector<16x128xf32>
    %8 = arith.subf %0, %7 : vector<16x128xf32>
    %9 = arith.mulf %8, %8 : vector<16x128xf32>
    %cst_6 = arith.constant dense<0.000000e+00> : vector<16xf32>
    %10 = vector.multi_reduction <add>, %9, %cst_6 [1] : vector<16x128xf32> to vector<16xf32>
    %11 = vector.shape_cast %10 : vector<16xf32> to vector<16x1xf32>
    %cst_7 = arith.constant 1.280000e+02 : f32
    %12 = vector.broadcast %cst_7 : f32 to vector<16x1xf32>
    %13 = arith.divf %11, %12 : vector<16x1xf32>
    %14 = vector.broadcast %6 : vector<16x1xf32> to vector<16x128xf32>
    %15 = arith.subf %0, %14 : vector<16x128xf32>
    %cst_8 = arith.constant 9.99999996E-13 : f32
    %16 = vector.broadcast %cst_8 : f32 to vector<16x1xf32>
    %17 = arith.addf %13, %16 : vector<16x1xf32>
    %18 = math.rsqrt %17 : vector<16x1xf32>
    %19 = vector.broadcast %18 : vector<16x1xf32> to vector<16x128xf32>
    %20 = arith.mulf %15, %19 : vector<16x128xf32>
    %21 = vector.broadcast %1 : vector<1x128xf32> to vector<16x128xf32>
    %22 = arith.mulf %20, %21 : vector<16x128xf32>
    %23 = vector.broadcast %2 : vector<1x128xf32> to vector<16x128xf32>
    %24 = arith.addf %22, %23 : vector<16x128xf32>
    %c0_9 = arith.constant 0 : index
    %c0_10 = arith.constant 0 : index
    %c0_11 = arith.constant 0 : index
    %25 = vector.load %arg2[%c0_9, %c0_10, %c0_11] : memref<2x1x8xf32, #tpu.memory_space<vmem>>, vector<2x1x8xf32>
    %26 = arith.truncf %24 : vector<16x128xf32> to vector<16x128xbf16>
    %c0_12 = arith.constant 0 : index
    %c0_13 = arith.constant 0 : index
    %c0_14 = arith.constant 0 : index
    %27 = vector.load %arg5[%c0_12, %c0_13, %c0_14] : memref<2x128x384xbf16, #tpu.memory_space<vmem>>, vector<1x128x384xbf16>
    %28 = vector.shape_cast %27 : vector<1x128x384xbf16> to vector<128x384xbf16>
    %cst_15 = arith.constant dense<0.000000e+00> : vector<16x384xf32>
    %29 = tpu.matmul %26, %28, %cst_15 {dimension_numbers = #tpu.dot_dimension_numbers<[1], [0], [0], [1], [0, 0, 1, 1], [], []>} : vector<16x128xbf16>, vector<128x384xbf16>, vector<16x384xf32> -> vector<16x384xf32>
    %c0_16 = arith.constant 0 : index
    %c0_17 = arith.constant 0 : index
    %c0_18 = arith.constant 0 : index
    %30 = vector.load %arg6[%c0_16, %c0_17, %c0_18] : memref<2x1x384xf32, #tpu.memory_space<vmem>>, vector<1x1x384xf32>
    %31 = vector.shape_cast %30 : vector<1x1x384xf32> to vector<1x384xf32>
    %32 = vector.broadcast %31 : vector<1x384xf32> to vector<16x384xf32>
    %33 = arith.addf %29, %32 : vector<16x384xf32>
    %34 = vector.extract_strided_slice %33 {offsets = [0, 0], sizes = [16, 64], strides = [1, 1]} : vector<16x384xf32> to vector<16x64xf32>
    %35 = vector.shape_cast %34 : vector<16x64xf32> to vector<2x8x64xf32>
    %36 = arith.truncf %35 : vector<2x8x64xf32> to vector<2x8x64xbf16>
    %37 = vector.extract_strided_slice %33 {offsets = [0, 128], sizes = [16, 64], strides = [1, 1]} : vector<16x384xf32> to vector<16x64xf32>
    %38 = vector.shape_cast %37 : vector<16x64xf32> to vector<2x8x64xf32>
    %39 = arith.truncf %38 : vector<2x8x64xf32> to vector<2x8x64xbf16>
    %40 = vector.extract_strided_slice %33 {offsets = [0, 256], sizes = [16, 64], strides = [1, 1]} : vector<16x384xf32> to vector<16x64xf32>
    %41 = vector.shape_cast %40 : vector<16x64xf32> to vector<2x8x64xf32>
    %42 = arith.truncf %41 : vector<2x8x64xf32> to vector<2x8x64xbf16>
    "tpu.trace_start"() <{level = 10 : i32, message = "bqd,bkd->bqk"}> : () -> ()
    %cst_19 = arith.constant dense<0.000000e+00> : vector<2x8x8xf32>
    %43 = tpu.matmul %36, %39, %cst_19 {dimension_numbers = #tpu.dot_dimension_numbers<[2], [2], [1], [1], [0, 0, 0, 1, 1, 1], [0], [0]>} : vector<2x8x64xbf16>, vector<2x8x64xbf16>, vector<2x8x8xf32> -> vector<2x8x8xf32>
    "tpu.trace_stop"() : () -> ()
    %cst_20 = arith.constant 1.250000e-01 : f32
    %44 = vector.broadcast %cst_20 : f32 to vector<2x8x8xf32>
    %45 = arith.mulf %43, %44 : vector<2x8x8xf32>
    %46 = vector.broadcast %25 : vector<2x1x8xf32> to vector<2x8x8xf32>
    %47 = arith.addf %45, %46 : vector<2x8x8xf32>
    %cst_21 = arith.constant dense<0xFF800000> : vector<2x8xf32>
    %48 = vector.multi_reduction <maximumf>, %47, %cst_21 [2] : vector<2x8x8xf32> to vector<2x8xf32>
    %49 = vector.shape_cast %48 : vector<2x8xf32> to vector<2x8x1xf32>
    %50 = vector.broadcast %49 : vector<2x8x1xf32> to vector<2x8x8xf32>
    %51 = arith.subf %47, %50 : vector<2x8x8xf32>
    %52 = math.exp %51 : vector<2x8x8xf32>
    %cst_22 = arith.constant dense<0.000000e+00> : vector<2x8xf32>
    %53 = vector.multi_reduction <add>, %52, %cst_22 [2] : vector<2x8x8xf32> to vector<2x8xf32>
    %54 = vector.shape_cast %53 : vector<2x8xf32> to vector<2x8x1xf32>
    %55 = vector.broadcast %54 : vector<2x8x1xf32> to vector<2x8x8xf32>
    %56 = arith.divf %52, %55 : vector<2x8x8xf32>
    %57 = arith.truncf %56 : vector<2x8x8xf32> to vector<2x8x8xbf16>
    "tpu.trace_start"() <{level = 10 : i32, message = "bqk,bkd->bqd"}> : () -> ()
    %cst_23 = arith.constant dense<0.000000e+00> : vector<2x8x64xf32>
    %58 = tpu.matmul %57, %42, %cst_23 {dimension_numbers = #tpu.dot_dimension_numbers<[2], [1], [1], [2], [0, 0, 0, 1, 1, 2], [0], [0]>} : vector<2x8x8xbf16>, vector<2x8x64xbf16>, vector<2x8x64xf32> -> vector<2x8x64xf32>
    "tpu.trace_stop"() : () -> ()
    %59 = vector.shape_cast %58 : vector<2x8x64xf32> to vector<16x64xf32>
    %c0_24 = arith.constant 0 : index
    %c0_25 = arith.constant 0 : index
    %60 = vector.load %arg25[%c0_24, %c0_25] : memref<16x128xf32, #tpu.memory_space<vmem>>, vector<16x64xf32>
    tpu.vector_store %arg25[%c0_24, %c0_25], %59 {strides = array<i32>} : memref<16x128xf32, #tpu.memory_space<vmem>>, vector<16x64xf32>,
    %61 = vector.extract_strided_slice %33 {offsets = [0, 64], sizes = [16, 64], strides = [1, 1]} : vector<16x384xf32> to vector<16x64xf32>
    %62 = vector.shape_cast %61 : vector<16x64xf32> to vector<2x8x64xf32>
    %63 = arith.truncf %62 : vector<2x8x64xf32> to vector<2x8x64xbf16>
    %64 = vector.extract_strided_slice %33 {offsets = [0, 192], sizes = [16, 64], strides = [1, 1]} : vector<16x384xf32> to vector<16x64xf32>
    %65 = vector.shape_cast %64 : vector<16x64xf32> to vector<2x8x64xf32>
    %66 = arith.truncf %65 : vector<2x8x64xf32> to vector<2x8x64xbf16>
    %67 = vector.extract_strided_slice %33 {offsets = [0, 320], sizes = [16, 64], strides = [1, 1]} : vector<16x384xf32> to vector<16x64xf32>
    %68 = vector.shape_cast %67 : vector<16x64xf32> to vector<2x8x64xf32>
    %69 = arith.truncf %68 : vector<2x8x64xf32> to vector<2x8x64xbf16>
    "tpu.trace_start"() <{level = 10 : i32, message = "bqd,bkd->bqk"}> : () -> ()
    %cst_26 = arith.constant dense<0.000000e+00> : vector<2x8x8xf32>
    %70 = tpu.matmul %63, %66, %cst_26 {dimension_numbers = #tpu.dot_dimension_numbers<[2], [2], [1], [1], [0, 0, 0, 1, 1, 1], [0], [0]>} : vector<2x8x64xbf16>, vector<2x8x64xbf16>, vector<2x8x8xf32> -> vector<2x8x8xf32>
    "tpu.trace_stop"() : () -> ()
    %cst_27 = arith.constant 1.250000e-01 : f32
    %71 = vector.broadcast %cst_27 : f32 to vector<2x8x8xf32>
    %72 = arith.mulf %70, %71 : vector<2x8x8xf32>
    %73 = vector.broadcast %25 : vector<2x1x8xf32> to vector<2x8x8xf32>
    %74 = arith.addf %72, %73 : vector<2x8x8xf32>
    %cst_28 = arith.constant dense<0xFF800000> : vector<2x8xf32>
    %75 = vector.multi_reduction <maximumf>, %74, %cst_28 [2] : vector<2x8x8xf32> to vector<2x8xf32>
    %76 = vector.shape_cast %75 : vector<2x8xf32> to vector<2x8x1xf32>
    %77 = vector.broadcast %76 : vector<2x8x1xf32> to vector<2x8x8xf32>
    %78 = arith.subf %74, %77 : vector<2x8x8xf32>
    %79 = math.exp %78 : vector<2x8x8xf32>
    %cst_29 = arith.constant dense<0.000000e+00> : vector<2x8xf32>
    %80 = vector.multi_reduction <add>, %79, %cst_29 [2] : vector<2x8x8xf32> to vector<2x8xf32>
    %81 = vector.shape_cast %80 : vector<2x8xf32> to vector<2x8x1xf32>
    %82 = vector.broadcast %81 : vector<2x8x1xf32> to vector<2x8x8xf32>
    %83 = arith.divf %79, %82 : vector<2x8x8xf32>
    %84 = arith.truncf %83 : vector<2x8x8xf32> to vector<2x8x8xbf16>
    "tpu.trace_start"() <{level = 10 : i32, message = "bqk,bkd->bqd"}> : () -> ()
    %cst_30 = arith.constant dense<0.000000e+00> : vector<2x8x64xf32>
    %85 = tpu.matmul %84, %69, %cst_30 {dimension_numbers = #tpu.dot_dimension_numbers<[2], [1], [1], [2], [0, 0, 0, 1, 1, 2], [0], [0]>} : vector<2x8x8xbf16>, vector<2x8x64xbf16>, vector<2x8x64xf32> -> vector<2x8x64xf32>
    "tpu.trace_stop"() : () -> ()
    %86 = vector.shape_cast %85 : vector<2x8x64xf32> to vector<16x64xf32>
    %c0_31 = arith.constant 0 : index
    %c64 = arith.constant 64 : index
    %87 = vector.load %arg25[%c0_31, %c64] : memref<16x128xf32, #tpu.memory_space<vmem>>, vector<16x64xf32>
    tpu.vector_store %arg25[%c0_31, %c64], %86 {strides = array<i32>} : memref<16x128xf32, #tpu.memory_space<vmem>>, vector<16x64xf32>,
    %c0_32 = arith.constant 0 : index
    %c0_33 = arith.constant 0 : index
    %88 = vector.load %arg25[%c0_32, %c0_33] : memref<16x128xf32, #tpu.memory_space<vmem>>, vector<16x128xf32>
    %89 = arith.truncf %88 : vector<16x128xf32> to vector<16x128xbf16>
    %c0_34 = arith.constant 0 : index
    %c0_35 = arith.constant 0 : index
    %c0_36 = arith.constant 0 : index
    %90 = vector.load %arg7[%c0_34, %c0_35, %c0_36] : memref<2x128x128xbf16, #tpu.memory_space<vmem>>, vector<1x128x128xbf16>
    %91 = vector.shape_cast %90 : vector<1x128x128xbf16> to vector<128x128xbf16>
    %cst_37 = arith.constant dense<0.000000e+00> : vector<16x128xf32>
    %92 = tpu.matmul %89, %91, %cst_37 {dimension_numbers = #tpu.dot_dimension_numbers<[1], [0], [0], [1], [0, 0, 1, 1], [], []>} : vector<16x128xbf16>, vector<128x128xbf16>, vector<16x128xf32> -> vector<16x128xf32>
    %c0_38 = arith.constant 0 : index
    %c0_39 = arith.constant 0 : index
    %c0_40 = arith.constant 0 : index
    %93 = vector.load %arg8[%c0_38, %c0_39, %c0_40] : memref<2x1x128xf32, #tpu.memory_space<vmem>>, vector<1x1x128xf32>
    %94 = vector.shape_cast %93 : vector<1x1x128xf32> to vector<1x128xf32>
    %95 = vector.broadcast %94 : vector<1x128xf32> to vector<16x128xf32>
    %96 = arith.addf %92, %95 : vector<16x128xf32>
    %97 = arith.addf %24, %96 : vector<16x128xf32>
    %c0_41 = arith.constant 0 : index
    %c0_42 = arith.constant 0 : index
    %c0_43 = arith.constant 0 : index
    %98 = vector.load %arg9[%c0_41, %c0_42, %c0_43] : memref<2x1x128xf32, #tpu.memory_space<vmem>>, vector<1x1x128xf32>
    %99 = vector.shape_cast %98 : vector<1x1x128xf32> to vector<1x128xf32>
    %c0_44 = arith.constant 0 : index
    %c0_45 = arith.constant 0 : index
    %c0_46 = arith.constant 0 : index
    %100 = vector.load %arg10[%c0_44, %c0_45, %c0_46] : memref<2x1x128xf32, #tpu.memory_space<vmem>>, vector<1x1x128xf32>
    %101 = vector.shape_cast %100 : vector<1x1x128xf32> to vector<1x128xf32>
    %cst_47 = arith.constant dense<0.000000e+00> : vector<16xf32>
    %102 = vector.multi_reduction <add>, %97, %cst_47 [1] : vector<16x128xf32> to vector<16xf32>
    %103 = vector.shape_cast %102 : vector<16xf32> to vector<16x1xf32>
    %cst_48 = arith.constant 1.280000e+02 : f32
    %104 = vector.broadcast %cst_48 : f32 to vector<16x1xf32>
    %105 = arith.divf %103, %104 : vector<16x1xf32>
    %106 = vector.broadcast %105 : vector<16x1xf32> to vector<16x128xf32>
    %107 = arith.subf %97, %106 : vector<16x128xf32>
    %108 = arith.mulf %107, %107 : vector<16x128xf32>
    %cst_49 = arith.constant dense<0.000000e+00> : vector<16xf32>
    %109 = vector.multi_reduction <add>, %108, %cst_49 [1] : vector<16x128xf32> to vector<16xf32>
    %110 = vector.shape_cast %109 : vector<16xf32> to vector<16x1xf32>
    %cst_50 = arith.constant 1.280000e+02 : f32
    %111 = vector.broadcast %cst_50 : f32 to vector<16x1xf32>
    %112 = arith.divf %110, %111 : vector<16x1xf32>
    %113 = vector.broadcast %105 : vector<16x1xf32> to vector<16x128xf32>
    %114 = arith.subf %97, %113 : vector<16x128xf32>
    %cst_51 = arith.constant 9.99999996E-13 : f32
    %115 = vector.broadcast %cst_51 : f32 to vector<16x1xf32>
    %116 = arith.addf %112, %115 : vector<16x1xf32>
    %117 = math.rsqrt %116 : vector<16x1xf32>
    %118 = vector.broadcast %117 : vector<16x1xf32> to vector<16x128xf32>
    %119 = arith.mulf %114, %118 : vector<16x128xf32>
    %120 = vector.broadcast %99 : vector<1x128xf32> to vector<16x128xf32>
    %121 = arith.mulf %119, %120 : vector<16x128xf32>
    %122 = vector.broadcast %101 : vector<1x128xf32> to vector<16x128xf32>
    %123 = arith.addf %121, %122 : vector<16x128xf32>
    %124 = arith.truncf %123 : vector<16x128xf32> to vector<16x128xbf16>
    %c0_52 = arith.constant 0 : index
    %c0_53 = arith.constant 0 : index
    %c0_54 = arith.constant 0 : index
    %125 = vector.load %arg11[%c0_52, %c0_53, %c0_54] : memref<2x128x512xbf16, #tpu.memory_space<vmem>>, vector<1x128x512xbf16>
    %126 = vector.shape_cast %125 : vector<1x128x512xbf16> to vector<128x512xbf16>
    %cst_55 = arith.constant dense<0.000000e+00> : vector<16x512xf32>
    %127 = tpu.matmul %124, %126, %cst_55 {dimension_numbers = #tpu.dot_dimension_numbers<[1], [0], [0], [1], [0, 0, 1, 1], [], []>} : vector<16x128xbf16>, vector<128x512xbf16>, vector<16x512xf32> -> vector<16x512xf32>
    %c0_56 = arith.constant 0 : index
    %c0_57 = arith.constant 0 : index
    %c0_58 = arith.constant 0 : index
    %128 = vector.load %arg12[%c0_56, %c0_57, %c0_58] : memref<2x1x512xf32, #tpu.memory_space<vmem>>, vector<1x1x512xf32>
    %129 = vector.shape_cast %128 : vector<1x1x512xf32> to vector<1x512xf32>
    %130 = vector.broadcast %129 : vector<1x512xf32> to vector<16x512xf32>
    %131 = arith.addf %127, %130 : vector<16x512xf32>
    %cst_59 = arith.constant 5.000000e-01 : f32
    %132 = vector.broadcast %cst_59 : f32 to vector<16x512xf32>
    %133 = arith.mulf %132, %131 : vector<16x512xf32>
    %cst_60 = arith.constant 0.707106769 : f32
    %134 = vector.broadcast %cst_60 : f32 to vector<16x512xf32>
    %135 = arith.mulf %131, %134 : vector<16x512xf32>
    %cst_61 = arith.constant 0.000000e+00 : f32
    %136 = vector.broadcast %cst_61 : f32 to vector<16x512xf32>
    %137 = arith.cmpf oge, %135, %136 : vector<16x512xf32>
    %cst_62 = arith.constant 1.000000e+00 : f32
    %cst_63 = arith.constant -1.000000e+00 : f32
    %138 = vector.broadcast %cst_62 : f32 to vector<16x512xf32>
    %139 = vector.broadcast %cst_63 : f32 to vector<16x512xf32>
    %140 = arith.select %137, %138, %139 : vector<16x512xi1>, vector<16x512xf32>
    %141 = math.absf %135 : vector<16x512xf32>
    %cst_64 = arith.constant 0.327591091 : f32
    %142 = vector.broadcast %cst_64 : f32 to vector<16x512xf32>
    %143 = arith.mulf %142, %141 : vector<16x512xf32>
    %cst_65 = arith.constant 1.000000e+00 : f32
    %144 = vector.broadcast %cst_65 : f32 to vector<16x512xf32>
    %145 = arith.addf %144, %143 : vector<16x512xf32>
    %cst_66 = arith.constant 1.000000e+00 : f32
    %146 = vector.broadcast %cst_66 : f32 to vector<16x512xf32>
    %147 = arith.divf %146, %145 : vector<16x512xf32>
    %cst_67 = arith.constant 1.06140542 : f32
    %148 = vector.broadcast %cst_67 : f32 to vector<16x512xf32>
    %149 = arith.mulf %148, %147 : vector<16x512xf32>
    %cst_68 = arith.constant -1.45315206 : f32
    %150 = vector.broadcast %cst_68 : f32 to vector<16x512xf32>
    %151 = arith.addf %149, %150 : vector<16x512xf32>
    %152 = arith.mulf %151, %147 : vector<16x512xf32>
    %cst_69 = arith.constant 1.42141378 : f32
    %153 = vector.broadcast %cst_69 : f32 to vector<16x512xf32>
    %154 = arith.addf %152, %153 : vector<16x512xf32>
    %155 = arith.mulf %154, %147 : vector<16x512xf32>
    %cst_70 = arith.constant -0.284496725 : f32
    %156 = vector.broadcast %cst_70 : f32 to vector<16x512xf32>
    %157 = arith.addf %155, %156 : vector<16x512xf32>
    %158 = arith.mulf %157, %147 : vector<16x512xf32>
    %cst_71 = arith.constant 0.254829586 : f32
    %159 = vector.broadcast %cst_71 : f32 to vector<16x512xf32>
    %160 = arith.addf %158, %159 : vector<16x512xf32>
    %161 = arith.mulf %160, %147 : vector<16x512xf32>
    %cst_72 = arith.constant 0.000000e+00 : f32
    %162 = vector.broadcast %cst_72 : f32 to vector<16x512xf32>
    %163 = arith.subf %162, %141 : vector<16x512xf32>
    %164 = arith.mulf %163, %141 : vector<16x512xf32>
    %165 = math.exp %164 : vector<16x512xf32>
    %166 = arith.mulf %161, %165 : vector<16x512xf32>
    %cst_73 = arith.constant 1.000000e+00 : f32
    %167 = vector.broadcast %cst_73 : f32 to vector<16x512xf32>
    %168 = arith.subf %167, %166 : vector<16x512xf32>
    %169 = arith.mulf %140, %168 : vector<16x512xf32>
    %cst_74 = arith.constant 1.000000e+00 : f32
    %170 = vector.broadcast %cst_74 : f32 to vector<16x512xf32>
    %171 = arith.addf %170, %169 : vector<16x512xf32>
    %172 = arith.mulf %133, %171 : vector<16x512xf32>
    %173 = arith.truncf %172 : vector<16x512xf32> to vector<16x512xbf16>
    %c0_75 = arith.constant 0 : index
    %c0_76 = arith.constant 0 : index
    %c0_77 = arith.constant 0 : index
    %174 = vector.load %arg13[%c0_75, %c0_76, %c0_77] : memref<2x512x128xbf16, #tpu.memory_space<vmem>>, vector<1x512x128xbf16>
    %175 = vector.shape_cast %174 : vector<1x512x128xbf16> to vector<512x128xbf16>
    %cst_78 = arith.constant dense<0.000000e+00> : vector<16x128xf32>
    %176 = tpu.matmul %173, %175, %cst_78 {dimension_numbers = #tpu.dot_dimension_numbers<[1], [0], [0], [1], [0, 0, 1, 1], [], []>} : vector<16x512xbf16>, vector<512x128xbf16>, vector<16x128xf32> -> vector<16x128xf32>
    %c0_79 = arith.constant 0 : index
    %c0_80 = arith.constant 0 : index
    %c0_81 = arith.constant 0 : index
    %177 = vector.load %arg14[%c0_79, %c0_80, %c0_81] : memref<2x1x128xf32, #tpu.memory_space<vmem>>, vector<1x1x128xf32>
    %178 = vector.shape_cast %177 : vector<1x1x128xf32> to vector<1x128xf32>
    %179 = vector.broadcast %178 : vector<1x128xf32> to vector<16x128xf32>
    %180 = arith.addf %176, %179 : vector<16x128xf32>
    %181 = arith.addf %123, %180 : vector<16x128xf32>
    %c0_82 = arith.constant 0 : index
    %c0_83 = arith.constant 0 : index
    %c0_84 = arith.constant 0 : index
    %182 = vector.load %arg15[%c0_82, %c0_83, %c0_84] : memref<2x1x128xf32, #tpu.memory_space<vmem>>, vector<1x1x128xf32>
    %183 = vector.shape_cast %182 : vector<1x1x128xf32> to vector<1x128xf32>
    %c0_85 = arith.constant 0 : index
    %c0_86 = arith.constant 0 : index
    %c0_87 = arith.constant 0 : index
    %184 = vector.load %arg16[%c0_85, %c0_86, %c0_87] : memref<2x1x128xf32, #tpu.memory_space<vmem>>, vector<1x1x128xf32>
    %185 = vector.shape_cast %184 : vector<1x1x128xf32> to vector<1x128xf32>
    %cst_88 = arith.constant dense<0.000000e+00> : vector<16xf32>
    %186 = vector.multi_reduction <add>, %181, %cst_88 [1] : vector<16x128xf32> to vector<16xf32>
    %187 = vector.shape_cast %186 : vector<16xf32> to vector<16x1xf32>
    %cst_89 = arith.constant 1.280000e+02 : f32
    %188 = vector.broadcast %cst_89 : f32 to vector<16x1xf32>
    %189 = arith.divf %187, %188 : vector<16x1xf32>
    %190 = vector.broadcast %189 : vector<16x1xf32> to vector<16x128xf32>
    %191 = arith.subf %181, %190 : vector<16x128xf32>
    %192 = arith.mulf %191, %191 : vector<16x128xf32>
    %cst_90 = arith.constant dense<0.000000e+00> : vector<16xf32>
    %193 = vector.multi_reduction <add>, %192, %cst_90 [1] : vector<16x128xf32> to vector<16xf32>
    %194 = vector.shape_cast %193 : vector<16xf32> to vector<16x1xf32>
    %cst_91 = arith.constant 1.280000e+02 : f32
    %195 = vector.broadcast %cst_91 : f32 to vector<16x1xf32>
    %196 = arith.divf %194, %195 : vector<16x1xf32>
    %197 = vector.broadcast %189 : vector<16x1xf32> to vector<16x128xf32>
    %198 = arith.subf %181, %197 : vector<16x128xf32>
    %cst_92 = arith.constant 9.99999996E-13 : f32
    %199 = vector.broadcast %cst_92 : f32 to vector<16x1xf32>
    %200 = arith.addf %196, %199 : vector<16x1xf32>
    %201 = math.rsqrt %200 : vector<16x1xf32>
    %202 = vector.broadcast %201 : vector<16x1xf32> to vector<16x128xf32>
    %203 = arith.mulf %198, %202 : vector<16x128xf32>
    %204 = vector.broadcast %183 : vector<1x128xf32> to vector<16x128xf32>
    %205 = arith.mulf %203, %204 : vector<16x128xf32>
    %206 = vector.broadcast %185 : vector<1x128xf32> to vector<16x128xf32>
    %207 = arith.addf %205, %206 : vector<16x128xf32>
    %208 = arith.truncf %207 : vector<16x128xf32> to vector<16x128xbf16>
    %c1 = arith.constant 1 : index
    %c0_93 = arith.constant 0 : index
    %c0_94 = arith.constant 0 : index
    %209 = vector.load %arg5[%c1, %c0_93, %c0_94] : memref<2x128x384xbf16, #tpu.memory_space<vmem>>, vector<1x128x384xbf16>
    %210 = vector.shape_cast %209 : vector<1x128x384xbf16> to vector<128x384xbf16>
    %cst_95 = arith.constant dense<0.000000e+00> : vector<16x384xf32>
    %211 = tpu.matmul %208, %210, %cst_95 {dimension_numbers = #tpu.dot_dimension_numbers<[1], [0], [0], [1], [0, 0, 1, 1], [], []>} : vector<16x128xbf16>, vector<128x384xbf16>, vector<16x384xf32> -> vector<16x384xf32>
    %c1_96 = arith.constant 1 : index
    %c0_97 = arith.constant 0 : index
    %c0_98 = arith.constant 0 : index
    %212 = vector.load %arg6[%c1_96, %c0_97, %c0_98] : memref<2x1x384xf32, #tpu.memory_space<vmem>>, vector<1x1x384xf32>
    %213 = vector.shape_cast %212 : vector<1x1x384xf32> to vector<1x384xf32>
    %214 = vector.broadcast %213 : vector<1x384xf32> to vector<16x384xf32>
    %215 = arith.addf %211, %214 : vector<16x384xf32>
    %216 = vector.extract_strided_slice %215 {offsets = [0, 0], sizes = [16, 64], strides = [1, 1]} : vector<16x384xf32> to vector<16x64xf32>
    %217 = vector.shape_cast %216 : vector<16x64xf32> to vector<2x8x64xf32>
    %218 = arith.truncf %217 : vector<2x8x64xf32> to vector<2x8x64xbf16>
    %219 = vector.extract_strided_slice %215 {offsets = [0, 128], sizes = [16, 64], strides = [1, 1]} : vector<16x384xf32> to vector<16x64xf32>
    %220 = vector.shape_cast %219 : vector<16x64xf32> to vector<2x8x64xf32>
    %221 = arith.truncf %220 : vector<2x8x64xf32> to vector<2x8x64xbf16>
    %222 = vector.extract_strided_slice %215 {offsets = [0, 256], sizes = [16, 64], strides = [1, 1]} : vector<16x384xf32> to vector<16x64xf32>
    %223 = vector.shape_cast %222 : vector<16x64xf32> to vector<2x8x64xf32>
    %224 = arith.truncf %223 : vector<2x8x64xf32> to vector<2x8x64xbf16>
    "tpu.trace_start"() <{level = 10 : i32, message = "bqd,bkd->bqk"}> : () -> ()
    %cst_99 = arith.constant dense<0.000000e+00> : vector<2x8x8xf32>
    %225 = tpu.matmul %218, %221, %cst_99 {dimension_numbers = #tpu.dot_dimension_numbers<[2], [2], [1], [1], [0, 0, 0, 1, 1, 1], [0], [0]>} : vector<2x8x64xbf16>, vector<2x8x64xbf16>, vector<2x8x8xf32> -> vector<2x8x8xf32>
    "tpu.trace_stop"() : () -> ()
    %cst_100 = arith.constant 1.250000e-01 : f32
    %226 = vector.broadcast %cst_100 : f32 to vector<2x8x8xf32>
    %227 = arith.mulf %225, %226 : vector<2x8x8xf32>
    %228 = vector.broadcast %25 : vector<2x1x8xf32> to vector<2x8x8xf32>
    %229 = arith.addf %227, %228 : vector<2x8x8xf32>
    %cst_101 = arith.constant dense<0xFF800000> : vector<2x8xf32>
    %230 = vector.multi_reduction <maximumf>, %229, %cst_101 [2] : vector<2x8x8xf32> to vector<2x8xf32>
    %231 = vector.shape_cast %230 : vector<2x8xf32> to vector<2x8x1xf32>
    %232 = vector.broadcast %231 : vector<2x8x1xf32> to vector<2x8x8xf32>
    %233 = arith.subf %229, %232 : vector<2x8x8xf32>
    %234 = math.exp %233 : vector<2x8x8xf32>
    %cst_102 = arith.constant dense<0.000000e+00> : vector<2x8xf32>
    %235 = vector.multi_reduction <add>, %234, %cst_102 [2] : vector<2x8x8xf32> to vector<2x8xf32>
    %236 = vector.shape_cast %235 : vector<2x8xf32> to vector<2x8x1xf32>
    %237 = vector.broadcast %236 : vector<2x8x1xf32> to vector<2x8x8xf32>
    %238 = arith.divf %234, %237 : vector<2x8x8xf32>
    %239 = arith.truncf %238 : vector<2x8x8xf32> to vector<2x8x8xbf16>
    "tpu.trace_start"() <{level = 10 : i32, message = "bqk,bkd->bqd"}> : () -> ()
    %cst_103 = arith.constant dense<0.000000e+00> : vector<2x8x64xf32>
    %240 = tpu.matmul %239, %224, %cst_103 {dimension_numbers = #tpu.dot_dimension_numbers<[2], [1], [1], [2], [0, 0, 0, 1, 1, 2], [0], [0]>} : vector<2x8x8xbf16>, vector<2x8x64xbf16>, vector<2x8x64xf32> -> vector<2x8x64xf32>
    "tpu.trace_stop"() : () -> ()
    %241 = vector.shape_cast %240 : vector<2x8x64xf32> to vector<16x64xf32>
    %c0_104 = arith.constant 0 : index
    %c0_105 = arith.constant 0 : index
    %242 = vector.load %arg25[%c0_104, %c0_105] : memref<16x128xf32, #tpu.memory_space<vmem>>, vector<16x64xf32>
    tpu.vector_store %arg25[%c0_104, %c0_105], %241 {strides = array<i32>} : memref<16x128xf32, #tpu.memory_space<vmem>>, vector<16x64xf32>,
    %243 = vector.extract_strided_slice %215 {offsets = [0, 64], sizes = [16, 64], strides = [1, 1]} : vector<16x384xf32> to vector<16x64xf32>
    %244 = vector.shape_cast %243 : vector<16x64xf32> to vector<2x8x64xf32>
    %245 = arith.truncf %244 : vector<2x8x64xf32> to vector<2x8x64xbf16>
    %246 = vector.extract_strided_slice %215 {offsets = [0, 192], sizes = [16, 64], strides = [1, 1]} : vector<16x384xf32> to vector<16x64xf32>
    %247 = vector.shape_cast %246 : vector<16x64xf32> to vector<2x8x64xf32>
    %248 = arith.truncf %247 : vector<2x8x64xf32> to vector<2x8x64xbf16>
    %249 = vector.extract_strided_slice %215 {offsets = [0, 320], sizes = [16, 64], strides = [1, 1]} : vector<16x384xf32> to vector<16x64xf32>
    %250 = vector.shape_cast %249 : vector<16x64xf32> to vector<2x8x64xf32>
    %251 = arith.truncf %250 : vector<2x8x64xf32> to vector<2x8x64xbf16>
    "tpu.trace_start"() <{level = 10 : i32, message = "bqd,bkd->bqk"}> : () -> ()
    %cst_106 = arith.constant dense<0.000000e+00> : vector<2x8x8xf32>
    %252 = tpu.matmul %245, %248, %cst_106 {dimension_numbers = #tpu.dot_dimension_numbers<[2], [2], [1], [1], [0, 0, 0, 1, 1, 1], [0], [0]>} : vector<2x8x64xbf16>, vector<2x8x64xbf16>, vector<2x8x8xf32> -> vector<2x8x8xf32>
    "tpu.trace_stop"() : () -> ()
    %cst_107 = arith.constant 1.250000e-01 : f32
    %253 = vector.broadcast %cst_107 : f32 to vector<2x8x8xf32>
    %254 = arith.mulf %252, %253 : vector<2x8x8xf32>
    %255 = vector.broadcast %25 : vector<2x1x8xf32> to vector<2x8x8xf32>
    %256 = arith.addf %254, %255 : vector<2x8x8xf32>
    %cst_108 = arith.constant dense<0xFF800000> : vector<2x8xf32>
    %257 = vector.multi_reduction <maximumf>, %256, %cst_108 [2] : vector<2x8x8xf32> to vector<2x8xf32>
    %258 = vector.shape_cast %257 : vector<2x8xf32> to vector<2x8x1xf32>
    %259 = vector.broadcast %258 : vector<2x8x1xf32> to vector<2x8x8xf32>
    %260 = arith.subf %256, %259 : vector<2x8x8xf32>
    %261 = math.exp %260 : vector<2x8x8xf32>
    %cst_109 = arith.constant dense<0.000000e+00> : vector<2x8xf32>
    %262 = vector.multi_reduction <add>, %261, %cst_109 [2] : vector<2x8x8xf32> to vector<2x8xf32>
    %263 = vector.shape_cast %262 : vector<2x8xf32> to vector<2x8x1xf32>
    %264 = vector.broadcast %263 : vector<2x8x1xf32> to vector<2x8x8xf32>
    %265 = arith.divf %261, %264 : vector<2x8x8xf32>
    %266 = arith.truncf %265 : vector<2x8x8xf32> to vector<2x8x8xbf16>
    "tpu.trace_start"() <{level = 10 : i32, message = "bqk,bkd->bqd"}> : () -> ()
    %cst_110 = arith.constant dense<0.000000e+00> : vector<2x8x64xf32>
    %267 = tpu.matmul %266, %251, %cst_110 {dimension_numbers = #tpu.dot_dimension_numbers<[2], [1], [1], [2], [0, 0, 0, 1, 1, 2], [0], [0]>} : vector<2x8x8xbf16>, vector<2x8x64xbf16>, vector<2x8x64xf32> -> vector<2x8x64xf32>
    "tpu.trace_stop"() : () -> ()
    %268 = vector.shape_cast %267 : vector<2x8x64xf32> to vector<16x64xf32>
    %c0_111 = arith.constant 0 : index
    %c64_112 = arith.constant 64 : index
    %269 = vector.load %arg25[%c0_111, %c64_112] : memref<16x128xf32, #tpu.memory_space<vmem>>, vector<16x64xf32>
    tpu.vector_store %arg25[%c0_111, %c64_112], %268 {strides = array<i32>} : memref<16x128xf32, #tpu.memory_space<vmem>>, vector<16x64xf32>,
    %c0_113 = arith.constant 0 : index
    %c0_114 = arith.constant 0 : index
    %270 = vector.load %arg25[%c0_113, %c0_114] : memref<16x128xf32, #tpu.memory_space<vmem>>, vector<16x128xf32>
    %271 = arith.truncf %270 : vector<16x128xf32> to vector<16x128xbf16>
    %c1_115 = arith.constant 1 : index
    %c0_116 = arith.constant 0 : index
    %c0_117 = arith.constant 0 : index
    %272 = vector.load %arg7[%c1_115, %c0_116, %c0_117] : memref<2x128x128xbf16, #tpu.memory_space<vmem>>, vector<1x128x128xbf16>
    %273 = vector.shape_cast %272 : vector<1x128x128xbf16> to vector<128x128xbf16>
    %cst_118 = arith.constant dense<0.000000e+00> : vector<16x128xf32>
    %274 = tpu.matmul %271, %273, %cst_118 {dimension_numbers = #tpu.dot_dimension_numbers<[1], [0], [0], [1], [0, 0, 1, 1], [], []>} : vector<16x128xbf16>, vector<128x128xbf16>, vector<16x128xf32> -> vector<16x128xf32>
    %c1_119 = arith.constant 1 : index
    %c0_120 = arith.constant 0 : index
    %c0_121 = arith.constant 0 : index
    %275 = vector.load %arg8[%c1_119, %c0_120, %c0_121] : memref<2x1x128xf32, #tpu.memory_space<vmem>>, vector<1x1x128xf32>
    %276 = vector.shape_cast %275 : vector<1x1x128xf32> to vector<1x128xf32>
    %277 = vector.broadcast %276 : vector<1x128xf32> to vector<16x128xf32>
    %278 = arith.addf %274, %277 : vector<16x128xf32>
    %279 = arith.addf %207, %278 : vector<16x128xf32>
    %c1_122 = arith.constant 1 : index
    %c0_123 = arith.constant 0 : index
    %c0_124 = arith.constant 0 : index
    %280 = vector.load %arg9[%c1_122, %c0_123, %c0_124] : memref<2x1x128xf32, #tpu.memory_space<vmem>>, vector<1x1x128xf32>
    %281 = vector.shape_cast %280 : vector<1x1x128xf32> to vector<1x128xf32>
    %c1_125 = arith.constant 1 : index
    %c0_126 = arith.constant 0 : index
    %c0_127 = arith.constant 0 : index
    %282 = vector.load %arg10[%c1_125, %c0_126, %c0_127] : memref<2x1x128xf32, #tpu.memory_space<vmem>>, vector<1x1x128xf32>
    %283 = vector.shape_cast %282 : vector<1x1x128xf32> to vector<1x128xf32>
    %cst_128 = arith.constant dense<0.000000e+00> : vector<16xf32>
    %284 = vector.multi_reduction <add>, %279, %cst_128 [1] : vector<16x128xf32> to vector<16xf32>
    %285 = vector.shape_cast %284 : vector<16xf32> to vector<16x1xf32>
    %cst_129 = arith.constant 1.280000e+02 : f32
    %286 = vector.broadcast %cst_129 : f32 to vector<16x1xf32>
    %287 = arith.divf %285, %286 : vector<16x1xf32>
    %288 = vector.broadcast %287 : vector<16x1xf32> to vector<16x128xf32>
    %289 = arith.subf %279, %288 : vector<16x128xf32>
    %290 = arith.mulf %289, %289 : vector<16x128xf32>
    %cst_130 = arith.constant dense<0.000000e+00> : vector<16xf32>
    %291 = vector.multi_reduction <add>, %290, %cst_130 [1] : vector<16x128xf32> to vector<16xf32>
    %292 = vector.shape_cast %291 : vector<16xf32> to vector<16x1xf32>
    %cst_131 = arith.constant 1.280000e+02 : f32
    %293 = vector.broadcast %cst_131 : f32 to vector<16x1xf32>
    %294 = arith.divf %292, %293 : vector<16x1xf32>
    %295 = vector.broadcast %287 : vector<16x1xf32> to vector<16x128xf32>
    %296 = arith.subf %279, %295 : vector<16x128xf32>
    %cst_132 = arith.constant 9.99999996E-13 : f32
    %297 = vector.broadcast %cst_132 : f32 to vector<16x1xf32>
    %298 = arith.addf %294, %297 : vector<16x1xf32>
    %299 = math.rsqrt %298 : vector<16x1xf32>
    %300 = vector.broadcast %299 : vector<16x1xf32> to vector<16x128xf32>
    %301 = arith.mulf %296, %300 : vector<16x128xf32>
    %302 = vector.broadcast %281 : vector<1x128xf32> to vector<16x128xf32>
    %303 = arith.mulf %301, %302 : vector<16x128xf32>
    %304 = vector.broadcast %283 : vector<1x128xf32> to vector<16x128xf32>
    %305 = arith.addf %303, %304 : vector<16x128xf32>
    %306 = arith.truncf %305 : vector<16x128xf32> to vector<16x128xbf16>
    %c1_133 = arith.constant 1 : index
    %c0_134 = arith.constant 0 : index
    %c0_135 = arith.constant 0 : index
    %307 = vector.load %arg11[%c1_133, %c0_134, %c0_135] : memref<2x128x512xbf16, #tpu.memory_space<vmem>>, vector<1x128x512xbf16>
    %308 = vector.shape_cast %307 : vector<1x128x512xbf16> to vector<128x512xbf16>
    %cst_136 = arith.constant dense<0.000000e+00> : vector<16x512xf32>
    %309 = tpu.matmul %306, %308, %cst_136 {dimension_numbers = #tpu.dot_dimension_numbers<[1], [0], [0], [1], [0, 0, 1, 1], [], []>} : vector<16x128xbf16>, vector<128x512xbf16>, vector<16x512xf32> -> vector<16x512xf32>
    %c1_137 = arith.constant 1 : index
    %c0_138 = arith.constant 0 : index
    %c0_139 = arith.constant 0 : index
    %310 = vector.load %arg12[%c1_137, %c0_138, %c0_139] : memref<2x1x512xf32, #tpu.memory_space<vmem>>, vector<1x1x512xf32>
    %311 = vector.shape_cast %310 : vector<1x1x512xf32> to vector<1x512xf32>
    %312 = vector.broadcast %311 : vector<1x512xf32> to vector<16x512xf32>
    %313 = arith.addf %309, %312 : vector<16x512xf32>
    %cst_140 = arith.constant 5.000000e-01 : f32
    %314 = vector.broadcast %cst_140 : f32 to vector<16x512xf32>
    %315 = arith.mulf %314, %313 : vector<16x512xf32>
    %cst_141 = arith.constant 0.707106769 : f32
    %316 = vector.broadcast %cst_141 : f32 to vector<16x512xf32>
    %317 = arith.mulf %313, %316 : vector<16x512xf32>
    %cst_142 = arith.constant 0.000000e+00 : f32
    %318 = vector.broadcast %cst_142 : f32 to vector<16x512xf32>
    %319 = arith.cmpf oge, %317, %318 : vector<16x512xf32>
    %cst_143 = arith.constant 1.000000e+00 : f32
    %cst_144 = arith.constant -1.000000e+00 : f32
    %320 = vector.broadcast %cst_143 : f32 to vector<16x512xf32>
    %321 = vector.broadcast %cst_144 : f32 to vector<16x512xf32>
    %322 = arith.select %319, %320, %321 : vector<16x512xi1>, vector<16x512xf32>
    %323 = math.absf %317 : vector<16x512xf32>
    %cst_145 = arith.constant 0.327591091 : f32
    %324 = vector.broadcast %cst_145 : f32 to vector<16x512xf32>
    %325 = arith.mulf %324, %323 : vector<16x512xf32>
    %cst_146 = arith.constant 1.000000e+00 : f32
    %326 = vector.broadcast %cst_146 : f32 to vector<16x512xf32>
    %327 = arith.addf %326, %325 : vector<16x512xf32>
    %cst_147 = arith.constant 1.000000e+00 : f32
    %328 = vector.broadcast %cst_147 : f32 to vector<16x512xf32>
    %329 = arith.divf %328, %327 : vector<16x512xf32>
    %cst_148 = arith.constant 1.06140542 : f32
    %330 = vector.broadcast %cst_148 : f32 to vector<16x512xf32>
    %331 = arith.mulf %330, %329 : vector<16x512xf32>
    %cst_149 = arith.constant -1.45315206 : f32
    %332 = vector.broadcast %cst_149 : f32 to vector<16x512xf32>
    %333 = arith.addf %331, %332 : vector<16x512xf32>
    %334 = arith.mulf %333, %329 : vector<16x512xf32>
    %cst_150 = arith.constant 1.42141378 : f32
    %335 = vector.broadcast %cst_150 : f32 to vector<16x512xf32>
    %336 = arith.addf %334, %335 : vector<16x512xf32>
    %337 = arith.mulf %336, %329 : vector<16x512xf32>
    %cst_151 = arith.constant -0.284496725 : f32
    %338 = vector.broadcast %cst_151 : f32 to vector<16x512xf32>
    %339 = arith.addf %337, %338 : vector<16x512xf32>
    %340 = arith.mulf %339, %329 : vector<16x512xf32>
    %cst_152 = arith.constant 0.254829586 : f32
    %341 = vector.broadcast %cst_152 : f32 to vector<16x512xf32>
    %342 = arith.addf %340, %341 : vector<16x512xf32>
    %343 = arith.mulf %342, %329 : vector<16x512xf32>
    %cst_153 = arith.constant 0.000000e+00 : f32
    %344 = vector.broadcast %cst_153 : f32 to vector<16x512xf32>
    %345 = arith.subf %344, %323 : vector<16x512xf32>
    %346 = arith.mulf %345, %323 : vector<16x512xf32>
    %347 = math.exp %346 : vector<16x512xf32>
    %348 = arith.mulf %343, %347 : vector<16x512xf32>
    %cst_154 = arith.constant 1.000000e+00 : f32
    %349 = vector.broadcast %cst_154 : f32 to vector<16x512xf32>
    %350 = arith.subf %349, %348 : vector<16x512xf32>
    %351 = arith.mulf %322, %350 : vector<16x512xf32>
    %cst_155 = arith.constant 1.000000e+00 : f32
    %352 = vector.broadcast %cst_155 : f32 to vector<16x512xf32>
    %353 = arith.addf %352, %351 : vector<16x512xf32>
    %354 = arith.mulf %315, %353 : vector<16x512xf32>
    %355 = arith.truncf %354 : vector<16x512xf32> to vector<16x512xbf16>
    %c1_156 = arith.constant 1 : index
    %c0_157 = arith.constant 0 : index
    %c0_158 = arith.constant 0 : index
    %356 = vector.load %arg13[%c1_156, %c0_157, %c0_158] : memref<2x512x128xbf16, #tpu.memory_space<vmem>>, vector<1x512x128xbf16>
    %357 = vector.shape_cast %356 : vector<1x512x128xbf16> to vector<512x128xbf16>
    %cst_159 = arith.constant dense<0.000000e+00> : vector<16x128xf32>
    %358 = tpu.matmul %355, %357, %cst_159 {dimension_numbers = #tpu.dot_dimension_numbers<[1], [0], [0], [1], [0, 0, 1, 1], [], []>} : vector<16x512xbf16>, vector<512x128xbf16>, vector<16x128xf32> -> vector<16x128xf32>
    %c1_160 = arith.constant 1 : index
    %c0_161 = arith.constant 0 : index
    %c0_162 = arith.constant 0 : index
    %359 = vector.load %arg14[%c1_160, %c0_161, %c0_162] : memref<2x1x128xf32, #tpu.memory_space<vmem>>, vector<1x1x128xf32>
    %360 = vector.shape_cast %359 : vector<1x1x128xf32> to vector<1x128xf32>
    %361 = vector.broadcast %360 : vector<1x128xf32> to vector<16x128xf32>
    %362 = arith.addf %358, %361 : vector<16x128xf32>
    %363 = arith.addf %305, %362 : vector<16x128xf32>
    %c1_163 = arith.constant 1 : index
    %c0_164 = arith.constant 0 : index
    %c0_165 = arith.constant 0 : index
    %364 = vector.load %arg15[%c1_163, %c0_164, %c0_165] : memref<2x1x128xf32, #tpu.memory_space<vmem>>, vector<1x1x128xf32>
    %365 = vector.shape_cast %364 : vector<1x1x128xf32> to vector<1x128xf32>
    %c1_166 = arith.constant 1 : index
    %c0_167 = arith.constant 0 : index
    %c0_168 = arith.constant 0 : index
    %366 = vector.load %arg16[%c1_166, %c0_167, %c0_168] : memref<2x1x128xf32, #tpu.memory_space<vmem>>, vector<1x1x128xf32>
    %367 = vector.shape_cast %366 : vector<1x1x128xf32> to vector<1x128xf32>
    %cst_169 = arith.constant dense<0.000000e+00> : vector<16xf32>
    %368 = vector.multi_reduction <add>, %363, %cst_169 [1] : vector<16x128xf32> to vector<16xf32>
    %369 = vector.shape_cast %368 : vector<16xf32> to vector<16x1xf32>
    %cst_170 = arith.constant 1.280000e+02 : f32
    %370 = vector.broadcast %cst_170 : f32 to vector<16x1xf32>
    %371 = arith.divf %369, %370 : vector<16x1xf32>
    %372 = vector.broadcast %371 : vector<16x1xf32> to vector<16x128xf32>
    %373 = arith.subf %363, %372 : vector<16x128xf32>
    %374 = arith.mulf %373, %373 : vector<16x128xf32>
    %cst_171 = arith.constant dense<0.000000e+00> : vector<16xf32>
    %375 = vector.multi_reduction <add>, %374, %cst_171 [1] : vector<16x128xf32> to vector<16xf32>
    %376 = vector.shape_cast %375 : vector<16xf32> to vector<16x1xf32>
    %cst_172 = arith.constant 1.280000e+02 : f32
    %377 = vector.broadcast %cst_172 : f32 to vector<16x1xf32>
    %378 = arith.divf %376, %377 : vector<16x1xf32>
    %379 = vector.broadcast %371 : vector<16x1xf32> to vector<16x128xf32>
    %380 = arith.subf %363, %379 : vector<16x128xf32>
    %cst_173 = arith.constant 9.99999996E-13 : f32
    %381 = vector.broadcast %cst_173 : f32 to vector<16x1xf32>
    %382 = arith.addf %378, %381 : vector<16x1xf32>
    %383 = math.rsqrt %382 : vector<16x1xf32>
    %384 = vector.broadcast %383 : vector<16x1xf32> to vector<16x128xf32>
    %385 = arith.mulf %380, %384 : vector<16x128xf32>
    %386 = vector.broadcast %365 : vector<1x128xf32> to vector<16x128xf32>
    %387 = arith.mulf %385, %386 : vector<16x128xf32>
    %388 = vector.broadcast %367 : vector<1x128xf32> to vector<16x128xf32>
    %389 = arith.addf %387, %388 : vector<16x128xf32>
    %390 = vector.shape_cast %389 : vector<16x128xf32> to vector<2x8x128xf32>
    %391 = vector.extract_strided_slice %390 {offsets = [0, 0, 0], sizes = [2, 1, 128], strides = [1, 1, 1]} : vector<2x8x128xf32> to vector<2x1x128xf32>
    %392 = vector.shape_cast %391 : vector<2x1x128xf32> to vector<2x128xf32>
    %393 = arith.truncf %392 : vector<2x128xf32> to vector<2x128xbf16>
    %c0_174 = arith.constant 0 : index
    %c0_175 = arith.constant 0 : index
    %394 = vector.load %arg17[%c0_174, %c0_175] : memref<128x128xbf16, #tpu.memory_space<vmem>>, vector<128x128xbf16>
    %cst_176 = arith.constant dense<0.000000e+00> : vector<2x128xf32>
    %395 = tpu.matmul %393, %394, %cst_176 {dimension_numbers = #tpu.dot_dimension_numbers<[1], [0], [0], [1], [0, 0, 1, 1], [], []>} : vector<2x128xbf16>, vector<128x128xbf16>, vector<2x128xf32> -> vector<2x128xf32>
    %c0_177 = arith.constant 0 : index
    %c0_178 = arith.constant 0 : index
    %396 = vector.load %arg18[%c0_177, %c0_178] : memref<1x128xf32, #tpu.memory_space<vmem>>, vector<1x128xf32>
    %397 = vector.broadcast %396 : vector<1x128xf32> to vector<2x128xf32>
    %398 = arith.addf %395, %397 : vector<2x128xf32>
    %399 = math.tanh %398 : vector<2x128xf32>
    %400 = arith.truncf %399 : vector<2x128xf32> to vector<2x128xbf16>
    %c0_179 = arith.constant 0 : index
    %c0_180 = arith.constant 0 : index
    %401 = vector.load %arg19[%c0_179, %c0_180] : memref<128x128xbf16, #tpu.memory_space<vmem>>, vector<128x128xbf16>
    %cst_181 = arith.constant dense<0.000000e+00> : vector<2x128xf32>
    %402 = tpu.matmul %400, %401, %cst_181 {dimension_numbers = #tpu.dot_dimension_numbers<[1], [0], [0], [1], [0, 0, 1, 1], [], []>} : vector<2x128xbf16>, vector<128x128xbf16>, vector<2x128xf32> -> vector<2x128xf32>
    %c0_182 = arith.constant 0 : index
    %c0_183 = arith.constant 0 : index
    %403 = vector.load %arg20[%c0_182, %c0_183] : memref<1x128xf32, #tpu.memory_space<vmem>>, vector<1x128xf32>
    %404 = vector.broadcast %403 : vector<1x128xf32> to vector<2x128xf32>
    %405 = arith.addf %402, %404 : vector<2x128xf32>
    %c0_184 = arith.constant 0 : index
    %c0_185 = arith.constant 0 : index
    %406 = vector.load %arg21[%c0_184, %c0_185] : memref<2x128xf32, #tpu.memory_space<vmem>>, vector<2x128xf32>
    %407 = arith.mulf %405, %406 : vector<2x128xf32>
    %c0_186 = arith.constant 0 : index
    %c0_187 = arith.constant 0 : index
    %408 = vector.load %arg23[%c0_186, %c0_187] : memref<2x128xf32, #tpu.memory_space<vmem>>, vector<2x128xf32>
    tpu.vector_store %arg23[%c0_186, %c0_187], %407 {strides = array<i32>} : memref<2x128xf32, #tpu.memory_space<vmem>>, vector<2x128xf32>,
    %409 = tpu.iota {dimensions = array<i32: 1>} : vector<2x128xi32>
    %c7_i32 = arith.constant 7 : i32
    %410 = vector.broadcast %c7_i32 : i32 to vector<2x128xi32>
    %411 = arith.cmpi slt, %409, %410 : vector<2x128xi32>
    %cst_188 = arith.constant -1.000000e+30 : f32
    %412 = vector.broadcast %cst_188 : f32 to vector<2x128xf32>
    %413 = arith.select %411, %407, %412 : vector<2x128xi1>, vector<2x128xf32>
    %cst_189 = arith.constant dense<0xFF800000> : vector<2xf32>
    %414 = vector.multi_reduction <maximumf>, %413, %cst_189 [1] : vector<2x128xf32> to vector<2xf32>
    %415 = vector.shape_cast %414 : vector<2xf32> to vector<2x1xf32>
    %416 = vector.broadcast %415 : vector<2x1xf32> to vector<2x128xf32>
    %417 = arith.subf %413, %416 : vector<2x128xf32>
    %418 = math.exp %417 : vector<2x128xf32>
    %cst_190 = arith.constant dense<0.000000e+00> : vector<2xf32>
    %419 = vector.multi_reduction <add>, %418, %cst_190 [1] : vector<2x128xf32> to vector<2xf32>
    %420 = vector.shape_cast %419 : vector<2xf32> to vector<2x1xf32>
    %421 = math.log %420 : vector<2x1xf32>
    %422 = arith.addf %421, %415 : vector<2x1xf32>
    %c0_191 = arith.constant 0 : index
    %c0_192 = arith.constant 0 : index
    %423 = vector.load %arg22[%c0_191, %c0_192] : memref<2x128xf32, #tpu.memory_space<vmem>>, vector<2x128xf32>
    %424 = arith.mulf %423, %407 : vector<2x128xf32>
    %cst_193 = arith.constant dense<0.000000e+00> : vector<2xf32>
    %425 = vector.multi_reduction <add>, %424, %cst_193 [1] : vector<2x128xf32> to vector<2xf32>
    %426 = vector.shape_cast %425 : vector<2xf32> to vector<2x1xf32>
    %427 = arith.subf %422, %426 : vector<2x1xf32>
    %cst_194 = arith.constant dense<0.000000e+00> : vector<1xf32>
    %428 = vector.multi_reduction <add>, %427, %cst_194 [0] : vector<2x1xf32> to vector<1xf32>
    %429 = vector.shape_cast %428 : vector<1xf32> to vector<1x1xf32>
    %cst_195 = arith.constant 5.000000e-01 : f32
    %430 = vector.broadcast %cst_195 : f32 to vector<1x1xf32>
    %431 = arith.mulf %429, %430 : vector<1x1xf32>
    %c0_196 = arith.constant 0 : index
    %c0_197 = arith.constant 0 : index
    %432 = vector.load %arg24[%c0_196, %c0_197] : memref<1x1xf32, #tpu.memory_space<vmem>>, vector<1x1xf32>
    tpu.vector_store %arg24[%c0_196, %c0_197], %431 {strides = array<i32>} : memref<1x1xf32, #tpu.memory_space<vmem>>, vector<1x1xf32>,
    return
  }
  func.func @transform_0(%arg0: i32) -> (i32, i32) {
    %c0_i32 = arith.constant 0 : i32
    %c0_i32_0 = arith.constant 0 : i32
    %c0_i32_1 = arith.constant 0 : i32
    return %c0_i32, %c0_i32_0 : i32, i32
  }
  func.func @transform_1(%arg0: i32) -> (i32, i32, i32) {
    %c0_i32 = arith.constant 0 : i32
    %c0_i32_0 = arith.constant 0 : i32
    %c0_i32_1 = arith.constant 0 : i32
    %c0_i32_2 = arith.constant 0 : i32
    return %c0_i32, %c0_i32_0, %c0_i32_1 : i32, i32, i32
  }
  func.func @transform_2(%arg0: i32) -> (i32, i32) {
    %c0_i32 = arith.constant 0 : i32
    %c0_i32_0 = arith.constant 0 : i32
    %c0_i32_1 = arith.constant 0 : i32
    return %c0_i32, %c0_i32_0 : i32, i32
  }
  func.func @transform_3(%arg0: i32) -> (i32, i32) {
    %c0_i32 = arith.constant 0 : i32
    %c0_i32_0 = arith.constant 0 : i32
    %c0_i32_1 = arith.constant 0 : i32
    return %c0_i32, %c0_i32_0 : i32, i32
  }
  func.func @transform_4(%arg0: i32) -> (i32, i32, i32) {
    %c0_i32 = arith.constant 0 : i32
    %c0_i32_0 = arith.constant 0 : i32
    %c0_i32_1 = arith.constant 0 : i32
    %c0_i32_2 = arith.constant 0 : i32
    return %c0_i32, %c0_i32_0, %c0_i32_1 : i32, i32, i32
  }
  func.func @transform_5(%arg0: i32) -> (i32, i32, i32) {
    %c0_i32 = arith.constant 0 : i32
    %c0_i32_0 = arith.constant 0 : i32
    %c0_i32_1 = arith.constant 0 : i32
    %c0_i32_2 = arith.constant 0 : i32
    return %c0_i32, %c0_i32_0, %c0_i32_1 : i32, i32, i32
  }
  func.func @transform_6(%arg0: i32) -> (i32, i32, i32) {
    %c0_i32 = arith.constant 0 : i32
    %c0_i32_0 = arith.constant 0 : i32
    %c0_i32_1 = arith.constant 0 : i32
    %c0_i32_2 = arith.constant 0 : i32
    return %c0_i32, %c0_i32_0, %c0_i32_1 : i32, i32, i32
  }
  func.func @transform_7(%arg0: i32) -> (i32, i32, i32) {
    %c0_i32 = arith.constant 0 : i32
    %c0_i32_0 = arith.constant 0 : i32
    %c0_i32_1 = arith.constant 0 : i32
    %c0_i32_2 = arith.constant 0 : i32
    return %c0_i32, %c0_i32_0, %c0_i32_1 : i32, i32, i32
  }
  func.func @transform_8(%arg0: i32) -> (i32, i32, i32) {
    %c0_i32 = arith.constant 0 : i32
    %c0_i32_0 = arith.constant 0 : i32
    %c0_i32_1 = arith.constant 0 : i32
    %c0_i32_2 = arith.constant 0 : i32
    return %c0_i32, %c0_i32_0, %c0_i32_1 : i32, i32, i32
  }
  func.func @transform_9(%arg0: i32) -> (i32, i32, i32) {
    %c0_i32 = arith.constant 0 : i32
    %c0_i32_0 = arith.constant 0 : i32
    %c0_i32_1 = arith.constant 0 : i32
    %c0_i32_2 = arith.constant 0 : i32
    return %c0_i32, %c0_i32_0, %c0_i32_1 : i32, i32, i32
  }
  func.func @transform_10(%arg0: i32) -> (i32, i32, i32) {
    %c0_i32 = arith.constant 0 : i32
    %c0_i32_0 = arith.constant 0 : i32
    %c0_i32_1 = arith.constant 0 : i32
    %c0_i32_2 = arith.constant 0 : i32
    return %c0_i32, %c0_i32_0, %c0_i32_1 : i32, i32, i32
  }
  func.func @transform_11(%arg0: i32) -> (i32, i32, i32) {
    %c0_i32 = arith.constant 0 : i32
    %c0_i32_0 = arith.constant 0 : i32
    %c0_i32_1 = arith.constant 0 : i32
    %c0_i32_2 = arith.constant 0 : i32
    return %c0_i32, %c0_i32_0, %c0_i32_1 : i32, i32, i32
  }
  func.func @transform_12(%arg0: i32) -> (i32, i32, i32) {
    %c0_i32 = arith.constant 0 : i32
    %c0_i32_0 = arith.constant 0 : i32
    %c0_i32_1 = arith.constant 0 : i32
    %c0_i32_2 = arith.constant 0 : i32
    return %c0_i32, %c0_i32_0, %c0_i32_1 : i32, i32, i32
  }
  func.func @transform_13(%arg0: i32) -> (i32, i32, i32) {
    %c0_i32 = arith.constant 0 : i32
    %c0_i32_0 = arith.constant 0 : i32
    %c0_i32_1 = arith.constant 0 : i32
    %c0_i32_2 = arith.constant 0 : i32
    return %c0_i32, %c0_i32_0, %c0_i32_1 : i32, i32, i32
  }
  func.func @transform_14(%arg0: i32) -> (i32, i32, i32) {
    %c0_i32 = arith.constant 0 : i32
    %c0_i32_0 = arith.constant 0 : i32
    %c0_i32_1 = arith.constant 0 : i32
    %c0_i32_2 = arith.constant 0 : i32
    return %c0_i32, %c0_i32_0, %c0_i32_1 : i32, i32, i32
  }
  func.func @transform_15(%arg0: i32) -> (i32, i32, i32) {
    %c0_i32 = arith.constant 0 : i32
    %c0_i32_0 = arith.constant 0 : i32
    %c0_i32_1 = arith.constant 0 : i32
    %c0_i32_2 = arith.constant 0 : i32
    return %c0_i32, %c0_i32_0, %c0_i32_1 : i32, i32, i32
  }
  func.func @transform_16(%arg0: i32) -> (i32, i32) {
    %c0_i32 = arith.constant 0 : i32
    %c0_i32_0 = arith.constant 0 : i32
    %c0_i32_1 = arith.constant 0 : i32
    return %c0_i32, %c0_i32_0 : i32, i32
  }
  func.func @transform_17(%arg0: i32) -> (i32, i32) {
    %c0_i32 = arith.constant 0 : i32
    %c0_i32_0 = arith.constant 0 : i32
    %c0_i32_1 = arith.constant 0 : i32
    return %c0_i32, %c0_i32_0 : i32, i32
  }
  func.func @transform_18(%arg0: i32) -> (i32, i32) {
    %c0_i32 = arith.constant 0 : i32
    %c0_i32_0 = arith.constant 0 : i32
    %c0_i32_1 = arith.constant 0 : i32
    return %c0_i32, %c0_i32_0 : i32, i32
  }
  func.func @transform_19(%arg0: i32) -> (i32, i32) {
    %c0_i32 = arith.constant 0 : i32
    %c0_i32_0 = arith.constant 0 : i32
    %c0_i32_1 = arith.constant 0 : i32
    return %c0_i32, %c0_i32_0 : i32, i32
  }
  func.func @transform_20(%arg0: i32) -> (i32, i32) {
    %c0_i32 = arith.constant 0 : i32
    %c0_i32_0 = arith.constant 0 : i32
    %c0_i32_1 = arith.constant 0 : i32
    return %c0_i32, %c0_i32_0 : i32, i32
  }
  func.func @transform_21(%arg0: i32) -> (i32, i32) {
    %c0_i32 = arith.constant 0 : i32
    %c0_i32_0 = arith.constant 0 : i32
    %c0_i32_1 = arith.constant 0 : i32
    return %c0_i32, %c0_i32_0 : i32, i32
  }
  func.func @transform_22(%arg0: i32) -> (i32, i32) {
    %c0_i32 = arith.constant 0 : i32
    %c0_i32_0 = arith.constant 0 : i32
    %c0_i32_1 = arith.constant 0 : i32
    return %c0_i32, %c0_i32_0 : i32, i32
  }
  func.func @transform_23(%arg0: i32) -> (i32, i32) {
    %c0_i32 = arith.constant 0 : i32
    %c0_i32_0 = arith.constant 0 : i32
    %c0_i32_1 = arith.constant 0 : i32
    return %c0_i32, %c0_i32_0 : i32, i32
  }
}

</mosaic_0001>

<bundles_post_ra>
// kernel: tpu_custom_call.1
= control target key start
LH: loop header
LB: loop body
LE: loop exit
PB: predicated region body
PF: predicated region fallthrough
CT: control target
= control target key end

     0   :  { %s6595_s0 = inlined_call_operand.hbm [shape: f32[16,128], index: 0, kind: input, shape index: {}]   ;;  %s6596_s1 = inlined_call_operand.hbm [shape: f32[2,1,8], index: 1, kind: input, shape index: {}]   ;;  %s6597_s2 = inlined_call_operand.hbm [shape: f32[1,128], index: 2, kind: input, shape index: {}]   ;;  %s6598_s3 = inlined_call_operand.hbm [shape: f32[1,128], index: 3, kind: input, shape index: {}]   ;;  %s6599_s4 = inlined_call_operand.hbm [shape: bf16[2,128,384], index: 4, kind: input, shape index: {}]   ;;  %s6600_s5 = inlined_call_operand.hbm [shape: f32[2,1,384], index: 5, kind: input, shape index: {}]   ;;  %s6601_s6 = inlined_call_operand.hbm [shape: bf16[2,128,128], index: 6, kind: input, shape index: {}]   ;;  %s6602_s7 = inlined_call_operand.vmem [shape: f32[2,1,128], index: 7, kind: input, shape index: {}]   ;;  %s6603_s8 = inlined_call_operand.hbm [shape: f32[2,1,128], index: 8, kind: input, shape index: {}]   ;;  %s6604_s9 = inlined_call_operand.hbm [shape: f32[2,1,128], index: 9, kind: input, shape index: {}]   ;;  %s6605_s10 = inlined_call_operand.hbm [shape: bf16[2,128,512], index: 10, kind: input, shape index: {}]   ;;  %s6606_s11 = inlined_call_operand.vmem [shape: f32[2,1,512], index: 11, kind: input, shape index: {}]   ;;  %s6607_s12 = inlined_call_operand.hbm [shape: bf16[2,512,128], index: 12, kind: input, shape index: {}]   ;;  %s6608_s13 = inlined_call_operand.vmem [shape: f32[2,1,128], index: 13, kind: input, shape index: {}]   ;;  %s6609_s14 = inlined_call_operand.hbm [shape: f32[2,1,128], index: 14, kind: input, shape index: {}]   ;;  %s6610_s15 = inlined_call_operand.vmem [shape: f32[2,1,128], index: 15, kind: input, shape index: {}]   ;;  %s6611_s16 = inlined_call_operand.hbm [shape: bf16[128,128], index: 16, kind: input, shape index: {}]   ;;  %s6612_s17 = inlined_call_operand.hbm [shape: f32[1,128], index: 17, kind: input, shape index: {}]   ;;  %s6613_s18 = inlined_call_operand.hbm [shape: bf16[128,128], index: 18, kind: input, shape index: {}]   ;;  %s6614_s19 = inlined_call_operand.hbm [shape: f32[1,128], index: 19, kind: input, shape index: {}]   ;;  %s6615_s20 = inlined_call_operand.vmem [shape: f32[2,128], index: 20, kind: input, shape index: {}]   ;;  %s6616_s21 = inlined_call_operand.vmem [shape: f32[2,128], index: 21, kind: input, shape index: {}]   ;;  %s6617_s22 = inlined_call_operand.hbm [shape: f32[2,128], index: 22, kind: output, shape index: {0}]   ;;  %s6618_s23 = inlined_call_operand.hbm [shape: f32[1,1], index: 23, kind: output, shape index: {1}]  }
   0x1   :  { %6622 = sst [smem:[#allocation43_spill]] %s6595_s0 }
   0x2   :  { %6623 = sst [smem:[#allocation44_spill]] %s6596_s1 }
   0x3   :  { %6624 = sst [smem:[#allocation45_spill]] %s6597_s2 }
   0x4   :  { %6625 = sst [smem:[#allocation46_spill]] %s6598_s3 }
   0x5   :  { %6626 = sst [smem:[#allocation47_spill]] %s6599_s4 }
   0x6   :  { %6627 = sst [smem:[#allocation48_spill]] %s6600_s5 }
   0x7   :  { %6628 = sst [smem:[#allocation49_spill]] %s6601_s6 }
   0x8   :  { %6629 = sst [smem:[#allocation50_spill]] %s6602_s7 }
   0x9   :  { %6630 = sst [smem:[#allocation51_spill]] %s6616_s21 }
   0xa   :  { %6631 = sst [smem:[#allocation52_spill]] %s6617_s22 }
   0xb   :  { %6632 = sst [smem:[#allocation53_spill]] %s6618_s23 }
   0xc   :  { %29 = vsyncpa [#allocation4], 0 }
   0xd   :  { %30 = vsyncpa [#allocation7], 0 }
   0xe   :  { %31 = vsyncpa [#allocation10], 0 }
   0xf   :  { %32 = vsyncpa [#allocation13], 0 }
  0x10   :  { %33 = vsyncpa [#allocation16], 0 }
  0x11   :  { %34 = vsyncpa [#allocation19], 0 }
  0x12   :  { %35 = vsyncpa [#allocation22], 0 }
  0x13   :  { %36 = vsyncpa [#allocation25], 0 }
  0x14   :  { %37 = vsyncpa [#allocation28], 0 }
  0x15   :  { %38 = vsyncpa [#allocation5], 0  ;;  %s6633_s24 = sld [smem:[#allocation44_spill]] }
  0x1b   :  { %s57_s25 = sshll.u32 %s6633_s24, 4  ;;  %s58_s25 = int_to_ptr.hbm [resolvable:$true] %s57_s25 }
  0x1c   :  { %39 = vsyncpa [#allocation31], 0  ;;  %s5565_s5 = smov [#allocation6]   ;;  %s6634_s6 = sld [smem:[#allocation46_spill]] }
  0x1d   :  { %s59_s1 = sshll.u32 %s5565_s5, 4  ;;  %s6620_s7 = smov 16   ;;  %s60_s1 = int_to_ptr.vmem [resolvable:$true] %s59_s1 }
  0x1e   :  { %s5567_s28 = smov 1   ;;  %s5568_s29 = smov [#allocation9]  }
  0x1f   :  { %65 = dma.hbm_to_vmem [thread:$0]  %s58_s25, 32, %s60_s1, [#allocation7], %s6620_s7, %s6620_s7, %s5567_s28  }
  0x20   :  { %s84_s3 = sshll.u32 %s5568_s29, 4  ;;  %s6635_s30 = sld [smem:[#allocation48_spill]]  ;;  %s85_s3 = int_to_ptr.vmem [resolvable:$true] %s84_s3 }
  0x21   :  { %s5569_s5 = smov [#allocation12]   ;;  %s5570_s22 = smov 48  }
  0x22   :  { %s82_s27 = sshll.u32 %s6634_s6, 4  ;;  %s107_s23 = sshll.u32 %s5569_s5, 4  ;;  %s83_s27 = int_to_ptr.hbm [resolvable:$true] %s82_s27  ;;  %s108_s23 = int_to_ptr.vmem [resolvable:$true] %s107_s23 }
  0x23   :  { %87 = dma.hbm_to_vmem [thread:$0]  %s83_s27, 16, %s85_s3, [#allocation10]  }
  0x24   :  { %s133_s6 = sshll.u32 %s6603_s8, 4  ;;  %s5571_s21 = smov 3   ;;  %s134_s6 = int_to_ptr.hbm [resolvable:$true] %s133_s6 }
  0x25   :  { %s5572_s25 = smov [#allocation15]   ;;  %s159_s0 = sshll.u32 %s6605_s10, 4  ;;  %s160_s0 = int_to_ptr.hbm [resolvable:$true] %s159_s0 }
  0x26   :  { %s105_s24 = sshll.u32 %s6635_s30, 4  ;;  %s135_s1 = sshll.u32 %s5572_s25, 4  ;;  %s106_s24 = int_to_ptr.hbm [resolvable:$true] %s105_s24  ;;  %s136_s1 = int_to_ptr.vmem [resolvable:$true] %s135_s1 }
  0x27   :  { %113 = dma.hbm_to_vmem [thread:$0]  %s106_s24, 96, %s108_s23, [#allocation13], %s5570_s22, %s5570_s22, %s5571_s21  }
  0x28   :  { %s6636_s27 = smov 16   ;;  %s5573_s3 = smov [#allocation18]  }
  0x29   :  { %141 = dma.hbm_to_vmem [thread:$0]  %s134_s6, 32, %s136_s1, [#allocation16], %s6636_s27, %s6636_s27, %s5567_s28  }
  0x2a   :  { %s161_s4 = sshll.u32 %s5573_s3, 4  ;;  %s189_s5 = sshll.u32 %s6609_s14, 4  ;;  %s162_s4 = int_to_ptr.vmem [resolvable:$true] %s161_s4  ;;  %s190_s5 = int_to_ptr.hbm [resolvable:$true] %s189_s5 }
  0x2b   :  { %s5574_s21 = smov 256   ;;  %s218_s10 = sshll.u32 %s6612_s17, 4  ;;  %s219_s10 = int_to_ptr.hbm [resolvable:$true] %s218_s10 }
  0x2c   :  { %167 = dma.hbm_to_vmem [thread:$0]  %s160_s0, 8192, %s162_s4, [#allocation19], %s5574_s21, %s5574_s21, %s6636_s27  }
  0x2d   :  { %s5575_s7 = smov [#allocation21]   ;;  %s5576_s26 = smov [#allocation24]  }
  0x2e   :  { %s191_s24 = sshll.u32 %s5575_s7, 4  ;;  %s220_s2 = sshll.u32 %s5576_s26, 4  ;;  %s192_s24 = int_to_ptr.vmem [resolvable:$true] %s191_s24  ;;  %s221_s2 = int_to_ptr.vmem [resolvable:$true] %s220_s2 }
  0x2f   :  { %197 = dma.hbm_to_vmem [thread:$0]  %s190_s5, 32, %s192_s24, [#allocation22], %s6636_s27, %s6636_s27, %s5567_s28  }
  0x30   :  { %s6637_s25 = sld [smem:[#allocation43_spill]]  ;;  %s5577_s29 = smov [#allocation3]  }
  0x31   :  { %223 = dma.hbm_to_vmem [thread:$0]  %s219_s10, 16, %s221_s2, [#allocation25]  }
  0x32   :  { %s46_s0 = sshll.u32 %s5577_s29, 4  ;;  %s6638_s4 = sld [smem:[#allocation45_spill]]  ;;  %s47_s0 = int_to_ptr.vmem [resolvable:$true] %s46_s0 }
  0x33   :  { %s5578_s8 = smov 128   ;;  %s5579_s21 = smov 8  }
  0x34   :  { %s5580_s5 = smov [#allocation8]   ;;  %s6639_s24 = sld [smem:[#allocation47_spill]] }
  0x35   :  { %s73_s22 = sshll.u32 %s5580_s5, 4  ;;  %s5581_s10 = smov [#allocation11]   ;;  %s74_s22 = int_to_ptr.vmem [resolvable:$true] %s73_s22 }
  0x36   :  { %s44_s1 = sshll.u32 %s6637_s25, 4  ;;  %s94_s2 = sshll.u32 %s5581_s10, 4  ;;  %s45_s1 = int_to_ptr.hbm [resolvable:$true] %s44_s1  ;;  %s95_s2 = int_to_ptr.vmem [resolvable:$true] %s94_s2 }
  0x37   :  { %52 = dma.hbm_to_vmem [thread:$0]  %s45_s1, 256, %s47_s0, [#allocation4], %s5578_s8, %s5578_s8, %s5579_s21  }
  0x38   :  { %s71_s30 = sshll.u32 %s6638_s4, 4  ;;  %s6640_s25 = sld [smem:[#allocation49_spill]]  ;;  %s72_s30 = int_to_ptr.hbm [resolvable:$true] %s71_s30 }
  0x39   :  { %76 = dma.hbm_to_vmem [thread:$0]  %s72_s30, 16, %s74_s22, [#allocation7]  }
  0x3a   :  { %s92_s26 = sshll.u32 %s6639_s24, 4  ;;  %s5582_s17 = smov 192   ;;  %s93_s26 = int_to_ptr.hbm [resolvable:$true] %s92_s26 }
  0x3b   :  { %s5583_s3 = smov 12   ;;  %s5584_s1 = smov [#allocation14]  }
  0x3c   :  { %100 = dma.hbm_to_vmem [thread:$0]  %s93_s26, 6144, %s95_s2, [#allocation10], %s5582_s17, %s5582_s17, %s5583_s3  }
  0x3d   :  { %s120_s0 = sshll.u32 %s5584_s1, 4  ;;  %s5585_s4 = smov 64   ;;  %s121_s0 = int_to_ptr.vmem [resolvable:$true] %s120_s0 }
  0x3e   :  { %s118_s29 = sshll.u32 %s6640_s25, 4  ;;  %s5586_s8 = smov 4   ;;  %s119_s29 = int_to_ptr.hbm [resolvable:$true] %s118_s29 }
  0x3f   :  { %126 = dma.hbm_to_vmem [thread:$0]  %s119_s29, 2048, %s121_s0, [#allocation13], %s5585_s4, %s5585_s4, %s5586_s8  }
  0x40   :  { %s146_s5 = sshll.u32 %s6604_s9, 4  ;;  %s5587_s22 = smov [#allocation17]   ;;  %s147_s5 = int_to_ptr.hbm [resolvable:$true] %s146_s5 }
  0x41   :  { %s148_s23 = sshll.u32 %s5587_s22, 4  ;;  %s174_s26 = sshll.u32 %s6607_s12, 4  ;;  %s149_s23 = int_to_ptr.vmem [resolvable:$true] %s148_s23  ;;  %s175_s26 = int_to_ptr.hbm [resolvable:$true] %s174_s26 }
  0x42   :  { %154 = dma.hbm_to_vmem [thread:$0]  %s147_s5, 32, %s149_s23, [#allocation16], %s6636_s27, %s6636_s27, %s5567_s28  }
  0x43   :  { %s5588_s10 = smov [#allocation20]   ;;  %s204_s25 = sshll.u32 %s6611_s16, 4  ;;  %s205_s25 = int_to_ptr.hbm [resolvable:$true] %s204_s25 }
  0x44   :  { %s176_s2 = sshll.u32 %s5588_s10, 4  ;;  %s228_s12 = sshll.u32 %s6613_s18, 4  ;;  %s177_s2 = int_to_ptr.vmem [resolvable:$true] %s176_s2  ;;  %s229_s12 = int_to_ptr.hbm [resolvable:$true] %s228_s12 }
  0x45   :  { %182 = dma.hbm_to_vmem [thread:$0]  %s175_s26, 8192, %s177_s2, [#allocation19], %s5585_s4, %s5585_s4, %s5586_s8  }
  0x46   :  { %s5589_s17 = smov [#allocation23]   ;;  %s5590_s28 = smov [#allocation26]  }
  0x47   :  { %s206_s3 = sshll.u32 %s5589_s17, 4  ;;  %s230_s16 = sshll.u32 %s5590_s28, 4  ;;  %s207_s3 = int_to_ptr.vmem [resolvable:$true] %s206_s3  ;;  %s231_s16 = int_to_ptr.vmem [resolvable:$true] %s230_s16 }
  0x48   :  { %212 = dma.hbm_to_vmem [thread:$0]  %s205_s25, 1024, %s207_s3, [#allocation22], %s5585_s4, %s5585_s4, %s5586_s8  }
  0x49   :  { %s242_s0 = sshll.u32 %s6614_s19, 4  ;;  %s5591_s18 = smov [#allocation27]   ;;  %s243_s0 = int_to_ptr.hbm [resolvable:$true] %s242_s0 }
  0x4a   :  { %236 = dma.hbm_to_vmem [thread:$0]  %s229_s12, 1024, %s231_s16, [#allocation25], %s5585_s4, %s5585_s4, %s5586_s8  }
  0x4b   :  { %s244_s30 = sshll.u32 %s5591_s18, 4  ;;  %s245_s30 = int_to_ptr.vmem [resolvable:$true] %s244_s30 }
  0x4c   :  { %247 = dma.hbm_to_vmem [thread:$0]  %s243_s0, 16, %s245_s30, [#allocation28]  }
  0x4d   :  { %5543 = dma.done.wait [#allocation4], 256  }
  0x4e   :  { %5544 = vsyncadd [#allocation4], 4294967040 }
  0x4f   :  { %5545 = dma.done.wait [#allocation7], 48  }
  0x50   :  { %5546 = vsyncadd [#allocation7], 4294967248 }
  0x51   :  { %5547 = dma.done.wait [#allocation10], 6160  }
  0x52   :  { %5548 = vsyncadd [#allocation10], 4294961136 }
  0x53   :  { %5549 = dma.done.wait [#allocation13], 2144  }
  0x54   :  { %5550 = vsyncadd [#allocation13], 4294965152 }
  0x55   :  { %5551 = dma.done.wait [#allocation16], 64  }
  0x56   :  { %5552 = vsyncadd [#allocation16], 4294967232 }
  0x57   :  { %5553 = dma.done.wait [#allocation19], 16384  }
  0x58   :  { %5554 = vsyncadd [#allocation19], 4294950912 }
  0x59   :  { %5555 = dma.done.wait [#allocation22], 1056  }
  0x5a   :  { %5556 = vsyncadd [#allocation22], 4294966240 }
  0x5b   :  { %5557 = dma.done.wait [#allocation25], 1040  }
  0x5c   :  { %5558 = vsyncadd [#allocation25], 4294966256 }
  0x5d   :  { %5559 = dma.done.wait [#allocation28], 16  }
  0x5e   :  { %5560 = vsyncadd [#allocation28], 4294967280  ;;  %v317_v0 = vld [vmem:[#allocation3] sm:$0xff]  ;;  %v318_v1 = vld [vmem:[#allocation3 + $0x8] sm:$0xff]  ;;  %v5592_v2 = vmov 128.0   ;;  %vm597_vm7 = vcmask 523264  }
  0x5f   :  { %321 = vadd.xlane.f32.xlu0 %v317_v0  ;;  %4985 = vrcp.f32 %v5592_v2  ;;  %v3962_v17 = vld [vmem:[#allocation11 + $0xa8] sm:$0xf]  ;;  %v4750_v18 = vld [vmem:[#allocation11 + $0xb0] sm:$0xf0]  ;;  %v4749_v19 = vld [vmem:[#allocation11 + $0xac] sm:$0xf] }
  0x60   :  { %v3963_v20 = vor.u32 %v4750_v18, %v3962_v17  ;;  %v3964_v21 = vld [vmem:[#allocation11 + $0xb4] sm:$0xf0]  ;;  %v3970_v22 = vld [vmem:[#allocation11 + $0xb0] sm:$0xf]  ;;  %v4751_v23 = vld [vmem:[#allocation11 + $0xb8] sm:$0xf0] }
  0x61   :  { %v3967_v24 = vor.u32 %v4749_v19, %v3964_v21  ;;  %v3971_v25 = vor.u32 %v4751_v23, %v3970_v22  ;;  %v3950_v26 = vld [vmem:[#allocation11 + $0x90] sm:$0xf]  ;;  %v4747_v27 = vld [vmem:[#allocation11 + $0x98] sm:$0xf0]  ;;  %v4746_v28 = vld [vmem:[#allocation11 + $0x94] sm:$0xf] }
  0x62   :  { %549 = vmatpush.bf16.msra.mxu0 %v3963_v20  ;;  %v3951_v29 = vor.u32 %v4747_v27, %v3950_v26  ;;  %v3952_v30 = vld [vmem:[#allocation11 + $0x9c] sm:$0xf0]  ;;  %v3958_v31 = vld [vmem:[#allocation11 + $0x98] sm:$0xf]  ;;  %v4748_v32 = vld [vmem:[#allocation11 + $0xa0] sm:$0xf0] }
  0x63   :  { %563 = vmatpush.bf16.msra.mxu1 %v3967_v24  ;;  %577 = vmatpush.bf16.msra.mxu2 %v3971_v25  ;;  %v3955_v33 = vor.u32 %v4746_v28, %v3952_v30  ;;  %v3959_v34 = vor.u32 %v4748_v32, %v3958_v31  ;;  %v3938_v35 = vld [vmem:[#allocation11 + $0x78] sm:$0xf]  ;;  %v4744_v36 = vld [vmem:[#allocation11 + $0x80] sm:$0xf0]  ;;  %v4743_v37 = vld [vmem:[#allocation11 + $0x7c] sm:$0xf] }
  0x64   :  { %v3939_v38 = vor.u32 %v4744_v36, %v3938_v35  ;;  %v3940_v39 = vld [vmem:[#allocation11 + $0x84] sm:$0xf0]  ;;  %v3946_v40 = vld [vmem:[#allocation11 + $0x80] sm:$0xf]  ;;  %v4745_v41 = vld [vmem:[#allocation11 + $0x88] sm:$0xf0] }
  0x65   :  { %v4986_v3 = vpop.eup %4985  ;;  %v3943_v42 = vor.u32 %v4743_v37, %v3940_v39  ;;  %v3947_v43 = vor.u32 %v4745_v41, %v3946_v40  ;;  %v3926_v44 = vld [vmem:[#allocation11 + $0x60] sm:$0xf]  ;;  %v4741_v45 = vld [vmem:[#allocation11 + $0x68] sm:$0xf0]  ;;  %v4740_v46 = vld [vmem:[#allocation11 + $0x64] sm:$0xf] }
  0x66   :  { %v326_v4 = vmul.f32 128.0, %v4986_v3  ;;  %vm330_vm0 = vweird.f32 %v4986_v3  ;;  %550 = vmatpush.bf16.msra.mxu0 %v3951_v29  ;;  %v3927_v47 = vor.u32 %v4741_v45, %v3926_v44  ;;  %v3928_v48 = vld [vmem:[#allocation11 + $0x6c] sm:$0xf0]  ;;  %v3934_v49 = vld [vmem:[#allocation11 + $0x68] sm:$0xf]  ;;  %vm700_vm8 = vcmask 1043456  }
  0x67   :  { %323 = vadd.xlane.f32.xlu0 %v318_v1  ;;  %564 = vmatpush.bf16.msra.mxu1 %v3955_v33  ;;  %v4742_v50 = vld [vmem:[#allocation11 + $0x70] sm:$0xf0]  ;;  %v3931_v51 = vor.u32 %v4740_v46, %v3928_v48  ;;  %v3914_v53 = vld [vmem:[#allocation11 + $0x48] sm:$0xf]  ;;  %v4737_v55 = vld [vmem:[#allocation11 + $0x4c] sm:$0xf] }
  0x68   :  { %v327_v5 = vsub.f32 1.0, %v326_v4  ;;  %578 = vmatpush.bf16.msra.mxu2 %v3959_v34  ;;  %v3935_v52 = vor.u32 %v4742_v50, %v3934_v49  ;;  %v4738_v54 = vld [vmem:[#allocation11 + $0x50] sm:$0xf0]  ;;  %v3916_v57 = vld [vmem:[#allocation11 + $0x54] sm:$0xf0]  ;;  %vm646_vm9 = vcmask 64512  }
  0x69   :  { %v3915_v56 = vor.u32 %v4738_v54, %v3914_v53  ;;  %v3922_v58 = vld [vmem:[#allocation11 + $0x50] sm:$0xf]  ;;  %v4739_v59 = vld [vmem:[#allocation11 + $0x58] sm:$0xf0]  ;;  %v3919_v60 = vor.u32 %v4737_v55, %v3916_v57  ;;  %v3904_v2 = vld [vmem:[#allocation11 + $0x3c] sm:$0xf0] }
  0x6a   :  { %v328_v6 = vmul.f32 %v4986_v3, %v327_v5  ;;  %551 = vmatpush.bf16.msra.mxu0 %v3939_v38  ;;  %v3923_v61 = vor.u32 %v4739_v59, %v3922_v58  ;;  %v3902_v62 = vld [vmem:[#allocation11 + $0x30] sm:$0xf]  ;;  %v4735_v63 = vld [vmem:[#allocation11 + $0x38] sm:$0xf0]  ;;  %v4736_v4 = vld [vmem:[#allocation11 + $0x40] sm:$0xf0] }
  0x6b   :  { %565 = vmatpush.bf16.msra.mxu1 %v3943_v42  ;;  %v3878_v19 = vld [vmem:[#allocation11] sm:$0xf]  ;;  %v4729_v20 = vld [vmem:[#allocation11 + $0x8] sm:$0xf0]  ;;  %v4728_v21 = vld [vmem:[#allocation11 + $0x4] sm:$0xf] }
  0x6c   :  { %v329_v7 = vadd.f32 %v4986_v3, %v328_v6  ;;  %579 = vmatpush.bf16.msra.mxu2 %v3947_v43  ;;  %v3879_v23 = vor.u32 %v4729_v20, %v3878_v19  ;;  %v3880_v24 = vld [vmem:[#allocation11 + $0xc] sm:$0xf0]  ;;  %v3886_v25 = vld [vmem:[#allocation11 + $0x8] sm:$0xf]  ;;  %v4730_v26 = vld [vmem:[#allocation11 + $0x10] sm:$0xf0] }
  0x6d   :  { %v3883_v28 = vor.u32 %v4728_v21, %v3880_v24  ;;  %v3887_v29 = vor.u32 %v4730_v26, %v3886_v25  ;;  %s6641_s21 = sld [smem:[#allocation50_spill]]  ;;  %s5594_s27 = smov [#allocation29]  }
  0x6e   :  { %v5789_v8 = vsel %vm330_vm0, %v4986_v3, %v329_v7  ;;  %552 = vmatpush.bf16.msra.mxu0 %v3927_v47  ;;  %v3910_v3 = vld [vmem:[#allocation11 + $0x38] sm:$0xf]  ;;  %v4967_v47 = vld [vmem:[#allocation8] ss:$0 sm:$0xff]  ;;  %s6650_s17 = sld [smem:[#allocation51_spill]]  ;;  %s3840_s1 = sshll.u32 %s5594_s27, 4  ;;  %s3841_s1 = int_to_ptr.vmem [resolvable:$true] %s3840_s1 }
  0x6f   :  { %566 = vmatpush.bf16.msra.mxu1 %v3931_v51  ;;  %v3911_v6 = vor.u32 %v4736_v4, %v3910_v3  ;;  %v3890_v7 = vld [vmem:[#allocation11 + $0x18] sm:$0xf]  ;;  %s6651_s28 = sld [smem:[#allocation52_spill]]  ;;  %s5595_s0 = smov [#allocation30]  }
  0x70   :  { %580 = vmatpush.bf16.msra.mxu2 %v3935_v52  ;;  %v4968_v52 = vld [vmem:[#allocation9] ss:$0 sm:$0xff]  ;;  %s3851_s18 = sshll.u32 %s5595_s0, 4  ;;  %s6652_s8 = sld [smem:[#allocation53_spill]]  ;;  %s3852_s18 = int_to_ptr.vmem [resolvable:$true] %s3851_s18 }
  0x72   :  { %553 = vmatpush.bf16.msra.mxu0 %v3915_v56 }
  0x73   :  { %567 = vmatpush.bf16.msra.mxu1 %v3919_v60 }
  0x74   :  { %581 = vmatpush.bf16.msra.mxu2 %v3923_v61 }
  0x75   :  { %s3842_s16 = sshll.u32 %s6651_s28, 4  ;;  %s3843_s16 = int_to_ptr.hbm [resolvable:$true] %s3842_s16 }
  0x78   :  { %582 = vmatpush.bf16.msra.mxu2 %v3911_v6 }
  0xd2   :  { %v322_v9 = vpop.xlane.xlu0 %321 }
  0xd3   :  { %v332_v10 = vmul.f32 %v5789_v8, %v322_v9  ;;  %v4732_v9 = vld [vmem:[#allocation11 + $0x20] sm:$0xf0] }
  0xd5   :  { %v5792_v11 = vsub.f32 %v317_v0, %v332_v10  ;;  %v4734_v0 = vld [vmem:[#allocation11 + $0x34] sm:$0xf]  ;;  %v4731_v10 = vld [vmem:[#allocation11 + $0x1c] sm:$0xf] }
  0xd6   :  { %v3907_v5 = vor.u32 %v4734_v0, %v3904_v2 }
  0xd7   :  { %v336_v12 = vmul.f32 %v5792_v11, %v5792_v11 }
  0xd8   :  { %568 = vmatpush.bf16.msra.mxu1 %v3907_v5 }
  0xd9   :  { %338 = vadd.xlane.f32.xlu1 %v336_v12  ;;  %v3891_v12 = vor.u32 %v4732_v9, %v3890_v7 }
  0xda   :  { %v324_v13 = vpop.xlane.xlu0 %323 }
  0xdb   :  { %v333_v14 = vmul.f32 %v5789_v8, %v324_v13  ;;  %v3892_v13 = vld [vmem:[#allocation11 + $0x24] sm:$0xf0] }
  0xdc   :  { %v3895_v17 = vor.u32 %v4731_v10, %v3892_v13 }
  0xdd   :  { %v5797_v15 = vsub.f32 %v318_v1, %v333_v14  ;;  %v3903_v1 = vor.u32 %v4735_v63, %v3902_v62  ;;  %v3898_v14 = vld [vmem:[#allocation11 + $0x20] sm:$0xf] }
  0xde   :  { %569 = vmatpush.bf16.msra.mxu1 %v3895_v17 }
  0xdf   :  { %v337_v16 = vmul.f32 %v5797_v15, %v5797_v15  ;;  %554 = vmatpush.bf16.msra.mxu0 %v3903_v1 }
  0xe1   :  { %340 = vadd.xlane.f32.xlu1 %v337_v16  ;;  %v4733_v16 = vld [vmem:[#allocation11 + $0x28] sm:$0xf0] }
  0xe2   :  { %v3899_v18 = vor.u32 %v4733_v16, %v3898_v14  ;;  %570 = vmatpush.bf16.msra.mxu1 %v3883_v28 }
  0xe3   :  { %555 = vmatpush.bf16.msra.mxu0 %v3891_v12 }
  0xe4   :  { %583 = vmatpush.bf16.msra.mxu2 %v3899_v18 }
  0xe7   :  { %556 = vmatpush.bf16.msra.mxu0 %v3879_v23 }
  0xe8   :  { %584 = vmatpush.bf16.msra.mxu2 %v3887_v29 }
 0x14c   :  { %v339_v22 = vpop.xlane.xlu1 %338 }
 0x14d   :  { %v342_v27 = vmul.f32 %v339_v22, %v5789_v8 }
 0x14f   :  { %v344_v30 = vadd.f32 1e-12, %v342_v27 }
 0x151   :  { %4987 = vrsqrt.f32 %v344_v30  ;;  %vm352_vm2 = vweird.f32 %v344_v30 }
 0x154   :  { %v341_v31 = vpop.xlane.xlu1 %340 }
 0x155   :  { %v343_v32 = vmul.f32 %v341_v31, %v5789_v8 }
 0x157   :  { %v4988_v33 = vpop.eup %4987  ;;  %v345_v34 = vadd.f32 1e-12, %v343_v32 }
 0x158   :  { %v347_v35 = vmul.f32 %v4988_v33, %v344_v30  ;;  %vm353_vm1 = vweird.f32 %v4988_v33 }
 0x159   :  { %4989 = vrsqrt.f32 %v345_v34  ;;  %vm354_vm3 = vmor %vm352_vm2, %vm353_vm1  ;;  %vm362_vm5 = vweird.f32 %v345_v34 }
 0x15a   :  { %v348_v36 = vmul.f32 %v4988_v33, %v347_v35 }
 0x15c   :  { %v349_v37 = vmul.f32 0.5, %v348_v36 }
 0x15e   :  { %v350_v38 = vsub.f32 1.5, %v349_v37 }
 0x15f   :  { %v4990_v39 = vpop.eup %4989 }
 0x160   :  { %v351_v40 = vmul.f32 %v4988_v33, %v350_v38  ;;  %v357_v41 = vmul.f32 %v4990_v39, %v345_v34  ;;  %vm363_vm4 = vweird.f32 %v4990_v39  ;;  %v4969_v34 = vld [vmem:[#allocation6] ss:$0 sm:$0xff] }
 0x161   :  { %vm364_vm6 = vmor %vm362_vm5, %vm363_vm4 }
 0x162   :  { %v358_v42 = vmul.f32 %v4990_v39, %v357_v41  ;;  %v355_v43 = vsel %vm354_vm3, %v4988_v33, %v351_v40  ;;  %v4970_v40 = vld [vmem:[#allocation6 + $0x1] ss:$0 sm:$0xff] }
 0x163   :  { %v366_v46 = vmul.f32 %v355_v43, %v5792_v11  ;;  %v413_v11 = vld [vmem:[#allocation12] sm:$0x7] }
 0x164   :  { %v359_v44 = vmul.f32 0.5, %v358_v42  ;;  %v415_v57 = vperm.slane %v413_v11, 0  ;;  %v416_v58 = vperm.slane %v413_v11, 1  ;;  %v417_v0 = vperm.slane %v413_v11, 2 }
 0x165   :  { %v371_v51 = vmul.f32 %v4967_v47, %v366_v46 }
 0x166   :  { %v360_v45 = vsub.f32 1.5, %v359_v44 }
 0x167   :  { %v5805_v54 = vadd.f32 %v4968_v52, %v371_v51 }
 0x168   :  { %v361_v48 = vmul.f32 %v4990_v39, %v360_v45 }
 0x16a   :  { %v365_v49 = vsel %vm364_vm6, %v4990_v39, %v361_v48 }
 0x16b   :  { %v367_v50 = vmul.f32 %v365_v49, %v5797_v15 }
 0x16d   :  { %v372_v53 = vmul.f32 %v4967_v47, %v367_v50 }
 0x16f   :  { %v5807_v55 = vadd.f32 %v4968_v52, %v372_v53 }
 0x171   :  { %v380_v56 = vpack.c.bf16 %v5807_v55, %v5805_v54 }
 0x173   :  { %557 = vmatmul.bf16.vlgmr.msra.gmra.mxu0 %v380_v56  ;;  %571 = vmatmul.bf16.vlgmr.msra.gmra.mxu1 %v380_v56 }
 0x174   :  { %585 = vmatmul.bf16.vlgmr.msra.gmra.mxu2 %v380_v56 }
 0x1f0   :  { %v558_v59 = vpop.f32.mrf.mxu0  ;;  %v572_v60 = vpop.f32.mrf.mxu1 }
 0x1f1   :  { %v559_v61 = vadd.f32 %v558_v59, %v415_v57  ;;  %v573_v15 = vadd.f32 %v572_v60, %v416_v58 }
 0x1f3   :  { %v591_v62 = vpack.c.bf16 %v559_v61, %v559_v61  ;;  %v593_v63 = vpack.c.bf16 %v573_v15, %v573_v15 }
 0x1f5   :  { %v602_v1 = vsel %vm597_vm7, %v593_v63, 0  ;;  %v744_v2 = vunpack.c.l.b16 %v593_v63  ;;  %v739_v3 = vunpack.c.l.b16 %v591_v62 }
 0x1f6   :  { %611 = vmatpush.bf16.xpose.msrb.mxu0 %v602_v1 }
 0x1f7   :  { %v586_v4 = vpop.f32.mrf.mxu2  ;;  %v745_v5 = vpack.c.b16 %v744_v2, %v744_v2  ;;  %v740_v6 = vpack.c.b16 %v739_v3, %v739_v3 }
 0x1f8   :  { %v587_v7 = vadd.f32 %v586_v4, %v417_v0  ;;  %v560_v9 = vpop.f32.mrf.mxu0  ;;  %v574_v10 = vpop.f32.mrf.mxu1 }
 0x1f9   :  { %v561_v12 = vadd.f32 %v560_v9, %v415_v57  ;;  %v575_v13 = vadd.f32 %v574_v10, %v416_v58  ;;  %746 = vrot.lane.b32.xlu2 %v745_v5, %s5585_s4  ;;  %741 = vrot.lane.b32.xlu0 %v740_v6, %s5585_s4 }
 0x1fa   :  { %v5814_v14 = vpack.c.bf16 %v587_v7, %v587_v7 }
 0x1fb   :  { %v592_v16 = vpack.c.bf16 %v561_v12, %v561_v12  ;;  %v594_v17 = vpack.c.bf16 %v575_v13, %v575_v13 }
 0x1fc   :  { %v702_v21 = vsel %vm700_vm8, %v5814_v14, 0 }
 0x1fd   :  { %3972 = vmatmul.msk.bf16.vlgmr.msrb.gmra.mxu0 %vm597_vm7, %v591_v62  ;;  %v621_v18 = vsel %vm597_vm7, %v594_v17, 0  ;;  %v773_v19 = vunpack.c.l.b16 %v594_v17  ;;  %v768_v20 = vunpack.c.l.b16 %v592_v16  ;;  %v851_v62 = vunpack.c.l.b16 %v5814_v14 }
 0x1fe   :  { %630 = vmatpush.bf16.xpose.msra.mxu3 %v621_v18 }
 0x1ff   :  { %v588_v22 = vpop.f32.mrf.mxu2  ;;  %v774_v23 = vpack.c.b16 %v773_v19, %v773_v19  ;;  %v769_v24 = vpack.c.b16 %v768_v20, %v768_v20  ;;  %v852_v1 = vpack.c.b16 %v851_v62, %v851_v62 }
 0x200   :  { %v589_v25 = vadd.f32 %v588_v22, %v417_v0 }
 0x201   :  { %775 = vrot.lane.b32.xlu2 %v774_v23, %s5585_s4  ;;  %770 = vrot.lane.b32.xlu1 %v769_v24, %s5585_s4 }
 0x202   :  { %v5822_v26 = vpack.c.bf16 %v589_v25, %v589_v25 }
 0x204   :  { %v721_v27 = vsel %vm700_vm8, %v5822_v26, 0  ;;  %v875_v20 = vunpack.c.l.b16 %v5822_v26 }
 0x205   :  { %730 = vmatpush.bf16.msra.mxu0 %v721_v27  ;;  %3973 = vmatmul.msk.bf16.vlgmr.msra.gmra.mxu3 %vm597_vm7, %v592_v16 }
 0x206   :  { %711 = vmatpush.bf16.msrb.mxu3 %v702_v21  ;;  %v876_v24 = vpack.c.b16 %v875_v20, %v875_v20 }
 0x253   :  { %v747_v28 = vpop.permute.xlu2 %746 }
 0x254   :  { %v752_v29 = vsel %vm597_vm7, %v747_v28, 0 }
 0x255   :  { %761 = vmatpush.bf16.xpose.msrb.mxu1 %v752_v29 }
 0x25b   :  { %v776_v30 = vpop.permute.xlu2 %775 }
 0x25c   :  { %v781_v31 = vsel %vm597_vm7, %v776_v30, 0 }
 0x25d   :  { %790 = vmatpush.bf16.xpose.msrb.mxu2 %v781_v31 }
 0x26b   :  { %v742_v32 = vpop.permute.xlu0 %741 }
 0x26c   :  { %3976 = vmatmul.msk.bf16.vlgmr.msrb.gmra.mxu1 %vm597_vm7, %v742_v32 }
 0x273   :  { %v771_v33 = vpop.permute.xlu1 %770 }
 0x274   :  { %3977 = vmatmul.msk.bf16.vlgmr.msrb.gmra.mxu2 %vm597_vm7, %v771_v33 }
 0x27a   :  { %v613_v35 = vpop.f32.mrf.mxu0 }
 0x27b   :  { %v636_v36 = vmul.f32 0.125, %v613_v35 }
 0x27d   :  { %v644_v37 = vadd.f32 %v4969_v34, %v636_v36 }
 0x27f   :  { %v647_v38 = vsel %vm646_vm9, %v644_v37, -inf }
 0x280   :  { %648 = vmax.xlane.f32.xlu2 %v647_v38 }
 0x282   :  { %v615_v39 = vpop.f32.mrf.mxu0 }
 0x288   :  { %v632_v41 = vpop.f32.mrf.mxu3 }
 0x289   :  { %v637_v42 = vmul.f32 0.125, %v632_v41 }
 0x28b   :  { %v645_v43 = vadd.f32 %v4970_v40, %v637_v42 }
 0x28d   :  { %v650_v44 = vsel %vm646_vm9, %v645_v43, -inf }
 0x28e   :  { %651 = vmax.xlane.f32.xlu0 %v650_v44 }
 0x290   :  { %v634_v45 = vpop.f32.mrf.mxu3 }
 0x2e9   :  { %v763_v46 = vpop.f32.mrf.mxu1 }
 0x2ea   :  { %v796_v47 = vmul.f32 0.125, %v763_v46 }
 0x2ec   :  { %v798_v48 = vadd.f32 %v4969_v34, %v796_v47 }
 0x2ee   :  { %v800_v49 = vsel %vm646_vm9, %v798_v48, -inf }
 0x2ef   :  { %801 = vmax.xlane.f32.xlu1 %v800_v49 }
 0x2f1   :  { %v765_v50 = vpop.f32.mrf.mxu1 }
 0x2f3   :  { %v649_v51 = vpop.xlane.xlu2 %648 }
 0x2f4   :  { %v653_v52 = vsub.f32 %v644_v37, %v649_v51 }
 0x2f6   :  { %v655_v53 = vmul.f32 1.442695, %v653_v52 }
 0x2f7   :  { %v792_v56 = vpop.f32.mrf.mxu2 }
 0x2f8   :  { %v797_v11 = vmul.f32 0.125, %v792_v56  ;;  %4991 = vpow2.f32 %v655_v53 }
 0x2fa   :  { %v799_v57 = vadd.f32 %v4970_v40, %v797_v11 }
 0x2fc   :  { %v803_v58 = vsel %vm646_vm9, %v799_v57, -inf }
 0x2fd   :  { %804 = vmax.xlane.f32.xlu2 %v803_v58 }
 0x2fe   :  { %v4992_v60 = vpop.eup %4991 }
 0x2ff   :  { %v794_v59 = vpop.f32.mrf.mxu2  ;;  %v659_v0 = vsel %vm646_vm9, %v4992_v60, 0.0 }
 0x301   :  { %v652_v61 = vpop.xlane.xlu0 %651 }
 0x302   :  { %v654_v15 = vsub.f32 %v645_v43, %v652_v61 }
 0x304   :  { %v657_v63 = vmul.f32 1.442695, %v654_v15 }
 0x305   :  { %660 = vadd.xlane.f32.xlu2 %v659_v0 }
 0x306   :  { %4993 = vpow2.f32 %v657_v63 }
 0x308   :  { %853 = vrot.lane.b32.xlu1 %v852_v1, %s5585_s4 }
 0x30c   :  { %v4994_v2 = vpop.eup %4993 }
 0x30d   :  { %v662_v3 = vsel %vm646_vm9, %v4994_v2, 0.0 }
 0x30e   :  { %663 = vadd.xlane.f32.xlu2 %v662_v3 }
 0x362   :  { %v802_v4 = vpop.xlane.xlu1 %801 }
 0x363   :  { %v806_v5 = vsub.f32 %v798_v48, %v802_v4 }
 0x365   :  { %v808_v6 = vmul.f32 1.442695, %v806_v5 }
 0x367   :  { %4995 = vpow2.f32 %v808_v6 }
 0x36d   :  { %v5839_v7 = vpop.eup %4995 }
 0x36e   :  { %v812_v9 = vsel %vm646_vm9, %v5839_v7, 0.0 }
 0x36f   :  { %813 = vadd.xlane.f32.xlu0 %v812_v9 }
 0x370   :  { %v805_v10 = vpop.xlane.xlu2 %804 }
 0x371   :  { %v807_v12 = vsub.f32 %v799_v57, %v805_v10 }
 0x373   :  { %v810_v13 = vmul.f32 1.442695, %v807_v12 }
 0x375   :  { %4997 = vpow2.f32 %v810_v13 }
 0x378   :  { %v661_v14 = vpop.xlane.xlu2 %660 }
 0x379   :  { %4999 = vrcp.f32 %v661_v14  ;;  %v676_v27 = vand.u32 2147483648, %v661_v14  ;;  %v674_v29 = vand.u32 2147483647, %v661_v14  ;;  %vm670_vm11 = vweird.f32 %v661_v14 }
 0x37a   :  { %v854_v16 = vpop.permute.xlu1 %853 }
 0x37b   :  { %v5843_v17 = vpop.eup %4997  ;;  %v859_v18 = vsel %vm700_vm8, %v854_v16, 0  ;;  %v677_v31 = vor.u32 1.1754944e-38, %v676_v27  ;;  %vm675_vm13 = vcmp.eq.f32.partialorder %v674_v29, 8.507059e+37  ;;  %v4755_v27 = vld [vmem:[#allocation14 + $0x18] sm:$0xff] }
 0x37c   :  { %868 = vmatpush.bf16.msra.mxu3 %v859_v18  ;;  %v815_v19 = vsel %vm646_vm9, %v5843_v17, 0.0 }
 0x37d   :  { %816 = vadd.xlane.f32.xlu2 %v815_v19 }
 0x37f   :  { %v5000_v21 = vpop.eup %4999 }
 0x380   :  { %v666_v22 = vmul.f32 %v5000_v21, %v661_v14  ;;  %vm671_vm10 = vweird.f32 %v5000_v21 }
 0x381   :  { %v664_v23 = vpop.xlane.xlu2 %663  ;;  %vm672_vm12 = vmor %vm670_vm11, %vm671_vm10 }
 0x382   :  { %v667_v25 = vsub.f32 1.0, %v666_v22  ;;  %5001 = vrcp.f32 %v664_v23  ;;  %v691_v37 = vand.u32 2147483648, %v664_v23  ;;  %v689_v40 = vand.u32 2147483647, %v664_v23 }
 0x383   :  { %877 = vrot.lane.b32.xlu0 %v876_v24, %s5585_s4  ;;  %vm685_vm15 = vweird.f32 %v664_v23  ;;  %v4757_v24 = vld [vmem:[#allocation14 + $0x28] sm:$0xff] }
 0x384   :  { %v668_v28 = vmul.f32 %v5000_v21, %v667_v25  ;;  %v692_v42 = vor.u32 1.1754944e-38, %v691_v37  ;;  %vm690_vm1 = vcmp.eq.f32.partialorder %v689_v40, 8.507059e+37  ;;  %v4756_v25 = vld [vmem:[#allocation14 + $0x20] sm:$0xff] }
 0x386   :  { %v669_v30 = vadd.f32 %v5000_v21, %v668_v28  ;;  %v4754_v28 = vld [vmem:[#allocation14 + $0x10] sm:$0xff] }
 0x388   :  { %v5002_v32 = vpop.eup %5001  ;;  %v673_v33 = vsel %vm672_vm12, %v5000_v21, %v669_v30  ;;  %v4753_v30 = vld [vmem:[#allocation14 + $0x8] sm:$0xff] }
 0x389   :  { %v681_v26 = vmul.f32 %v5002_v32, %v664_v23  ;;  %v678_v34 = vsel %vm675_vm13, %v677_v31, %v673_v33  ;;  %vm686_vm14 = vweird.f32 %v5002_v32  ;;  %v4758_v23 = vld [vmem:[#allocation14 + $0x30] sm:$0xff]  ;;  %vm906_vm13 = vcmask 1048064   ;;  %v4752_v31 = vld [vmem:[#allocation14] sm:$0xff] }
 0x38a   :  { %v679_v35 = vmul.f32 %v4992_v60, %v678_v34  ;;  %vm687_vm0 = vmor %vm685_vm15, %vm686_vm14 }
 0x38b   :  { %v682_v36 = vsub.f32 1.0, %v681_v26 }
 0x38c   :  { %v695_v38 = vpack.c.bf16 %v679_v35, %v679_v35  ;;  %v4971_v35 = vld [vmem:[%s6641_s21] ss:$0 sm:$0xff] }
 0x38d   :  { %v683_v39 = vmul.f32 %v5002_v32, %v682_v36 }
 0x38e   :  { %3974 = vmatmul.msk.bf16.vlgmr.msrb.gmra.mxu3 %vm646_vm9, %v695_v38 }
 0x38f   :  { %v684_v41 = vadd.f32 %v5002_v32, %v683_v39 }
 0x391   :  { %v688_v43 = vsel %vm687_vm0, %v5002_v32, %v684_v41 }
 0x392   :  { %v693_v44 = vsel %vm690_vm1, %v692_v42, %v688_v43 }
 0x393   :  { %v694_v45 = vmul.f32 %v4994_v2, %v693_v44 }
 0x395   :  { %v696_v46 = vpack.c.bf16 %v694_v45, %v694_v45 }
 0x397   :  { %3975 = vmatmul.msk.bf16.vlgmr.msra.gmra.mxu0 %vm646_vm9, %v696_v46 }
 0x3e2   :  { %v814_v47 = vpop.xlane.xlu0 %813 }
 0x3e3   :  { %5003 = vrcp.f32 %v814_v47  ;;  %v829_v51 = vand.u32 2147483648, %v814_v47  ;;  %v827_v53 = vand.u32 2147483647, %v814_v47  ;;  %vm823_vm3 = vweird.f32 %v814_v47 }
 0x3e5   :  { %v830_v57 = vor.u32 1.1754944e-38, %v829_v51  ;;  %vm828_vm5 = vcmp.eq.f32.partialorder %v827_v53, 8.507059e+37  ;;  %v4134_v53 = vld [vmem:[#allocation18 + $0xe8] sm:$0xf] }
 0x3e9   :  { %v5004_v48 = vpop.eup %5003 }
 0x3ea   :  { %v819_v49 = vmul.f32 %v5004_v48, %v814_v47  ;;  %vm824_vm2 = vweird.f32 %v5004_v48 }
 0x3eb   :  { %vm825_vm4 = vmor %vm823_vm3, %vm824_vm2 }
 0x3ec   :  { %v820_v50 = vsub.f32 1.0, %v819_v49  ;;  %v4790_v49 = vld [vmem:[#allocation18 + $0xec] sm:$0xf0] }
 0x3ee   :  { %v821_v52 = vmul.f32 %v5004_v48, %v820_v50  ;;  %v4788_v50 = vld [vmem:[#allocation18 + $0xe4] sm:$0xf] }
 0x3f0   :  { %v822_v56 = vadd.f32 %v5004_v48, %v821_v52  ;;  %v817_v11 = vpop.xlane.xlu2 %816  ;;  %v4128_v52 = vld [vmem:[#allocation18 + $0xf0] sm:$0xf0] }
 0x3f1   :  { %5005 = vrcp.f32 %v817_v11  ;;  %v844_v2 = vand.u32 2147483648, %v817_v11  ;;  %v842_v4 = vand.u32 2147483647, %v817_v11  ;;  %vm838_vm10 = vweird.f32 %v817_v11 }
 0x3f2   :  { %v826_v58 = vsel %vm825_vm4, %v5004_v48, %v822_v56  ;;  %v4791_v56 = vld [vmem:[#allocation18 + $0xf4] sm:$0xf0] }
 0x3f3   :  { %v831_v59 = vsel %vm828_vm5, %v830_v57, %v826_v58  ;;  %v845_v6 = vor.u32 1.1754944e-38, %v844_v2  ;;  %vm843_vm12 = vcmp.eq.f32.partialorder %v842_v4, 8.507059e+37  ;;  %v4135_v57 = vor.u32 %v4791_v56, %v4134_v53  ;;  %v4789_v58 = vld [vmem:[#allocation18 + $0xec] sm:$0xf]  ;;  %v4787_v2 = vld [vmem:[#allocation18 + $0xd4] sm:$0xf0] }
 0x3f4   :  { %v832_v60 = vmul.f32 %v5839_v7, %v831_v59  ;;  %v4136_v59 = vld [vmem:[#allocation18 + $0xf8] sm:$0xf0]  ;;  %v4771_v53 = vld [vmem:[#allocation18 + $0x54] sm:$0xf0] }
 0x3f5   :  { %v878_v61 = vpop.permute.xlu0 %877 }
 0x3f6   :  { %v883_v15 = vsel %vm700_vm8, %v878_v61, 0  ;;  %v848_v62 = vpack.c.bf16 %v832_v60, %v832_v60  ;;  %v4139_v60 = vor.u32 %v4789_v58, %v4136_v59  ;;  %v4110_v61 = vld [vmem:[#allocation18 + $0xc0] sm:$0xf]  ;;  %v4056_v58 = vld [vmem:[#allocation18 + $0x58] sm:$0xf0] }
 0x3f7   :  { %v5006_v63 = vpop.eup %5005  ;;  %892 = vmatpush.bf16.msrb.mxu0 %v883_v15  ;;  %v4786_v15 = vld [vmem:[#allocation18 + $0xcc] sm:$0xf0] }
 0x3f8   :  { %v834_v0 = vmul.f32 %v5006_v63, %v817_v11  ;;  %3978 = vmatmul.msk.bf16.vlgmr.msra.gmra.mxu3 %vm646_vm9, %v848_v62  ;;  %vm839_vm6 = vweird.f32 %v5006_v63  ;;  %v4131_v11 = vor.u32 %v4788_v50, %v4128_v52  ;;  %v4784_v62 = vld [vmem:[#allocation18 + $0xc4] sm:$0xf]  ;;  %v4054_v52 = vld [vmem:[#allocation18 + $0x48] sm:$0xf] }
 0x3f9   :  { %vm840_vm11 = vmor %vm838_vm10, %vm839_vm6 }
 0x3fa   :  { %v835_v1 = vsub.f32 1.0, %v834_v0  ;;  %1265 = vmatpush.bf16.msrb.mxu3 %v4131_v11  ;;  %v4112_v0 = vld [vmem:[#allocation18 + $0xd0] sm:$0xf0]  ;;  %v4055_v11 = vor.u32 %v4771_v53, %v4054_v52 }
 0x3fb   :  { %1279 = vmatpush.bf16.msra.mxu0 %v4135_v57  ;;  %v4769_v57 = vld [vmem:[#allocation18 + $0x4c] sm:$0xf] }
 0x3fc   :  { %v836_v3 = vmul.f32 %v5006_v63, %v835_v1  ;;  %v4118_v1 = vld [vmem:[#allocation18 + $0xc8] sm:$0xf]  ;;  %v4059_v59 = vor.u32 %v4769_v57, %v4056_v58 }
 0x3fd   :  { %v4119_v4 = vor.u32 %v4787_v2, %v4118_v1  ;;  %v4767_v1 = vld [vmem:[#allocation18 + $0x34] sm:$0xf0] }
 0x3fe   :  { %v837_v5 = vadd.f32 %v5006_v63, %v836_v3  ;;  %v4115_v3 = vor.u32 %v4784_v62, %v4112_v0  ;;  %v4038_v0 = vld [vmem:[#allocation18 + $0x28] sm:$0xf] }
 0x3ff   :  { %1280 = vmatpush.bf16.msra.mxu0 %v4119_v4  ;;  %v4039_v4 = vor.u32 %v4767_v1, %v4038_v0 }
 0x400   :  { %v841_v9 = vsel %vm840_vm11, %v5006_v63, %v837_v5  ;;  %v4111_v63 = vor.u32 %v4786_v15, %v4110_v61  ;;  %v4785_v5 = vld [vmem:[#allocation18 + $0xcc] sm:$0xf]  ;;  %1266 = vmatpush.bf16.msrb.mxu3 %v4115_v3  ;;  %v4766_v61 = vld [vmem:[#allocation18 + $0x2c] sm:$0xf0]  ;;  %v4764_v15 = vld [vmem:[#allocation18 + $0x24] sm:$0xf] }
 0x401   :  { %v846_v7 = vsel %vm843_vm12, %v845_v6, %v841_v9  ;;  %v4120_v6 = vld [vmem:[#allocation18 + $0xd8] sm:$0xf0] }
 0x402   :  { %v847_v10 = vmul.f32 %v5843_v17, %v846_v7  ;;  %v4759_v17 = vld [vmem:[#allocation14 + $0x38] sm:$0xff]  ;;  %v4123_v9 = vor.u32 %v4785_v5, %v4120_v6  ;;  %v4094_v7 = vld [vmem:[#allocation18 + $0xa0] sm:$0xf]  ;;  %v4765_v5 = vld [vmem:[#allocation18 + $0x2c] sm:$0xf] }
 0x403   :  { %980 = vmatpush.bf16.msra.mxu1 %v4759_v17  ;;  %v4040_v6 = vld [vmem:[#allocation18 + $0x38] sm:$0xf0] }
 0x404   :  { %v849_v12 = vpack.c.bf16 %v847_v10, %v847_v10  ;;  %v4782_v10 = vld [vmem:[#allocation18 + $0xac] sm:$0xf0] }
 0x406   :  { %3979 = vmatmul.msk.bf16.vlgmr.msrb.gmra.mxu0 %vm646_vm9, %v849_v12  ;;  %v4780_v12 = vld [vmem:[#allocation18 + $0xa4] sm:$0xf] }
 0x407   :  { %981 = vmatpush.bf16.msra.mxu1 %v4758_v23  ;;  %v4078_v23 = vld [vmem:[#allocation18 + $0x80] sm:$0xf] }
 0x40b   :  { %982 = vmatpush.bf16.msra.mxu1 %v4757_v24  ;;  %v4778_v24 = vld [vmem:[#allocation18 + $0x8c] sm:$0xf0] }
 0x40f   :  { %983 = vmatpush.bf16.msra.mxu1 %v4756_v25  ;;  %v4776_v25 = vld [vmem:[#allocation18 + $0x84] sm:$0xf] }
 0x411   :  { %v713_v13 = vpop.f32.mrf.mxu3 }
 0x412   :  { %736 = vst.msk [vmem:[#allocation2] sm:$0xff] %vm597_vm7, %v713_v13  ;;  %v4095_v13 = vor.u32 %v4782_v10, %v4094_v7  ;;  %v4043_v10 = vor.u32 %v4765_v5, %v4040_v6 }
 0x413   :  { %984 = vmatpush.bf16.msra.mxu1 %v4755_v27  ;;  %v4079_v27 = vor.u32 %v4778_v24, %v4078_v23  ;;  %v4024_v23 = vld [vmem:[#allocation18 + $0x18] sm:$0xf0] }
 0x414   :  { %v732_v14 = vpop.f32.mrf.mxu0 }
 0x415   :  { %737 = vst.msk [vmem:[#allocation2 + $0x8] sm:$0xff] %vm597_vm7, %v732_v14  ;;  %v4096_v14 = vld [vmem:[#allocation18 + $0xb0] sm:$0xf0] }
 0x417   :  { %985 = vmatpush.bf16.msra.mxu1 %v4754_v28  ;;  %v4080_v28 = vld [vmem:[#allocation18 + $0x90] sm:$0xf0] }
 0x419   :  { %v715_v16 = vpop.f32.mrf.mxu3 }
 0x41a   :  { %v4102_v16 = vld [vmem:[#allocation18 + $0xa8] sm:$0xf] }
 0x41b   :  { %986 = vmatpush.bf16.msra.mxu1 %v4753_v30  ;;  %v4779_v30 = vld [vmem:[#allocation18 + $0x94] sm:$0xf0] }
 0x41c   :  { %v734_v18 = vpop.f32.mrf.mxu0 }
 0x41d   :  { %v4783_v18 = vld [vmem:[#allocation18 + $0xb4] sm:$0xf0] }
 0x41f   :  { %987 = vmatpush.bf16.msra.mxu1 %v4752_v31  ;;  %v4083_v31 = vor.u32 %v4776_v25, %v4080_v28 }
 0x423   :  { %1293 = vmatpush.bf16.msrb.mxu1 %v4139_v60  ;;  %v4030_v60 = vld [vmem:[#allocation18 + $0x20] sm:$0xf] }
 0x424   :  { %v4031_v62 = vor.u32 %v4766_v61, %v4030_v60 }
 0x427   :  { %1294 = vmatpush.bf16.msrb.mxu1 %v4123_v9  ;;  %v4014_v9 = vld [vmem:[#allocation18] sm:$0xf] }
 0x47b   :  { %v870_v19 = vpop.f32.mrf.mxu3 }
 0x47c   :  { %900 = vrot.lane.b32.xlu2 %v870_v19, %s5585_s4  ;;  %v4099_v19 = vor.u32 %v4780_v12, %v4096_v14  ;;  %v4762_v12 = vld [vmem:[#allocation18 + $0xc] sm:$0xf0]  ;;  %v4016_v14 = vld [vmem:[#allocation18 + $0x10] sm:$0xf0] }
 0x47e   :  { %1267 = vmatpush.bf16.msrb.mxu3 %v4099_v19  ;;  %v4022_v19 = vld [vmem:[#allocation18 + $0x8] sm:$0xf] }
 0x482   :  { %1268 = vmatpush.bf16.msrb.mxu3 %v4083_v31 }
 0x483   :  { %v872_v20 = vpop.f32.mrf.mxu3  ;;  %v894_v21 = vpop.f32.mrf.mxu0 }
 0x484   :  { %902 = vrot.lane.b32.xlu0 %v894_v21, %s5585_s4  ;;  %v4103_v20 = vor.u32 %v4783_v18, %v4102_v16  ;;  %v4781_v21 = vld [vmem:[#allocation18 + $0xac] sm:$0xf]  ;;  %v4015_v16 = vor.u32 %v4762_v12, %v4014_v9 }
 0x486   :  { %1281 = vmatpush.bf16.msra.mxu0 %v4103_v20  ;;  %v4763_v20 = vld [vmem:[#allocation18 + $0x14] sm:$0xf0] }
 0x48b   :  { %v896_v22 = vpop.f32.mrf.mxu0 }
 0x48c   :  { %v4104_v22 = vld [vmem:[#allocation18 + $0xb8] sm:$0xf0] }
 0x48d   :  { %v4107_v17 = vor.u32 %v4781_v21, %v4104_v22  ;;  %v4761_v21 = vld [vmem:[#allocation18 + $0xc] sm:$0xf] }
 0x48e   :  { %v4027_v24 = vor.u32 %v4761_v21, %v4024_v23 }
 0x48f   :  { %1295 = vmatpush.bf16.msrb.mxu1 %v4107_v17  ;;  %v4023_v17 = vor.u32 %v4763_v20, %v4022_v19 }
 0x4d6   :  { %v901_v29 = vpop.permute.xlu2 %900 }
 0x4d7   :  { %907 = vst.msk [vmem:[#allocation2] sm:$0xff] %vm906_vm13, %v901_v29  ;;  %v4086_v29 = vld [vmem:[#allocation18 + $0x88] sm:$0xf] }
 0x4de   :  { %v909_v33 = vld [vmem:[#allocation2] sm:$0xff] }
 0x4f6   :  { %v903_v32 = vpop.permute.xlu0 %902 }
 0x4f7   :  { %908 = vst.msk [vmem:[#allocation2 + $0x8] sm:$0xff] %vm906_vm13, %v903_v32  ;;  %v4087_v32 = vor.u32 %v4779_v30, %v4086_v29 }
 0x4f9   :  { %1282 = vmatpush.bf16.msra.mxu0 %v4087_v32 }
 0x4fe   :  { %v910_v26 = vld [vmem:[#allocation2 + $0x8] sm:$0xff] }
 0x4ff   :  { %v911_v34 = vpack.c.bf16 %v910_v26, %v909_v33  ;;  %v4777_v33 = vld [vmem:[#allocation18 + $0x8c] sm:$0xf]  ;;  %v4088_v26 = vld [vmem:[#allocation18 + $0x98] sm:$0xf0] }
 0x501   :  { %988 = vmatmul.bf16.vlgmr.msra.gmra.mxu1 %v911_v34  ;;  %v4091_v34 = vor.u32 %v4777_v33, %v4088_v26 }
 0x503   :  { %1296 = vmatpush.bf16.msrb.mxu1 %v4091_v34 }
 0x57e   :  { %v989_v36 = vpop.f32.mrf.mxu1 }
 0x57f   :  { %v990_v37 = vadd.f32 %v4971_v35, %v989_v36  ;;  %v4774_v36 = vld [vmem:[#allocation18 + $0x6c] sm:$0xf0] }
 0x581   :  { %v994_v38 = vadd.f32 %v990_v37, %v5805_v54  ;;  %v4772_v37 = vld [vmem:[#allocation18 + $0x64] sm:$0xf] }
 0x583   :  { %998 = vadd.xlane.f32.xlu1 %v994_v38 }
 0x586   :  { %v991_v39 = vpop.f32.mrf.mxu1 }
 0x587   :  { %v992_v40 = vadd.f32 %v4971_v35, %v991_v39  ;;  %v4062_v35 = vld [vmem:[#allocation18 + $0x60] sm:$0xf]  ;;  %v4064_v39 = vld [vmem:[#allocation18 + $0x70] sm:$0xf0] }
 0x589   :  { %v995_v41 = vadd.f32 %v992_v40, %v5807_v55  ;;  %v4126_v55 = vld [vmem:[#allocation18 + $0xe0] sm:$0xf]  ;;  %v4070_v40 = vld [vmem:[#allocation18 + $0x68] sm:$0xf] }
 0x58a   :  { %v4127_v51 = vor.u32 %v4790_v49, %v4126_v55  ;;  %v4770_v55 = vld [vmem:[#allocation18 + $0x4c] sm:$0xf0]  ;;  %v4768_v49 = vld [vmem:[#allocation18 + $0x44] sm:$0xf] }
 0x58b   :  { %1000 = vadd.xlane.f32.xlu2 %v995_v41 }
 0x58c   :  { %1251 = vmatpush.bf16.msra.mxu2 %v4127_v51  ;;  %v4048_v51 = vld [vmem:[#allocation18 + $0x50] sm:$0xf0] }
 0x58d   :  { %v4051_v56 = vor.u32 %v4768_v49, %v4048_v51 }
 0x590   :  { %1252 = vmatpush.bf16.msra.mxu2 %v4111_v63  ;;  %v4032_v63 = vld [vmem:[#allocation18 + $0x30] sm:$0xf0] }
 0x591   :  { %v4035_v3 = vor.u32 %v4764_v15, %v4032_v63 }
 0x594   :  { %1253 = vmatpush.bf16.msra.mxu2 %v4095_v13  ;;  %v4760_v13 = vld [vmem:[#allocation18 + $0x4] sm:$0xf] }
 0x595   :  { %v4019_v18 = vor.u32 %v4760_v13, %v4016_v14 }
 0x598   :  { %1254 = vmatpush.bf16.msra.mxu2 %v4079_v27 }
 0x5f6   :  { %v999_v42 = vpop.xlane.xlu1 %998 }
 0x5f7   :  { %v1002_v43 = vmul.f32 %v999_v42, %v5789_v8  ;;  %v4067_v42 = vor.u32 %v4772_v37, %v4064_v39 }
 0x5f9   :  { %v5869_v44 = vsub.f32 %v994_v38, %v1002_v43  ;;  %v4063_v38 = vor.u32 %v4774_v36, %v4062_v35  ;;  %1269 = vmatpush.bf16.msrb.mxu3 %v4067_v42 }
 0x5fb   :  { %v1006_v45 = vmul.f32 %v5869_v44, %v5869_v44  ;;  %1255 = vmatpush.bf16.msra.mxu2 %v4063_v38 }
 0x5fd   :  { %1008 = vadd.xlane.f32.xlu0 %v1006_v45  ;;  %v4773_v45 = vld [vmem:[#allocation18 + $0x6c] sm:$0xf]  ;;  %1270 = vmatpush.bf16.msrb.mxu3 %v4051_v56 }
 0x5fe   :  { %v1001_v46 = vpop.xlane.xlu2 %1000 }
 0x5ff   :  { %v1003_v47 = vmul.f32 %v1001_v46, %v5789_v8  ;;  %v4072_v46 = vld [vmem:[#allocation18 + $0x78] sm:$0xf0] }
 0x601   :  { %v5874_v48 = vsub.f32 %v995_v41, %v1003_v47  ;;  %v4775_v41 = vld [vmem:[#allocation18 + $0x74] sm:$0xf0]  ;;  %v4075_v47 = vor.u32 %v4773_v45, %v4072_v46  ;;  %1271 = vmatpush.bf16.msrb.mxu3 %v4035_v3 }
 0x602   :  { %v4071_v43 = vor.u32 %v4775_v41, %v4070_v40  ;;  %v4972_v41 = vld [vmem:[#allocation15] ss:$0 sm:$0xff] }
 0x603   :  { %v1007_v54 = vmul.f32 %v5874_v48, %v5874_v48  ;;  %1297 = vmatpush.bf16.msrb.mxu1 %v4075_v47  ;;  %v4973_v47 = vld [vmem:[#allocation17] ss:$0 sm:$0xff] }
 0x604   :  { %1283 = vmatpush.bf16.msra.mxu0 %v4071_v43 }
 0x605   :  { %1010 = vadd.xlane.f32.xlu1 %v1007_v54  ;;  %v4046_v54 = vld [vmem:[#allocation18 + $0x40] sm:$0xf]  ;;  %1272 = vmatpush.bf16.msrb.mxu3 %v4019_v18 }
 0x606   :  { %v4047_v50 = vor.u32 %v4770_v55, %v4046_v54 }
 0x607   :  { %1298 = vmatpush.bf16.msrb.mxu1 %v4059_v59 }
 0x608   :  { %1256 = vmatpush.bf16.msra.mxu2 %v4047_v50  ;;  %1284 = vmatpush.bf16.msra.mxu0 %v4055_v11 }
 0x60b   :  { %1299 = vmatpush.bf16.msrb.mxu1 %v4043_v10 }
 0x60c   :  { %1257 = vmatpush.bf16.msra.mxu2 %v4031_v62  ;;  %1285 = vmatpush.bf16.msra.mxu0 %v4039_v4 }
 0x60f   :  { %1300 = vmatpush.bf16.msrb.mxu1 %v4027_v24 }
 0x610   :  { %1258 = vmatpush.bf16.msra.mxu2 %v4015_v16  ;;  %1286 = vmatpush.bf16.msra.mxu0 %v4023_v17 }
 0x670   :  { %v1009_v2 = vpop.xlane.xlu0 %1008 }
 0x671   :  { %v1012_v7 = vmul.f32 %v1009_v2, %v5789_v8 }
 0x673   :  { %v1014_v22 = vadd.f32 1e-12, %v1012_v7 }
 0x675   :  { %5007 = vrsqrt.f32 %v1014_v22  ;;  %vm1022_vm15 = vweird.f32 %v1014_v22 }
 0x678   :  { %v1011_v25 = vpop.xlane.xlu1 %1010 }
 0x679   :  { %v1013_v27 = vmul.f32 %v1011_v25, %v5789_v8 }
 0x67b   :  { %v5008_v28 = vpop.eup %5007  ;;  %v1015_v29 = vadd.f32 1e-12, %v1013_v27 }
 0x67c   :  { %v1017_v30 = vmul.f32 %v5008_v28, %v1014_v22  ;;  %vm1023_vm14 = vweird.f32 %v5008_v28 }
 0x67d   :  { %5009 = vrsqrt.f32 %v1015_v29  ;;  %vm1024_vm0 = vmor %vm1022_vm15, %vm1023_vm14  ;;  %vm1032_vm2 = vweird.f32 %v1015_v29 }
 0x67e   :  { %v1018_v31 = vmul.f32 %v5008_v28, %v1017_v30 }
 0x680   :  { %v1019_v32 = vmul.f32 0.5, %v1018_v31 }
 0x682   :  { %v1020_v33 = vsub.f32 1.5, %v1019_v32 }
 0x683   :  { %v5010_v26 = vpop.eup %5009 }
 0x684   :  { %v1021_v34 = vmul.f32 %v5008_v28, %v1020_v33  ;;  %v1027_v35 = vmul.f32 %v5010_v26, %v1015_v29  ;;  %vm1033_vm1 = vweird.f32 %v5010_v26 }
 0x685   :  { %vm1034_vm3 = vmor %vm1032_vm2, %vm1033_vm1 }
 0x686   :  { %v1028_v36 = vmul.f32 %v5010_v26, %v1027_v35  ;;  %v1025_v37 = vsel %vm1024_vm0, %v5008_v28, %v1021_v34 }
 0x687   :  { %v1036_v40 = vmul.f32 %v1025_v37, %v5869_v44  ;;  %v5891_v44 = vld [vmem:[%s6606_s11] sm:$0xf] }
 0x688   :  { %v1029_v38 = vmul.f32 0.5, %v1028_v36  ;;  %v1086_v51 = vperm.slane %v5891_v44, 3  ;;  %v1083_v57 = vperm.slane %v5891_v44, 0  ;;  %v1084_v58 = vperm.slane %v5891_v44, 1 }
 0x689   :  { %v1041_v46 = vmul.f32 %v4972_v41, %v1036_v40 }
 0x68a   :  { %v1030_v39 = vsub.f32 1.5, %v1029_v38 }
 0x68b   :  { %v5882_v55 = vadd.f32 %v4973_v47, %v1041_v46 }
 0x68c   :  { %v1031_v42 = vmul.f32 %v5010_v26, %v1030_v39 }
 0x68e   :  { %v1035_v43 = vsel %vm1034_vm3, %v5010_v26, %v1031_v42 }
 0x68f   :  { %v1037_v45 = vmul.f32 %v1035_v43, %v5874_v48  ;;  %v1085_v48 = vperm.slane %v5891_v44, 2 }
 0x691   :  { %v1042_v54 = vmul.f32 %v4972_v41, %v1037_v45 }
 0x693   :  { %v5884_v49 = vadd.f32 %v4973_v47, %v1042_v54 }
 0x695   :  { %v1048_v50 = vpack.c.bf16 %v5884_v49, %v5882_v55 }
 0x697   :  { %1259 = vmatmul.bf16.vlgmr.msra.gmra.mxu2 %v1048_v50  ;;  %1273 = vmatmul.bf16.vlgmr.msrb.gmra.mxu3 %v1048_v50 }
 0x698   :  { %1287 = vmatmul.bf16.vlgmr.msra.gmra.mxu0 %v1048_v50  ;;  %1301 = vmatmul.bf16.vlgmr.msrb.gmra.mxu1 %v1048_v50 }
 0x715   :  { %v1288_v52 = vpop.f32.mrf.mxu0  ;;  %v1302_v53 = vpop.f32.mrf.mxu1 }
 0x716   :  { %v5895_v56 = vadd.f32 %v1288_v52, %v1085_v48  ;;  %v5899_v11 = vadd.f32 %v1302_v53, %v1086_v51 }
 0x718   :  { %v5904_v59 = vmul.f32 0.70710677, %v5895_v56  ;;  %v5907_v60 = vmul.f32 0.70710677, %v5899_v11 }
 0x71a   :  { %v5910_v61 = vand.u32 2147483647, %v5904_v59  ;;  %v5913_v15 = vand.u32 2147483647, %v5907_v60  ;;  %v1260_v62 = vpop.f32.mrf.mxu2  ;;  %v1274_v63 = vpop.f32.mrf.mxu3  ;;  %vm1325_vm3 = vcmp.ge.f32.partialorder %v5904_v59, 0.0 }
 0x71b   :  { %v5917_v0 = vadd.f32 %v1260_v62, %v1083_v57  ;;  %v5921_v1 = vadd.f32 %v1274_v63, %v1084_v58 }
 0x71c   :  { %v1349_v2 = vmul.f32 0.3275911, %v5910_v61  ;;  %v1350_v3 = vmul.f32 0.3275911, %v5913_v15 }
 0x71d   :  { %v5926_v4 = vmul.f32 0.70710677, %v5917_v0  ;;  %v5929_v9 = vmul.f32 0.70710677, %v5921_v1  ;;  %v1290_v18 = vpop.f32.mrf.mxu0  ;;  %v1304_v39 = vpop.f32.mrf.mxu1 }
 0x71e   :  { %v1357_v5 = vadd.f32 1.0, %v1349_v2  ;;  %v1358_v6 = vadd.f32 1.0, %v1350_v3  ;;  %v5942_v17 = vadd.f32 %v1290_v18, %v1085_v48  ;;  %v5965_v54 = vadd.f32 %v1304_v39, %v1086_v51 }
 0x71f   :  { %v5932_v7 = vand.u32 2147483647, %v5926_v4  ;;  %v5935_v10 = vand.u32 2147483647, %v5929_v9 }
 0x720   :  { %5011 = vrcp.f32 %v1357_v5  ;;  %v1404_v23 = vand.u32 2147483648, %v1357_v5  ;;  %v1402_v28 = vand.u32 2147483647, %v1357_v5  ;;  %vm1398_vm5 = vweird.f32 %v1357_v5 }
 0x721   :  { %5013 = vrcp.f32 %v1358_v6  ;;  %v1347_v12 = vmul.f32 0.3275911, %v5932_v7  ;;  %v1348_v16 = vmul.f32 0.3275911, %v5935_v10  ;;  %v1419_v30 = vand.u32 2147483648, %v1358_v6 }
 0x722   :  { %vm1413_vm10 = vweird.f32 %v1358_v6  ;;  %v1417_v33 = vand.u32 2147483647, %v1358_v6  ;;  %v5949_v26 = vmul.f32 0.70710677, %v5942_v17  ;;  %v1405_v34 = vor.u32 1.1754944e-38, %v1404_v23 }
 0x723   :  { %v5938_v13 = vadd.f32 1.0, %v1347_v12  ;;  %v5944_v25 = vadd.f32 1.0, %v1348_v16  ;;  %vm1403_vm12 = vcmp.eq.f32.partialorder %v1402_v28, 8.507059e+37  ;;  %v1420_v42 = vor.u32 1.1754944e-38, %v1419_v30 }
 0x724   :  { %v5955_v38 = vand.u32 2147483647, %v5949_v26  ;;  %vm1418_vm15 = vcmp.eq.f32.partialorder %v1417_v33, 8.507059e+37  ;;  %v5973_v2 = vmul.f32 0.70710677, %v5965_v54 }
 0x725   :  { %5015 = vrcp.f32 %v5938_v13  ;;  %vm1368_vm1 = vweird.f32 %v5938_v13  ;;  %v1372_v16 = vand.u32 2147483647, %v5938_v13 }
 0x726   :  { %v5012_v14 = vpop.eup %5011  ;;  %5017 = vrcp.f32 %v5944_v25  ;;  %v1353_v46 = vmul.f32 0.3275911, %v5955_v38  ;;  %v5984_v18 = vand.u32 2147483647, %v5973_v2 }
 0x727   :  { %v5014_v19 = vpop.eup %5013  ;;  %v1394_v20 = vmul.f32 %v5012_v14, %v1357_v5  ;;  %vm1399_vm4 = vweird.f32 %v5012_v14 }
 0x728   :  { %v1409_v21 = vmul.f32 %v5014_v19, %v1358_v6  ;;  %vm1414_vm6 = vweird.f32 %v5014_v19  ;;  %vm1400_vm11 = vmor %vm1398_vm5, %vm1399_vm4  ;;  %v1361_v48 = vadd.f32 1.0, %v1353_v46  ;;  %v1557_v6 = vsub.f32 0.0, %v5910_v61 }
 0x729   :  { %v1395_v22 = vsub.f32 1.0, %v1394_v20  ;;  %vm1415_vm14 = vmor %vm1413_vm10, %vm1414_vm6  ;;  %v5987_v20 = vmul.f32 0.5, %v5895_v56  ;;  %vm1373_vm4 = vcmp.eq.f32.partialorder %v1372_v16, 8.507059e+37  ;;  %v1561_v46 = vsub.f32 0.0, %v5955_v38 }
 0x72a   :  { %v1410_v24 = vsub.f32 1.0, %v1409_v21  ;;  %5019 = vrcp.f32 %v1361_v48  ;;  %v1565_v56 = vmul.f32 %v1557_v6, %v5910_v61  ;;  %vm1458_vm10 = vweird.f32 %v1361_v48 }
 0x72b   :  { %v1396_v27 = vmul.f32 %v5012_v14, %v1395_v22  ;;  %v5946_v31 = vpop.eup %5015  ;;  %v1389_v6 = vand.u32 2147483648, %v5944_v25 }
 0x72c   :  { %v1411_v29 = vmul.f32 %v5014_v19, %v1410_v24  ;;  %v1364_v36 = vmul.f32 %v5946_v31, %v5938_v13  ;;  %v5967_v52 = vpop.eup %5017  ;;  %vm1369_vm0 = vweird.f32 %v5946_v31  ;;  %v1262_v24 = vpop.f32.mrf.mxu2 }
 0x72d   :  { %v1397_v32 = vadd.f32 %v5012_v14, %v1396_v27  ;;  %v1379_v5 = vmul.f32 %v5967_v52, %v5944_v25  ;;  %vm5990_vm2 = vmor %vm1368_vm1, %vm1369_vm0  ;;  %v1558_v27 = vsub.f32 0.0, %v5913_v15  ;;  %vm1384_vm6 = vweird.f32 %v5967_v52 }
 0x72e   :  { %v1412_v35 = vadd.f32 %v5014_v19, %v1411_v29  ;;  %v1365_v43 = vsub.f32 1.0, %v1364_v36  ;;  %vm1326_vm0 = vcmp.ge.f32.partialorder %v5907_v60, 0.0 }
 0x72f   :  { %v1401_v37 = vsel %vm1400_vm11, %v5012_v14, %v1397_v32  ;;  %v1374_v14 = vand.u32 2147483648, %v5938_v13  ;;  %v1380_v23 = vsub.f32 1.0, %v1379_v5  ;;  %v1354_v32 = vmul.f32 0.3275911, %v5984_v18 }
 0x730   :  { %v5957_v40 = vsel %vm1403_vm12, %v1405_v34, %v1401_v37  ;;  %v1416_v41 = vsel %vm1415_vm14, %v5014_v19, %v1412_v35  ;;  %v1366_v53 = vmul.f32 %v5946_v31, %v1365_v43  ;;  %v5020_v19 = vpop.eup %5019  ;;  %v1464_v34 = vand.u32 2147483648, %v1361_v48 }
 0x731   :  { %v1485_v45 = vmul.f32 1.0614054, %v5957_v40  ;;  %v5961_v47 = vsel %vm1418_vm15, %v1420_v42, %v1416_v41  ;;  %v1454_v28 = vmul.f32 %v5020_v19, %v1361_v48  ;;  %v1375_v30 = vor.u32 1.1754944e-38, %v1374_v14 }
 0x732   :  { %v1486_v63 = vmul.f32 1.0614054, %v5961_v47  ;;  %v1367_v51 = vadd.f32 %v5946_v31, %v1366_v53  ;;  %v6004_v35 = vadd.f32 %v1262_v24, %v1083_v57  ;;  %v6009_v39 = vadd.f32 1.0, %v1354_v32  ;;  %v4815_v53 = vld [vmem:[#allocation20 + $0xb8] sm:$0xff] }
 0x733   :  { %v1493_v50 = vadd.f32 -1.4531521, %v1485_v45  ;;  %v1455_v33 = vsub.f32 1.0, %v1454_v28  ;;  %v1566_v61 = vmul.f32 %v1558_v27, %v5913_v15  ;;  %vm1459_vm5 = vweird.f32 %v5020_v19  ;;  %1919 = vmatpush.bf16.msrb.mxu0 %v4815_v53  ;;  %v4814_v27 = vld [vmem:[#allocation20 + $0xb0] sm:$0xff] }
 0x734   :  { %v1494_v12 = vadd.f32 -1.4531521, %v1486_v63  ;;  %v1371_v13 = vsel %vm5990_vm2, %v5946_v31, %v1367_v51  ;;  %v1381_v31 = vmul.f32 %v5967_v52, %v1380_v23  ;;  %v1462_v42 = vand.u32 2147483647, %v1361_v48  ;;  %vm1460_vm11 = vmor %vm1458_vm10, %vm1459_vm5 }
 0x735   :  { %v1501_v62 = vmul.f32 %v1493_v50, %v5957_v40  ;;  %v6006_v37 = vsel %vm1373_vm4, %v1375_v30, %v1371_v13  ;;  %v1456_v41 = vmul.f32 %v5020_v19, %v1455_v33  ;;  %v1575_v43 = vmul.f32 1.442695, %v1565_v56 }
 0x736   :  { %v1502_v29 = vmul.f32 %v1494_v12, %v5961_v47  ;;  %5021 = vrcp.f32 %v6009_v39  ;;  %v1483_v57 = vmul.f32 1.0614054, %v6006_v37  ;;  %v1382_v15 = vadd.f32 %v5967_v52, %v1381_v31 }
 0x737   :  { %v1509_v3 = vadd.f32 1.4214138, %v1501_v62  ;;  %v1457_v50 = vadd.f32 %v5020_v19, %v1456_v41  ;;  %v4823_v62 = vld [vmem:[#allocation20 + $0xf8] sm:$0xff]  ;;  %v6019_v5 = vmul.f32 0.70710677, %v6004_v35  ;;  %vm1463_vm12 = vcmp.eq.f32.partialorder %v1462_v42, 8.507059e+37  ;;  %1920 = vmatpush.bf16.msrb.mxu0 %v4814_v27 }
 0x738   :  { %v1510_v45 = vadd.f32 1.4214138, %v1502_v29  ;;  %v6021_v51 = vmul.f32 1.442695, %v1566_v61  ;;  %1933 = vmatpush.bf16.msra.mxu1 %v4823_v62  ;;  %vm1383_vm14 = vweird.f32 %v5944_v25  ;;  %v1387_v14 = vand.u32 2147483647, %v5944_v25 }
 0x739   :  { %v1517_v21 = vmul.f32 %v1509_v3, %v5957_v40  ;;  %v1465_v3 = vor.u32 1.1754944e-38, %v1464_v34  ;;  %v1461_v12 = vsel %vm1460_vm11, %v5020_v19, %v1457_v50  ;;  %v1491_v23 = vadd.f32 -1.4531521, %v1483_v57  ;;  %vm6036_vm15 = vmor %vm1383_vm14, %vm1384_vm6  ;;  %v4822_v29 = vld [vmem:[#allocation20 + $0xf0] sm:$0xff]  ;;  %v4799_v34 = vld [vmem:[#allocation20 + $0x38] sm:$0xff] }
 0x73a   :  { %v1518_v48 = vmul.f32 %v1510_v45, %v5961_v47  ;;  %v1386_v59 = vsel %vm6036_vm15, %v5967_v52, %v1382_v15  ;;  %v1569_v28 = vmul.f32 %v1561_v46, %v5955_v38  ;;  %v6049_v56 = vand.u32 2147483647, %v6019_v5  ;;  %v1276_v45 = vpop.f32.mrf.mxu3  ;;  %1891 = vmatpush.bf16.msrb.mxu2 %v4799_v34  ;;  %v4813_v46 = vld [vmem:[#allocation20 + $0xa8] sm:$0xff] }
 0x73b   :  { %v1525_v36 = vadd.f32 -0.28449672, %v1517_v21  ;;  %v6027_v16 = vsel %vm1463_vm12, %v1465_v3, %v1461_v12  ;;  %v5593_v21 = vmov -1.0   ;;  %5023 = vpow2.f32 %v1575_v43  ;;  %v4821_v57 = vld [vmem:[#allocation20 + $0xe8] sm:$0xff]  ;;  %1921 = vmatpush.bf16.msrb.mxu0 %v4813_v46  ;;  %v4798_v12 = vld [vmem:[#allocation20 + $0x30] sm:$0xff] }
 0x73c   :  { %v6032_v22 = vsel %vm1325_vm3, 1.0, %v5593_v21  ;;  %v1489_v24 = vmul.f32 1.0614054, %v6027_v16  ;;  %v6041_v13 = vpop.eup %5021  ;;  %v1390_v30 = vor.u32 1.1754944e-38, %v1389_v6  ;;  %v1526_v31 = vadd.f32 -0.28449672, %v1518_v48  ;;  %1934 = vmatpush.bf16.msra.mxu1 %v4822_v29 }
 0x73d   :  { %v1533_v63 = vmul.f32 %v1525_v36, %v5957_v40  ;;  %v1469_v33 = vmul.f32 %v6041_v13, %v6009_v39  ;;  %v4807_v36 = vld [vmem:[#allocation20 + $0x78] sm:$0xff]  ;;  %v1555_v61 = vsub.f32 0.0, %v5932_v7  ;;  %vm1388_vm1 = vcmp.eq.f32.partialorder %v1387_v14, 8.507059e+37  ;;  %v4806_v48 = vld [vmem:[#allocation20 + $0x70] sm:$0xff]  ;;  %v4805_v34 = vld [vmem:[#allocation20 + $0x68] sm:$0xff] }
 0x73e   :  { %v1497_v32 = vadd.f32 -1.4531521, %v1489_v24  ;;  %v1351_v52 = vmul.f32 0.3275911, %v6049_v56  ;;  %v1499_v38 = vmul.f32 %v1491_v23, %v6006_v37  ;;  %v6056_v41 = vsel %vm1388_vm1, %v1390_v30, %v1386_v59  ;;  %1905 = vmatpush.bf16.msra.mxu3 %v4807_v36  ;;  %1892 = vmatpush.bf16.msrb.mxu2 %v4798_v12  ;;  %v4812_v59 = vld [vmem:[#allocation20 + $0xa0] sm:$0xff] }
 0x73f   :  { %v1541_v25 = vadd.f32 0.2548296, %v1533_v63  ;;  %v1470_v43 = vsub.f32 1.0, %v1469_v33  ;;  %v1583_v53 = vmul.f32 1.442695, %v1569_v28  ;;  %v1479_v62 = vand.u32 2147483648, %v6009_v39  ;;  %1922 = vmatpush.bf16.msrb.mxu0 %v4812_v59 }
 0x740   :  { %v1505_v42 = vmul.f32 %v1497_v32, %v6027_v16  ;;  %v6061_v63 = vadd.f32 1.0, %v1351_v52  ;;  %vm1474_vm2 = vweird.f32 %v6041_v13  ;;  %v1477_v6 = vand.u32 2147483647, %v6009_v39  ;;  %1935 = vmatpush.bf16.msra.mxu1 %v4821_v57  ;;  %v4820_v28 = vld [vmem:[#allocation20 + $0xe0] sm:$0xff]  ;;  %v4810_v59 = vld [vmem:[#allocation20 + $0x90] sm:$0xff] }
 0x741   :  { %v1549_v50 = vmul.f32 %v1541_v25, %v5957_v40  ;;  %v1471_v3 = vmul.f32 %v6041_v13, %v1470_v43  ;;  %v1534_v14 = vmul.f32 %v1526_v31, %v5961_v47  ;;  %v1484_v23 = vmul.f32 1.0614054, %v6056_v41  ;;  %v5024_v19 = vpop.eup %5023  ;;  %v4811_v43 = vld [vmem:[#allocation20 + $0x98] sm:$0xff] }
 0x742   :  { %v1513_v15 = vadd.f32 1.4214138, %v1505_v42  ;;  %5025 = vrcp.f32 %v6061_v63  ;;  %v6071_v40 = vadd.f32 %v1276_v45, %v1084_v58  ;;  %v1507_v24 = vadd.f32 1.4214138, %v1499_v38  ;;  %1906 = vmatpush.bf16.msra.mxu3 %v4806_v48  ;;  %v4819_v45 = vld [vmem:[#allocation20 + $0xd8] sm:$0xff] }
 0x743   :  { %v1472_v25 = vadd.f32 %v6041_v13, %v1471_v3  ;;  %vm1473_vm3 = vweird.f32 %v6009_v39  ;;  %v1589_v29 = vmul.f32 %v5024_v19, %v1549_v50  ;;  %v1563_v30 = vmul.f32 %v1555_v61, %v5932_v7  ;;  %v4797_v39 = vld [vmem:[#allocation20 + $0x28] sm:$0xff]  ;;  %1923 = vmatpush.bf16.msrb.mxu0 %v4811_v43  ;;  %v4796_v3 = vld [vmem:[#allocation20 + $0x20] sm:$0xff] }
 0x744   :  { %v1521_v27 = vmul.f32 %v1513_v15, %v6027_v16  ;;  %5027 = vpow2.f32 %v1583_v53  ;;  %vm1475_vm4 = vmor %vm1473_vm3, %vm1474_vm2  ;;  %v1480_v44 = vor.u32 1.1754944e-38, %v1479_v62  ;;  %vm1478_vm5 = vcmp.eq.f32.partialorder %v1477_v6, 8.507059e+37  ;;  %1936 = vmatpush.bf16.msra.mxu1 %v4820_v28  ;;  %1893 = vmatpush.bf16.msrb.mxu2 %v4797_v39  ;;  %v4804_v6 = vld [vmem:[#allocation20 + $0x60] sm:$0xff]  ;;  %v4818_v28 = vld [vmem:[#allocation20 + $0xd0] sm:$0xff] }
 0x745   :  { %v1476_v32 = vsel %vm1475_vm4, %v6041_v13, %v1472_v25  ;;  %v1562_v33 = vsub.f32 0.0, %v5984_v18  ;;  %v1542_v36 = vadd.f32 0.2548296, %v1534_v14  ;;  %v1492_v31 = vadd.f32 -1.4531521, %v1484_v23  ;;  %v4817_v43 = vld [vmem:[#allocation20 + $0xc8] sm:$0xff] }
 0x746   :  { %v1529_v58 = vadd.f32 -0.28449672, %v1521_v27  ;;  %v6081_v52 = vsel %vm1478_vm5, %v1480_v44, %v1476_v32  ;;  %v6084_v7 = vmul.f32 0.70710677, %v6071_v40  ;;  %v6089_v61 = vsel %vm1326_vm0, 1.0, %v5593_v21  ;;  %1907 = vmatpush.bf16.msra.mxu3 %v4805_v34 }
 0x747   :  { %v1515_v13 = vmul.f32 %v1507_v24, %v6006_v37  ;;  %v1490_v42 = vmul.f32 1.0614054, %v6081_v52  ;;  %v1597_v57 = vsub.f32 1.0, %v1589_v29  ;;  %v6096_v50 = vmul.f32 1.442695, %v1563_v30  ;;  %1924 = vmatpush.bf16.msrb.mxu0 %v4810_v59 }
 0x748   :  { %v1537_v38 = vmul.f32 %v1529_v58, %v6027_v16  ;;  %v6094_v46 = vpop.eup %5025  ;;  %vm1329_vm6 = vcmp.ge.f32.partialorder %v5949_v26, 0.0  ;;  %v6100_v60 = vand.u32 2147483647, %v6084_v7  ;;  %5029 = vpow2.f32 %v6021_v51  ;;  %1937 = vmatpush.bf16.msra.mxu1 %v4819_v45  ;;  %1894 = vmatpush.bf16.msrb.mxu2 %v4796_v3 }
 0x749   :  { %v1498_v62 = vadd.f32 -1.4531521, %v1490_v42  ;;  %v1424_v15 = vmul.f32 %v6094_v46, %v6061_v63  ;;  %v1550_v48 = vmul.f32 %v1542_v36, %v5961_v47  ;;  %v1500_v14 = vmul.f32 %v1492_v31, %v6056_v41  ;;  %v4809_v42 = vld [vmem:[#allocation20 + $0x88] sm:$0xff] }
 0x74a   :  { %v1545_v53 = vadd.f32 0.2548296, %v1537_v38  ;;  %v5028_v12 = vpop.eup %5027  ;;  %v1570_v23 = vmul.f32 %v1562_v33, %v5984_v18  ;;  %v1352_v19 = vmul.f32 0.3275911, %v6100_v60  ;;  %v1523_v24 = vadd.f32 -0.28449672, %v1515_v13  ;;  %1908 = vmatpush.bf16.msra.mxu3 %v4804_v6 }
 0x74b   :  { %v1506_v27 = vmul.f32 %v1498_v62, %v6081_v52  ;;  %v1425_v25 = vsub.f32 1.0, %v1424_v15  ;;  %v1605_v29 = vmul.f32 %v1597_v57, %v6032_v22  ;;  %v1432_v47 = vand.u32 2147483647, %v6061_v63  ;;  %v4803_v33 = vld [vmem:[#allocation20 + $0x58] sm:$0xff]  ;;  %1925 = vmatpush.bf16.msrb.mxu0 %v4809_v42  ;;  %v4794_v6 = vld [vmem:[#allocation20 + $0x10] sm:$0xff] }
 0x74c   :  { %v1553_v51 = vmul.f32 %v1545_v53, %v6027_v16  ;;  %v1434_v30 = vand.u32 2147483648, %v6061_v63  ;;  %v6114_v18 = vadd.f32 1.0, %v1352_v19  ;;  %vm1429_vm10 = vweird.f32 %v6094_v46  ;;  %v4795_v16 = vld [vmem:[#allocation20 + $0x18] sm:$0xff]  ;;  %1938 = vmatpush.bf16.msra.mxu1 %v4818_v28 }
 0x74d   :  { %v1514_v58 = vadd.f32 1.4214138, %v1506_v27  ;;  %v1426_v32 = vmul.f32 %v6094_v46, %v1425_v25  ;;  %v1508_v39 = vadd.f32 1.4214138, %v1500_v14  ;;  %v1337_v22 = vsel %vm1329_vm6, 1.0, %v5593_v21  ;;  %1895 = vmatpush.bf16.msrb.mxu2 %v4795_v16  ;;  %v4816_v27 = vld [vmem:[#allocation20 + $0xc0] sm:$0xff] }
 0x74e   :  { %v1593_v44 = vmul.f32 %v5028_v12, %v1553_v51  ;;  %v1585_v34 = vmul.f32 1.442695, %v1570_v23  ;;  %5031 = vrcp.f32 %v6114_v18  ;;  %v5030_v36 = vpop.eup %5029  ;;  %vm1428_vm11 = vweird.f32 %v6061_v63  ;;  %1909 = vmatpush.bf16.msra.mxu3 %v4803_v33  ;;  %v4802_v63 = vld [vmem:[#allocation20 + $0x50] sm:$0xff] }
 0x74f   :  { %v1522_v13 = vmul.f32 %v1514_v58, %v6081_v52  ;;  %v1427_v38 = vadd.f32 %v6094_v46, %v1426_v32  ;;  %v1613_v45 = vadd.f32 1.0, %v1605_v29  ;;  %v1590_v57 = vmul.f32 %v5030_v36, %v1550_v48  ;;  %vm1430_vm12 = vmor %vm1428_vm11, %vm1429_vm10  ;;  %v4793_v58 = vld [vmem:[#allocation20 + $0x8] sm:$0xff] }
 0x750   :  { %v1601_v31 = vsub.f32 1.0, %v1593_v44  ;;  %v1531_v26 = vmul.f32 %v1523_v24, %v6006_v37  ;;  %v1435_v53 = vor.u32 1.1754944e-38, %v1434_v30  ;;  %vm1433_vm14 = vcmp.eq.f32.partialorder %v1432_v47, 8.507059e+37  ;;  %1939 = vmatpush.bf16.msra.mxu1 %v4817_v43  ;;  %v4801_v32 = vld [vmem:[#allocation20 + $0x48] sm:$0xff] }
 0x751   :  { %v1530_v15 = vadd.f32 -0.28449672, %v1522_v13  ;;  %v1431_v3 = vsel %vm1430_vm12, %v6094_v46, %v1427_v38  ;;  %v1516_v12 = vmul.f32 %v1508_v39, %v6056_v41  ;;  %5033 = vpow2.f32 %v1585_v34  ;;  %1896 = vmatpush.bf16.msrb.mxu2 %v4794_v6  ;;  %v4808_v46 = vld [vmem:[#allocation20 + $0x80] sm:$0xff] }
 0x752   :  { %v1609_v62 = vmul.f32 %v1601_v31, %v1337_v22  ;;  %v6130_v14 = vsel %vm1433_vm14, %v1435_v53, %v1431_v3  ;;  %v1559_v48 = vsub.f32 0.0, %v6049_v56  ;;  %v1313_v23 = vmul.f32 0.5, %v5942_v17  ;;  %1910 = vmatpush.bf16.msra.mxu3 %v4802_v63  ;;  %1926 = vmatpush.bf16.msrb.mxu0 %v4808_v46 }
 0x753   :  { %v1538_v24 = vmul.f32 %v1530_v15, %v6081_v52  ;;  %v1487_v51 = vmul.f32 1.0614054, %v6130_v14  ;;  %v1621_v59 = vmul.f32 %v1613_v45, %v5987_v20  ;;  %v1598_v28 = vsub.f32 1.0, %v1590_v57  ;;  %v4800_v57 = vld [vmem:[#allocation20 + $0x40] sm:$0xff] }
 0x754   :  { %v1617_v19 = vadd.f32 1.0, %v1609_v62  ;;  %v5032_v25 = vpop.eup %5031  ;;  %v1539_v29 = vadd.f32 0.2548296, %v1531_v26  ;;  %5035 = vpow2.f32 %v6096_v50  ;;  %v1524_v16 = vadd.f32 -0.28449672, %v1516_v12  ;;  %1940 = vmatpush.bf16.msra.mxu1 %v4816_v27 }
 0x755   :  { %v1546_v30 = vadd.f32 0.2548296, %v1538_v24  ;;  %v1495_v44 = vadd.f32 -1.4531521, %v1487_v51  ;;  %v1439_v17 = vmul.f32 %v5032_v25, %v6114_v18  ;;  %v1556_v33 = vsub.f32 0.0, %v5935_v10  ;;  %1897 = vmatpush.bf16.msrb.mxu2 %v4793_v58 }
 0x756   :  { %v1625_v47 = vmul.f32 %v1617_v19, %v1313_v23  ;;  %vm1330_vm15 = vcmp.ge.f32.partialorder %v5973_v2, 0.0  ;;  %v1567_v39 = vmul.f32 %v1559_v48, %v6049_v56  ;;  %1911 = vmatpush.bf16.msra.mxu3 %v4801_v32  ;;  %v1606_v31 = vmul.f32 %v1598_v28, %v6089_v61 }
 0x757   :  { %v1554_v22 = vmul.f32 %v1546_v30, %v6081_v52  ;;  %v1503_v50 = vmul.f32 %v1495_v44, %v6130_v14  ;;  %v1440_v34 = vsub.f32 1.0, %v1439_v17  ;;  %v5034_v36 = vpop.eup %5033  ;;  %v1547_v13 = vmul.f32 %v1539_v29, %v6006_v37  ;;  %v4792_v52 = vld [vmem:[#allocation20] sm:$0xff] }
 0x758   :  { %v1629_v20 = vpack.c.bf16 %v1625_v47, %v1621_v59  ;;  %v1447_v38 = vand.u32 2147483647, %v6114_v18  ;;  %v1449_v42 = vand.u32 2147483648, %v6114_v18  ;;  %vm1444_vm0 = vweird.f32 %v5032_v25 }
 0x759   :  { %v1594_v43 = vmul.f32 %v5034_v36, %v1554_v22  ;;  %v1511_v56 = vadd.f32 1.4214138, %v1503_v50  ;;  %v1441_v45 = vmul.f32 %v5032_v25, %v1440_v34  ;;  %v1310_v53 = vmul.f32 0.5, %v5899_v11  ;;  %1898 = vmatpush.bf16.msrb.mxu2 %v4792_v52 }
 0x75a   :  { %1927 = vmatmul.bf16.vlgmr.msrb.gmra.mxu0 %v1629_v20  ;;  %v5036_v26 = vpop.eup %5035  ;;  %v1564_v62 = vmul.f32 %v1556_v33, %v5935_v10  ;;  %v1338_v37 = vsel %vm1330_vm15, 1.0, %v5593_v21  ;;  %v1579_v61 = vmul.f32 1.442695, %v1567_v39  ;;  %vm1443_vm1 = vweird.f32 %v6114_v18  ;;  %1912 = vmatpush.bf16.msra.mxu3 %v4800_v57 }
 0x75b   :  { %v1602_v15 = vsub.f32 1.0, %v1594_v43  ;;  %v1519_v3 = vmul.f32 %v1511_v56, %v6130_v14  ;;  %v1442_v6 = vadd.f32 %v5032_v25, %v1441_v45  ;;  %v1614_v63 = vadd.f32 1.0, %v1606_v31  ;;  %vm1445_vm2 = vmor %vm1443_vm1, %vm1444_vm0 }
 0x75c   :  { %v1587_v12 = vmul.f32 %v5036_v26, %v1547_v13  ;;  %v1532_v48 = vmul.f32 %v1524_v16, %v6056_v41  ;;  %v1450_v11 = vor.u32 1.1754944e-38, %v1449_v42  ;;  %vm1448_vm3 = vcmp.eq.f32.partialorder %v1447_v38, 8.507059e+37 }
 0x75d   :  { %v1610_v10 = vmul.f32 %v1602_v15, %v1338_v37  ;;  %v1527_v23 = vadd.f32 -0.28449672, %v1519_v3  ;;  %v1446_v2 = vsel %vm1445_vm2, %v5032_v25, %v1442_v6  ;;  %v1573_v19 = vmul.f32 1.442695, %v1564_v62 }
 0x75e   :  { %5037 = vpow2.f32 %v1579_v61  ;;  %v1451_v24 = vsel %vm1448_vm3, %v1450_v11, %v1446_v2  ;;  %v1560_v51 = vsub.f32 0.0, %v6100_v60  ;;  %v1314_v18 = vmul.f32 0.5, %v5965_v54 }
 0x75f   :  { %v1618_v46 = vadd.f32 1.0, %v1610_v10  ;;  %v1535_v27 = vmul.f32 %v1527_v23, %v6130_v14  ;;  %v1488_v59 = vmul.f32 1.0614054, %v1451_v24  ;;  %v1622_v28 = vmul.f32 %v1614_v63, %v1310_v53 }
 0x760   :  { %vm1323_vm4 = vcmp.ge.f32.partialorder %v5926_v4, 0.0  ;;  %v1540_v29 = vadd.f32 0.2548296, %v1532_v48  ;;  %v1595_v47 = vsub.f32 1.0, %v1587_v12  ;;  %5039 = vpow2.f32 %v1573_v19 }
 0x761   :  { %v1626_v30 = vmul.f32 %v1618_v46, %v1314_v18  ;;  %v1543_v44 = vadd.f32 0.2548296, %v1535_v27  ;;  %v1496_v25 = vadd.f32 -1.4531521, %v1488_v59  ;;  %v1568_v17 = vmul.f32 %v1560_v51, %v6100_v60 }
 0x762   :  { %v1331_v33 = vsel %vm1323_vm4, 1.0, %v5593_v21  ;;  %vm1327_vm5 = vcmp.ge.f32.partialorder %v6019_v5, 0.0  ;;  %v1548_v4 = vmul.f32 %v1540_v29, %v6056_v41  ;;  %v1307_v43 = vmul.f32 0.5, %v5917_v0 }
 0x763   :  { %v1630_v58 = vpack.c.bf16 %v1626_v30, %v1622_v28  ;;  %v1551_v32 = vmul.f32 %v1543_v44, %v6130_v14  ;;  %v1504_v16 = vmul.f32 %v1496_v25, %v1451_v24  ;;  %v1603_v39 = vmul.f32 %v1595_v47, %v1331_v33 }
 0x764   :  { %v5038_v54 = vpop.eup %5037  ;;  %v1581_v50 = vmul.f32 1.442695, %v1568_v17  ;;  %v1335_v60 = vsel %vm1327_vm5, 1.0, %v5593_v21  ;;  %v1311_v5 = vmul.f32 0.5, %v6004_v35  ;;  %vm1324_vm6 = vcmp.ge.f32.partialorder %v5929_v9, 0.0 }
 0x765   :  { %v1591_v20 = vmul.f32 %v5038_v54, %v1551_v32  ;;  %v1512_v22 = vadd.f32 1.4214138, %v1504_v16  ;;  %1941 = vmatmul.bf16.vlgmr.msra.gmra.mxu1 %v1630_v58  ;;  %v1611_v13 = vadd.f32 1.0, %v1603_v39  ;;  %v1332_v61 = vsel %vm1324_vm6, 1.0, %v5593_v21 }
 0x766   :  { %v5040_v31 = vpop.eup %5039  ;;  %5041 = vpow2.f32 %v1581_v50  ;;  %vm1328_vm10 = vcmp.ge.f32.partialorder %v6084_v7, 0.0  ;;  %v1308_v9 = vmul.f32 0.5, %v5921_v1  ;;  %v1312_v12 = vmul.f32 0.5, %v6071_v40  ;;  %v4974_v7 = vld [vmem:[%s6608_s13] ss:$0 sm:$0xff] }
 0x767   :  { %v1599_v34 = vsub.f32 1.0, %v1591_v20  ;;  %v1520_v36 = vmul.f32 %v1512_v22, %v1451_v24  ;;  %v1588_v14 = vmul.f32 %v5040_v31, %v1548_v4  ;;  %v1619_v45 = vmul.f32 %v1611_v13, %v1307_v43  ;;  %v4846_v22 = vld [vmem:[#allocation11 + $0x170] sm:$0xf0]  ;;  %v4845_v50 = vld [vmem:[#allocation11 + $0x16c] sm:$0xf] }
 0x768   :  { %v1336_v35 = vsel %vm1328_vm10, 1.0, %v5593_v21  ;;  %v4362_v31 = vld [vmem:[#allocation11 + $0x170] sm:$0xf]  ;;  %v4842_v43 = vld [vmem:[#allocation11 + $0x154] sm:$0xf] }
 0x769   :  { %v1607_v38 = vmul.f32 %v1599_v34, %v1335_v60  ;;  %v1528_v42 = vadd.f32 -0.28449672, %v1520_v36  ;;  %v1596_v52 = vsub.f32 1.0, %v1588_v14  ;;  %v4356_v36 = vld [vmem:[#allocation11 + $0x174] sm:$0xf0] }
 0x76a   :  { %v4847_v60 = vld [vmem:[#allocation11 + $0x178] sm:$0xf0]  ;;  %v4359_v13 = vor.u32 %v4845_v50, %v4356_v36 }
 0x76b   :  { %v1615_v56 = vadd.f32 1.0, %v1607_v38  ;;  %v1536_v41 = vmul.f32 %v1528_v42, %v1451_v24  ;;  %v1604_v15 = vmul.f32 %v1596_v52, %v1332_v61  ;;  %v4363_v14 = vor.u32 %v4847_v60, %v4362_v31  ;;  %v4342_v38 = vld [vmem:[#allocation11 + $0x150] sm:$0xf]  ;;  %v4843_v42 = vld [vmem:[#allocation11 + $0x158] sm:$0xf0] }
 0x76c   :  { %v5042_v37 = vpop.eup %5041  ;;  %2186 = vmatpush.bf16.msrb.mxu3 %v4359_v13  ;;  %v4332_v61 = vld [vmem:[#allocation11 + $0x144] sm:$0xf0]  ;;  %v4270_v31 = vld [vmem:[#allocation11 + $0xc0] sm:$0xf]  ;;  %v4825_v60 = vld [vmem:[#allocation11 + $0xc8] sm:$0xf0] }
 0x76d   :  { %v1623_v57 = vmul.f32 %v1615_v56, %v1311_v5  ;;  %v1544_v26 = vadd.f32 0.2548296, %v1536_v41  ;;  %v1612_v6 = vadd.f32 1.0, %v1604_v15  ;;  %2200 = vmatpush.bf16.msra.mxu0 %v4363_v14  ;;  %v4343_v5 = vor.u32 %v4843_v42, %v4342_v38  ;;  %v4344_v56 = vld [vmem:[#allocation11 + $0x15c] sm:$0xf0] }
 0x76e   :  { %v4350_v41 = vld [vmem:[#allocation11 + $0x158] sm:$0xf]  ;;  %v4347_v52 = vor.u32 %v4842_v43, %v4344_v56  ;;  %v4338_v15 = vld [vmem:[#allocation11 + $0x140] sm:$0xf]  ;;  %v4824_v13 = vld [vmem:[#allocation11 + $0xc4] sm:$0xf] }
 0x76f   :  { %v1627_v53 = vpack.c.bf16 %v1623_v57, %v1619_v45  ;;  %v1552_v62 = vmul.f32 %v1544_v26, %v1451_v24  ;;  %v1620_v11 = vmul.f32 %v1612_v6, %v1308_v9  ;;  %v4844_v45 = vld [vmem:[#allocation11 + $0x160] sm:$0xf0]  ;;  %v4330_v26 = vld [vmem:[#allocation11 + $0x138] sm:$0xf]  ;;  %v4318_v6 = vld [vmem:[#allocation11 + $0x120] sm:$0xf] }
 0x770   :  { %v4351_v57 = vor.u32 %v4844_v45, %v4350_v41  ;;  %2187 = vmatpush.bf16.msrb.mxu3 %v4347_v52  ;;  %v4836_v9 = vld [vmem:[#allocation11 + $0x124] sm:$0xf]  ;;  %v4272_v14 = vld [vmem:[#allocation11 + $0xcc] sm:$0xf0]  ;;  %v4278_v38 = vld [vmem:[#allocation11 + $0xc8] sm:$0xf] }
 0x771   :  { %v1592_v3 = vmul.f32 %v5042_v37, %v1552_v62  ;;  %1899 = vmatmul.bf16.vlgmr.msrb.gmra.mxu2 %v1627_v53  ;;  %v4840_v53 = vld [vmem:[#allocation11 + $0x140] sm:$0xf0]  ;;  %v4839_v62 = vld [vmem:[#allocation11 + $0x13c] sm:$0xf]  ;;  %v4826_v42 = vld [vmem:[#allocation11 + $0xd0] sm:$0xf0]  ;;  %v4275_v56 = vor.u32 %v4824_v13, %v4272_v14 }
 0x772   :  { %2201 = vmatpush.bf16.msra.mxu0 %v4351_v57  ;;  %v4331_v37 = vor.u32 %v4840_v53, %v4330_v26  ;;  %v4279_v41 = vor.u32 %v4826_v42, %v4278_v38 }
 0x773   :  { %v1600_v0 = vsub.f32 1.0, %v1592_v3  ;;  %v4841_v3 = vld [vmem:[#allocation11 + $0x148] sm:$0xf0] }
 0x775   :  { %v1608_v63 = vmul.f32 %v1600_v0, %v1336_v35  ;;  %v4335_v0 = vor.u32 %v4839_v62, %v4332_v61  ;;  %v4339_v35 = vor.u32 %v4841_v3, %v4338_v15 }
 0x777   :  { %v1616_v48 = vadd.f32 1.0, %v1608_v63  ;;  %2188 = vmatpush.bf16.msrb.mxu3 %v4335_v0  ;;  %2202 = vmatpush.bf16.msra.mxu0 %v4339_v35  ;;  %v4837_v63 = vld [vmem:[#allocation11 + $0x128] sm:$0xf0] }
 0x779   :  { %v1624_v10 = vmul.f32 %v1616_v48, %v1312_v12  ;;  %v4319_v12 = vor.u32 %v4837_v63, %v4318_v6  ;;  %v4320_v48 = vld [vmem:[#allocation11 + $0x12c] sm:$0xf0] }
 0x77b   :  { %v1628_v23 = vpack.c.bf16 %v1624_v10, %v1620_v11  ;;  %v4326_v11 = vld [vmem:[#allocation11 + $0x128] sm:$0xf]  ;;  %v4838_v10 = vld [vmem:[#allocation11 + $0x130] sm:$0xf0] }
 0x77d   :  { %1913 = vmatmul.bf16.vlgmr.msra.gmra.mxu3 %v1628_v23  ;;  %v4323_v23 = vor.u32 %v4836_v9, %v4320_v48  ;;  %v4975_v48 = vld [vmem:[#allocation21] ss:$0 sm:$0xff] }
 0x77f   :  { %2189 = vmatpush.bf16.msrb.mxu3 %v4323_v23 }
 0x7d7   :  { %v1928_v24 = vpop.f32.mrf.mxu0 }
 0x7df   :  { %v1930_v30 = vpop.f32.mrf.mxu0 }
 0x7e2   :  { %v1942_v46 = vpop.f32.mrf.mxu1 }
 0x7ea   :  { %v1944_v25 = vpop.f32.mrf.mxu1 }
 0x7f4   :  { %v1900_v2 = vpop.f32.mrf.mxu2 }
 0x7f5   :  { %v1901_v19 = vadd.f32 %v4974_v7, %v1900_v2  ;;  %v4327_v2 = vor.u32 %v4838_v10, %v4326_v11 }
 0x7f7   :  { %2203 = vmatpush.bf16.msra.mxu0 %v4327_v2 }
 0x7fc   :  { %v1902_v27 = vpop.f32.mrf.mxu2 }
 0x7fd   :  { %v1903_v1 = vadd.f32 %v4974_v7, %v1902_v27  ;;  %v4306_v7 = vld [vmem:[#allocation11 + $0x108] sm:$0xf]  ;;  %v4835_v27 = vld [vmem:[#allocation11 + $0x118] sm:$0xf0] }
 0x800   :  { %v1914_v51 = vpop.f32.mrf.mxu3 }
 0x801   :  { %v1915_v18 = vadd.f32 %v1914_v51, %v1901_v19  ;;  %v4834_v19 = vld [vmem:[#allocation11 + $0x110] sm:$0xf0] }
 0x802   :  { %v4307_v51 = vor.u32 %v4834_v19, %v4306_v7  ;;  %v4976_v7 = vld [vmem:[%s6610_s15] ss:$0 sm:$0xff] }
 0x803   :  { %v1929_v59 = vadd.f32 %v1928_v24, %v1915_v18  ;;  %v4833_v24 = vld [vmem:[#allocation11 + $0x10c] sm:$0xf]  ;;  %v4308_v18 = vld [vmem:[#allocation11 + $0x114] sm:$0xf0] }
 0x805   :  { %v1943_v28 = vadd.f32 %v1942_v46, %v1929_v59  ;;  %v4314_v46 = vld [vmem:[#allocation11 + $0x110] sm:$0xf]  ;;  %v4311_v59 = vor.u32 %v4833_v24, %v4308_v18  ;;  %v2036_v18 = vld [vmem:[#allocation12 + $0x3] sm:$0x7] }
 0x807   :  { %v1947_v40 = vadd.f32 %v1943_v28, %v5882_v55  ;;  %2190 = vmatpush.bf16.msrb.mxu3 %v4311_v59  ;;  %v4294_v28 = vld [vmem:[#allocation11 + $0xf0] sm:$0xf]  ;;  %v2038_v59 = vperm.slane %v2036_v18, 0 }
 0x808   :  { %v1916_v29 = vpop.f32.mrf.mxu3 }
 0x809   :  { %v1917_v47 = vadd.f32 %v1916_v29, %v1903_v1  ;;  %1951 = vadd.xlane.f32.xlu2 %v1947_v40  ;;  %v4315_v1 = vor.u32 %v4835_v27, %v4314_v46  ;;  %v4830_v29 = vld [vmem:[#allocation11 + $0xf4] sm:$0xf]  ;;  %v2040_v46 = vperm.slane %v2036_v18, 2 }
 0x80b   :  { %v1931_v44 = vadd.f32 %v1930_v30, %v1917_v47  ;;  %2204 = vmatpush.bf16.msra.mxu0 %v4315_v1  ;;  %v4296_v30 = vld [vmem:[#allocation11 + $0xfc] sm:$0xf0]  ;;  %v2039_v1 = vperm.slane %v2036_v18, 1 }
 0x80d   :  { %v1945_v17 = vadd.f32 %v1944_v25, %v1931_v44  ;;  %v4302_v44 = vld [vmem:[#allocation11 + $0xf8] sm:$0xf]  ;;  %v4832_v25 = vld [vmem:[#allocation11 + $0x100] sm:$0xf0] }
 0x80f   :  { %v1948_v58 = vadd.f32 %v1945_v17, %v5884_v49  ;;  %v4354_v49 = vld [vmem:[#allocation11 + $0x168] sm:$0xf]  ;;  %v4299_v17 = vor.u32 %v4830_v29, %v4296_v30 }
 0x810   :  { %v4355_v34 = vor.u32 %v4846_v22, %v4354_v49  ;;  %v4290_v49 = vld [vmem:[#allocation11 + $0xe0] sm:$0xf]  ;;  %v4829_v22 = vld [vmem:[#allocation11 + $0xe8] sm:$0xf0] }
 0x811   :  { %1953 = vadd.xlane.f32.xlu0 %v1948_v58  ;;  %2191 = vmatpush.bf16.msrb.mxu3 %v4299_v17  ;;  %v4291_v36 = vor.u32 %v4829_v22, %v4290_v49 }
 0x812   :  { %2172 = vmatpush.bf16.msra.mxu2 %v4355_v34 }
 0x816   :  { %2173 = vmatpush.bf16.msra.mxu2 %v4343_v5  ;;  %v4271_v5 = vor.u32 %v4825_v60, %v4270_v31 }
 0x81a   :  { %2174 = vmatpush.bf16.msra.mxu2 %v4331_v37 }
 0x81e   :  { %2175 = vmatpush.bf16.msra.mxu2 %v4319_v12 }
 0x822   :  { %2176 = vmatpush.bf16.msra.mxu2 %v4307_v51 }
 0x87c   :  { %v1952_v32 = vpop.xlane.xlu2 %1951 }
 0x87d   :  { %v1955_v16 = vmul.f32 %v1952_v32, %v5789_v8  ;;  %v4282_v32 = vld [vmem:[#allocation11 + $0xd8] sm:$0xf] }
 0x87f   :  { %v6181_v54 = vsub.f32 %v1947_v40, %v1955_v16  ;;  %v4831_v40 = vld [vmem:[#allocation11 + $0xf8] sm:$0xf0]  ;;  %v4828_v16 = vld [vmem:[#allocation11 + $0xe0] sm:$0xf0] }
 0x880   :  { %v4295_v47 = vor.u32 %v4831_v40, %v4294_v28 }
 0x881   :  { %v1959_v33 = vmul.f32 %v6181_v54, %v6181_v54 }
 0x882   :  { %2177 = vmatpush.bf16.msra.mxu2 %v4295_v47 }
 0x883   :  { %1961 = vadd.xlane.f32.xlu1 %v1959_v33  ;;  %v4827_v33 = vld [vmem:[#allocation11 + $0xdc] sm:$0xf] }
 0x884   :  { %v1954_v55 = vpop.xlane.xlu0 %1953 }
 0x885   :  { %v1956_v39 = vmul.f32 %v1954_v55, %v5789_v8 }
 0x887   :  { %v6186_v4 = vsub.f32 %v1948_v58, %v1956_v39  ;;  %v4303_v58 = vor.u32 %v4832_v25, %v4302_v44  ;;  %v4283_v39 = vor.u32 %v4828_v16, %v4282_v32 }
 0x889   :  { %v1960_v20 = vmul.f32 %v6186_v4, %v6186_v4  ;;  %2205 = vmatpush.bf16.msra.mxu0 %v4303_v58  ;;  %2178 = vmatpush.bf16.msra.mxu2 %v4283_v39 }
 0x88b   :  { %1963 = vadd.xlane.f32.xlu2 %v1960_v20  ;;  %v4284_v20 = vld [vmem:[#allocation11 + $0xe4] sm:$0xf0] }
 0x88c   :  { %v4287_v34 = vor.u32 %v4827_v33, %v4284_v20 }
 0x88d   :  { %2206 = vmatpush.bf16.msra.mxu0 %v4291_v36  ;;  %2179 = vmatpush.bf16.msra.mxu2 %v4271_v5 }
 0x88e   :  { %2192 = vmatpush.bf16.msrb.mxu3 %v4287_v34 }
 0x891   :  { %2207 = vmatpush.bf16.msra.mxu0 %v4279_v41 }
 0x892   :  { %2193 = vmatpush.bf16.msrb.mxu3 %v4275_v56 }
 0x8f6   :  { %v1962_v55 = vpop.xlane.xlu1 %1961 }
 0x8f7   :  { %v1965_v50 = vmul.f32 %v1962_v55, %v5789_v8 }
 0x8f9   :  { %v1967_v43 = vadd.f32 1e-12, %v1965_v50 }
 0x8fb   :  { %5043 = vrsqrt.f32 %v1967_v43  ;;  %vm1975_vm12 = vweird.f32 %v1967_v43 }
 0x8fe   :  { %v1964_v45 = vpop.xlane.xlu2 %1963 }
 0x8ff   :  { %v1966_v52 = vmul.f32 %v1964_v45, %v5789_v8 }
 0x901   :  { %v5044_v57 = vpop.eup %5043  ;;  %v1968_v26 = vadd.f32 1e-12, %v1966_v52 }
 0x902   :  { %v1970_v53 = vmul.f32 %v5044_v57, %v1967_v43  ;;  %vm1976_vm11 = vweird.f32 %v5044_v57 }
 0x903   :  { %5045 = vrsqrt.f32 %v1968_v26  ;;  %vm1977_vm14 = vmor %vm1975_vm12, %vm1976_vm11  ;;  %vm1985_vm0 = vweird.f32 %v1968_v26 }
 0x904   :  { %v1971_v62 = vmul.f32 %v5044_v57, %v1970_v53 }
 0x906   :  { %v1972_v37 = vmul.f32 0.5, %v1971_v62 }
 0x908   :  { %v1973_v61 = vsub.f32 1.5, %v1972_v37  ;;  %v5109_v37 = vld [vmem:[#allocation6] ss:$0 sm:$0xff] }
 0x909   :  { %v5046_v15 = vpop.eup %5045 }
 0x90a   :  { %v1974_v3 = vmul.f32 %v5044_v57, %v1973_v61  ;;  %v1980_v0 = vmul.f32 %v5046_v15, %v1968_v26  ;;  %vm1986_vm15 = vweird.f32 %v5046_v15 }
 0x90b   :  { %vm1987_vm1 = vmor %vm1985_vm0, %vm1986_vm15 }
 0x90c   :  { %v1981_v35 = vmul.f32 %v5046_v15, %v1980_v0  ;;  %v1978_v6 = vsel %vm1977_vm14, %v5044_v57, %v1974_v3 }
 0x90d   :  { %v1989_v12 = vmul.f32 %v1978_v6, %v6181_v54  ;;  %v5110_v6 = vld [vmem:[#allocation6 + $0x1] ss:$0 sm:$0xff] }
 0x90e   :  { %v1982_v63 = vmul.f32 0.5, %v1981_v35 }
 0x90f   :  { %v1994_v2 = vmul.f32 %v4975_v48, %v1989_v12 }
 0x910   :  { %v1983_v9 = vsub.f32 1.5, %v1982_v63 }
 0x911   :  { %v6197_v24 = vadd.f32 %v4976_v7, %v1994_v2 }
 0x912   :  { %v1984_v11 = vmul.f32 %v5046_v15, %v1983_v9 }
 0x914   :  { %v1988_v10 = vsel %vm1987_vm1, %v5046_v15, %v1984_v11 }
 0x915   :  { %v1990_v23 = vmul.f32 %v1988_v10, %v6186_v4 }
 0x917   :  { %v1995_v19 = vmul.f32 %v4975_v48, %v1990_v23 }
 0x919   :  { %v6199_v51 = vadd.f32 %v4976_v7, %v1995_v19 }
 0x91b   :  { %v2001_v54 = vpack.c.bf16 %v6199_v51, %v6197_v24 }
 0x91d   :  { %2180 = vmatmul.bf16.vlgmr.msra.gmra.mxu2 %v2001_v54  ;;  %2194 = vmatmul.bf16.vlgmr.msrb.gmra.mxu3 %v2001_v54 }
 0x91e   :  { %2208 = vmatmul.bf16.vlgmr.msra.gmra.mxu0 %v2001_v54 }
 0x99b   :  { %v2209_v27 = vpop.f32.mrf.mxu0 }
 0x99c   :  { %v2210_v4 = vadd.f32 %v2209_v27, %v2040_v46 }
 0x99e   :  { %v6203_v28 = vpack.c.bf16 %v2210_v4, %v2210_v4 }
 0x9a0   :  { %v2316_v40 = vsel %vm700_vm8, %v6203_v28, 0  ;;  %v2181_v29 = vpop.f32.mrf.mxu2  ;;  %v2195_v47 = vpop.f32.mrf.mxu3 }
 0x9a1   :  { %v2182_v30 = vadd.f32 %v2181_v29, %v2038_v59  ;;  %v2196_v44 = vadd.f32 %v2195_v47, %v2039_v1  ;;  %2325 = vmatpush.bf16.msra.mxu3 %v2316_v40 }
 0x9a3   :  { %v2214_v25 = vpack.c.bf16 %v2182_v30, %v2182_v30  ;;  %v2216_v17 = vpack.c.bf16 %v2196_v44, %v2196_v44  ;;  %v2211_v58 = vpop.f32.mrf.mxu0 }
 0x9a4   :  { %v2212_v32 = vadd.f32 %v2211_v58, %v2040_v46 }
 0x9a5   :  { %v2224_v16 = vsel %vm597_vm7, %v2216_v17, 0  ;;  %v2358_v33 = vunpack.c.l.b16 %v2216_v17  ;;  %v2353_v55 = vunpack.c.l.b16 %v2214_v25  ;;  %v2465_v17 = vunpack.c.l.b16 %v6203_v28 }
 0x9a6   :  { %v6208_v39 = vpack.c.bf16 %v2212_v32, %v2212_v32  ;;  %2233 = vmatpush.bf16.xpose.msrb.mxu1 %v2224_v16 }
 0x9a7   :  { %v2359_v20 = vpack.c.b16 %v2358_v33, %v2358_v33  ;;  %v2354_v49 = vpack.c.b16 %v2353_v55, %v2353_v55  ;;  %v2466_v58 = vpack.c.b16 %v2465_v17, %v2465_v17 }
 0x9a8   :  { %v2335_v22 = vsel %vm700_vm8, %v6208_v39, 0  ;;  %v2183_v50 = vpop.f32.mrf.mxu2  ;;  %v2197_v34 = vpop.f32.mrf.mxu3 }
 0x9a9   :  { %v2184_v36 = vadd.f32 %v2183_v50, %v2038_v59  ;;  %v2198_v31 = vadd.f32 %v2197_v34, %v2039_v1  ;;  %2344 = vmatpush.bf16.msrb.mxu0 %v2335_v22  ;;  %2360 = vrot.lane.b32.xlu0 %v2359_v20, %s5585_s4 }
 0x9aa   :  { %2355 = vrot.lane.b32.xlu2 %v2354_v49, %s5585_s4 }
 0x9ab   :  { %v2215_v60 = vpack.c.bf16 %v2184_v36, %v2184_v36  ;;  %v2217_v13 = vpack.c.bf16 %v2198_v31, %v2198_v31 }
 0x9ad   :  { %v2243_v14 = vsel %vm597_vm7, %v2217_v13, 0  ;;  %4364 = vmatmul.msk.bf16.vlgmr.msrb.gmra.mxu1 %vm597_vm7, %v2214_v25  ;;  %v2387_v38 = vunpack.c.l.b16 %v2217_v13  ;;  %v2382_v42 = vunpack.c.l.b16 %v2215_v60 }
 0x9ae   :  { %2252 = vmatpush.bf16.xpose.msrb.mxu2 %v2243_v14 }
 0x9af   :  { %v2388_v43 = vpack.c.b16 %v2387_v38, %v2387_v38  ;;  %v2383_v5 = vpack.c.b16 %v2382_v42, %v2382_v42 }
 0x9b1   :  { %2389 = vrot.lane.b32.xlu1 %v2388_v43, %s5585_s4  ;;  %2384 = vrot.lane.b32.xlu0 %v2383_v5, %s5585_s4 }
 0x9b5   :  { %4365 = vmatmul.msk.bf16.vlgmr.msrb.gmra.mxu2 %vm597_vm7, %v2215_v60 }
 0xa04   :  { %v2356_v45 = vpop.permute.xlu2 %2355 }
 0xa1b   :  { %v2361_v56 = vpop.permute.xlu0 %2360 }
 0xa1c   :  { %v2366_v41 = vsel %vm597_vm7, %v2361_v56, 0 }
 0xa1d   :  { %2375 = vmatpush.bf16.xpose.msra.mxu1 %v2366_v41 }
 0xa23   :  { %v2390_v52 = vpop.permute.xlu1 %2389  ;;  %v2385_v53 = vpop.permute.xlu0 %2384 }
 0xa24   :  { %v2395_v57 = vsel %vm597_vm7, %v2390_v52, 0  ;;  %4368 = vmatmul.msk.bf16.vlgmr.msra.gmra.mxu1 %vm597_vm7, %v2356_v45 }
 0xa25   :  { %2404 = vmatpush.bf16.xpose.msra.mxu2 %v2395_v57 }
 0xa2a   :  { %v2235_v26 = vpop.f32.mrf.mxu1 }
 0xa2b   :  { %v2258_v62 = vmul.f32 0.125, %v2235_v26 }
 0xa2c   :  { %4369 = vmatmul.msk.bf16.vlgmr.msra.gmra.mxu2 %vm597_vm7, %v2385_v53 }
 0xa2d   :  { %v2260_v61 = vadd.f32 %v5109_v37, %v2258_v62 }
 0xa2f   :  { %v2262_v15 = vsel %vm646_vm9, %v2260_v61, -inf }
 0xa30   :  { %2263 = vmax.xlane.f32.xlu1 %v2262_v15 }
 0xa32   :  { %v2237_v3 = vpop.f32.mrf.mxu1 }
 0xa38   :  { %v2254_v0 = vpop.f32.mrf.mxu2 }
 0xa39   :  { %v2259_v35 = vmul.f32 0.125, %v2254_v0 }
 0xa3b   :  { %v2261_v63 = vadd.f32 %v5110_v6, %v2259_v35 }
 0xa3d   :  { %v2265_v9 = vsel %vm646_vm9, %v2261_v63, -inf }
 0xa3e   :  { %2266 = vmax.xlane.f32.xlu0 %v2265_v9 }
 0xa40   :  { %v2256_v12 = vpop.f32.mrf.mxu2 }
 0xaa1   :  { %v2377_v48 = vpop.f32.mrf.mxu1 }
 0xaa2   :  { %v2410_v11 = vmul.f32 0.125, %v2377_v48 }
 0xaa3   :  { %v2264_v10 = vpop.xlane.xlu1 %2263 }
 0xaa4   :  { %v2268_v23 = vsub.f32 %v2260_v61, %v2264_v10  ;;  %v2412_v2 = vadd.f32 %v5109_v37, %v2410_v11  ;;  %v2489_v61 = vunpack.c.l.b16 %v6208_v39 }
 0xaa6   :  { %v2270_v7 = vmul.f32 1.442695, %v2268_v23  ;;  %v2414_v19 = vsel %vm646_vm9, %v2412_v2, -inf }
 0xaa7   :  { %2415 = vmax.xlane.f32.xlu2 %v2414_v19 }
 0xaa8   :  { %5047 = vpow2.f32 %v2270_v7 }
 0xaa9   :  { %v2379_v54 = vpop.f32.mrf.mxu1 }
 0xaae   :  { %v5048_v18 = vpop.eup %5047 }
 0xaaf   :  { %v2406_v46 = vpop.f32.mrf.mxu2  ;;  %v2274_v27 = vsel %vm646_vm9, %v5048_v18, 0.0 }
 0xab0   :  { %v2411_v4 = vmul.f32 0.125, %v2406_v46  ;;  %2275 = vadd.xlane.f32.xlu0 %v2274_v27 }
 0xab1   :  { %v2267_v59 = vpop.xlane.xlu0 %2266 }
 0xab2   :  { %v2269_v1 = vsub.f32 %v2261_v63, %v2267_v59  ;;  %v2413_v40 = vadd.f32 %v5110_v6, %v2411_v4  ;;  %v2490_v6 = vpack.c.b16 %v2489_v61, %v2489_v61 }
 0xab4   :  { %v2272_v29 = vmul.f32 1.442695, %v2269_v1  ;;  %v2417_v47 = vsel %vm646_vm9, %v2413_v40, -inf }
 0xab5   :  { %2418 = vmax.xlane.f32.xlu1 %v2417_v47 }
 0xab6   :  { %5049 = vpow2.f32 %v2272_v29 }
 0xab7   :  { %v2408_v30 = vpop.f32.mrf.mxu2 }
 0xabc   :  { %v5050_v44 = vpop.eup %5049 }
 0xabd   :  { %v2277_v25 = vsel %vm646_vm9, %v5050_v44, 0.0 }
 0xabe   :  { %2278 = vadd.xlane.f32.xlu2 %v2277_v25 }
 0xad6   :  { %2467 = vrot.lane.b32.xlu2 %v2466_v58, %s5585_s4 }
 0xb1a   :  { %v2416_v32 = vpop.xlane.xlu2 %2415 }
 0xb1b   :  { %v2420_v16 = vsub.f32 %v2412_v2, %v2416_v32 }
 0xb1d   :  { %v2422_v33 = vmul.f32 1.442695, %v2420_v16 }
 0xb1f   :  { %5051 = vpow2.f32 %v2422_v33 }
 0xb23   :  { %v2276_v55 = vpop.xlane.xlu0 %2275 }
 0xb24   :  { %5053 = vrcp.f32 %v2276_v55  ;;  %v2291_v60 = vand.u32 2147483648, %v2276_v55  ;;  %v2289_v14 = vand.u32 2147483647, %v2276_v55  ;;  %vm2285_vm3 = vweird.f32 %v2276_v55 }
 0xb25   :  { %v6231_v20 = vpop.eup %5051 }
 0xb26   :  { %v2426_v49 = vsel %vm646_vm9, %v6231_v20, 0.0  ;;  %v2292_v43 = vor.u32 1.1754944e-38, %v2291_v60  ;;  %vm2290_vm5 = vcmp.eq.f32.partialorder %v2289_v14, 8.507059e+37  ;;  %v4855_v60 = vld [vmem:[#allocation14 + $0x78] sm:$0xff] }
 0xb27   :  { %2427 = vadd.xlane.f32.xlu1 %v2426_v49  ;;  %2595 = vmatpush.bf16.msrb.mxu1 %v4855_v60  ;;  %v4879_v60 = vld [vmem:[#allocation18 + $0x1b4] sm:$0xf0] }
 0xb28   :  { %v2419_v22 = vpop.xlane.xlu1 %2418 }
 0xb29   :  { %v2421_v50 = vsub.f32 %v2413_v40, %v2419_v22 }
 0xb2a   :  { %v5054_v34 = vpop.eup %5053 }
 0xb2b   :  { %v2281_v36 = vmul.f32 %v5054_v34, %v2276_v55  ;;  %v2424_v28 = vmul.f32 1.442695, %v2421_v50  ;;  %vm2286_vm2 = vweird.f32 %v5054_v34 }
 0xb2c   :  { %vm2287_vm4 = vmor %vm2285_vm3, %vm2286_vm2 }
 0xb2d   :  { %v2282_v31 = vsub.f32 1.0, %v2281_v36  ;;  %5055 = vpow2.f32 %v2424_v28 }
 0xb2f   :  { %v2283_v13 = vmul.f32 %v5054_v34, %v2282_v31 }
 0xb31   :  { %v2284_v38 = vadd.f32 %v5054_v34, %v2283_v13  ;;  %v2279_v42 = vpop.xlane.xlu2 %2278  ;;  %v4854_v13 = vld [vmem:[#allocation14 + $0x70] sm:$0xff] }
 0xb32   :  { %5057 = vrcp.f32 %v2279_v42  ;;  %v2306_v3 = vand.u32 2147483648, %v2279_v42  ;;  %v2304_v35 = vand.u32 2147483647, %v2279_v42  ;;  %vm2300_vm10 = vweird.f32 %v2279_v42  ;;  %2596 = vmatpush.bf16.msrb.mxu1 %v4854_v13 }
 0xb33   :  { %v6235_v5 = vpop.eup %5055  ;;  %v2288_v56 = vsel %vm2287_vm4, %v5054_v34, %v2284_v38 }
 0xb34   :  { %v2293_v41 = vsel %vm2290_vm5, %v2292_v43, %v2288_v56  ;;  %v2429_v45 = vsel %vm646_vm9, %v6235_v5, 0.0  ;;  %v2307_v9 = vor.u32 1.1754944e-38, %v2306_v3  ;;  %vm2305_vm12 = vcmp.eq.f32.partialorder %v2304_v35, 8.507059e+37  ;;  %v4852_v56 = vld [vmem:[#allocation14 + $0x60] sm:$0xff] }
 0xb35   :  { %v2294_v52 = vmul.f32 %v5048_v18, %v2293_v41  ;;  %2430 = vadd.xlane.f32.xlu0 %v2429_v45  ;;  %v4851_v41 = vld [vmem:[#allocation14 + $0x58] sm:$0xff]  ;;  %v4850_v45 = vld [vmem:[#allocation14 + $0x50] sm:$0xff] }
 0xb37   :  { %v2310_v57 = vpack.c.bf16 %v2294_v52, %v2294_v52  ;;  %v4849_v52 = vld [vmem:[#allocation14 + $0x48] sm:$0xff] }
 0xb38   :  { %v5058_v26 = vpop.eup %5057 }
 0xb39   :  { %v2296_v53 = vmul.f32 %v5058_v26, %v2279_v42  ;;  %4366 = vmatmul.msk.bf16.vlgmr.msra.gmra.mxu3 %vm646_vm9, %v2310_v57  ;;  %v2468_v62 = vpop.permute.xlu2 %2467  ;;  %vm2301_vm6 = vweird.f32 %v5058_v26  ;;  %v4848_v57 = vld [vmem:[#allocation14 + $0x40] sm:$0xff] }
 0xb3a   :  { %v2473_v37 = vsel %vm700_vm8, %v2468_v62, 0  ;;  %vm2302_vm11 = vmor %vm2300_vm10, %vm2301_vm6 }
 0xb3b   :  { %v2297_v15 = vsub.f32 1.0, %v2296_v53  ;;  %2482 = vmatpush.bf16.msrb.mxu3 %v2473_v37 }
 0xb3d   :  { %v2298_v0 = vmul.f32 %v5058_v26, %v2297_v15  ;;  %v4977_v15 = vld [vmem:[%s6641_s21 + $0x1] ss:$0 sm:$0xff]  ;;  %s3853_s21 = sshll.u32 %s6652_s8, 4  ;;  %s3854_s21 = int_to_ptr.hbm [resolvable:$true] %s3853_s21 }
 0xb3f   :  { %v2299_v63 = vadd.f32 %v5058_v26, %v2298_v0 }
 0xb40   :  { %2491 = vrot.lane.b32.xlu1 %v2490_v6, %s5585_s4 }
 0xb41   :  { %v2303_v12 = vsel %vm2302_vm11, %v5058_v26, %v2299_v63 }
 0xb42   :  { %v2308_v48 = vsel %vm2305_vm12, %v2307_v9, %v2303_v12 }
 0xb43   :  { %v2309_v11 = vmul.f32 %v5050_v44, %v2308_v48 }
 0xb45   :  { %v2311_v10 = vpack.c.bf16 %v2309_v11, %v2309_v11 }
 0xb47   :  { %4367 = vmatmul.msk.bf16.vlgmr.msrb.gmra.mxu0 %vm646_vm9, %v2311_v10 }
 0xb9a   :  { %v2428_v39 = vpop.xlane.xlu1 %2427 }
 0xb9b   :  { %5059 = vrcp.f32 %v2428_v39  ;;  %v2443_v19 = vand.u32 2147483648, %v2428_v39  ;;  %v2441_v18 = vand.u32 2147483647, %v2428_v39  ;;  %vm2437_vm15 = vweird.f32 %v2428_v39 }
 0xb9d   :  { %v2444_v4 = vor.u32 1.1754944e-38, %v2443_v19  ;;  %vm2442_vm1 = vcmp.eq.f32.partialorder %v2441_v18, 8.507059e+37  ;;  %v4884_v19 = vld [vmem:[#allocation18 + $0x1e4] sm:$0xf]  ;;  %v4522_v18 = vld [vmem:[#allocation18 + $0x1f0] sm:$0xf0] }
 0xba1   :  { %v5060_v23 = vpop.eup %5059 }
 0xba2   :  { %v2433_v2 = vmul.f32 %v5060_v23, %v2428_v39  ;;  %vm2438_vm14 = vweird.f32 %v5060_v23 }
 0xba3   :  { %vm2439_vm0 = vmor %vm2437_vm15, %vm2438_vm14 }
 0xba4   :  { %v2434_v7 = vsub.f32 1.0, %v2433_v2 }
 0xba6   :  { %v2435_v54 = vmul.f32 %v5060_v23, %v2434_v7  ;;  %v4886_v7 = vld [vmem:[#allocation18 + $0x1ec] sm:$0xf0] }
 0xba8   :  { %v2436_v46 = vadd.f32 %v5060_v23, %v2435_v54  ;;  %v2431_v27 = vpop.xlane.xlu0 %2430 }
 0xba9   :  { %5061 = vrcp.f32 %v2431_v27  ;;  %v2458_v17 = vand.u32 2147483648, %v2431_v27  ;;  %v2456_v16 = vand.u32 2147483647, %v2431_v27  ;;  %vm2452_vm3 = vweird.f32 %v2431_v27 }
 0xbaa   :  { %v2440_v59 = vsel %vm2439_vm0, %v5060_v23, %v2436_v46  ;;  %v4528_v46 = vld [vmem:[#allocation18 + $0x1e8] sm:$0xf] }
 0xbab   :  { %v2445_v1 = vsel %vm2442_vm1, %v2444_v4, %v2440_v59  ;;  %v2459_v55 = vor.u32 1.1754944e-38, %v2458_v17  ;;  %vm2457_vm5 = vcmp.eq.f32.partialorder %v2456_v16, 8.507059e+37  ;;  %v4525_v4 = vor.u32 %v4884_v19, %v4522_v18  ;;  %v4506_v17 = vld [vmem:[#allocation18 + $0x1d0] sm:$0xf0]  ;;  %v4864_v19 = vld [vmem:[#allocation18 + $0x144] sm:$0xf] }
 0xbac   :  { %v2446_v40 = vmul.f32 %v6231_v20, %v2445_v1  ;;  %v4885_v1 = vld [vmem:[#allocation18 + $0x1ec] sm:$0xf]  ;;  %v4442_v18 = vld [vmem:[#allocation18 + $0x150] sm:$0xf0] }
 0xbad   :  { %2884 = vmatpush.bf16.msra.mxu3 %v4525_v4  ;;  %v4445_v4 = vor.u32 %v4864_v19, %v4442_v18 }
 0xbae   :  { %v2462_v29 = vpack.c.bf16 %v2446_v40, %v2446_v40  ;;  %v4530_v40 = vld [vmem:[#allocation18 + $0x1f8] sm:$0xf0] }
 0xbaf   :  { %v5062_v47 = vpop.eup %5061 }
 0xbb0   :  { %v2448_v30 = vmul.f32 %v5062_v47, %v2431_v27  ;;  %4370 = vmatmul.msk.bf16.vlgmr.msrb.gmra.mxu3 %vm646_vm9, %v2462_v29  ;;  %vm2453_vm2 = vweird.f32 %v5062_v47  ;;  %v4887_v27 = vld [vmem:[#allocation18 + $0x1f4] sm:$0xf0]  ;;  %v4533_v29 = vor.u32 %v4885_v1, %v4530_v40  ;;  %v4865_v1 = vld [vmem:[#allocation18 + $0x14c] sm:$0xf]  ;;  %v4450_v40 = vld [vmem:[#allocation18 + $0x158] sm:$0xf0] }
 0xbb1   :  { %vm2454_vm4 = vmor %vm2452_vm3, %vm2453_vm2  ;;  %v4529_v59 = vor.u32 %v4887_v27, %v4528_v46  ;;  %v4448_v46 = vld [vmem:[#allocation18 + $0x148] sm:$0xf]  ;;  %v4867_v27 = vld [vmem:[#allocation18 + $0x154] sm:$0xf0] }
 0xbb2   :  { %v2449_v44 = vsub.f32 1.0, %v2448_v30  ;;  %v2492_v25 = vpop.permute.xlu1 %2491  ;;  %v4882_v30 = vld [vmem:[#allocation18 + $0x1cc] sm:$0xf0] }
 0xbb3   :  { %v2497_v58 = vsel %vm700_vm8, %v2492_v25, 0 }
 0xbb4   :  { %v2450_v32 = vmul.f32 %v5062_v47, %v2449_v44  ;;  %2506 = vmatpush.bf16.msra.mxu0 %v2497_v58  ;;  %v4880_v44 = vld [vmem:[#allocation18 + $0x1c4] sm:$0xf]  ;;  %v4512_v58 = vld [vmem:[#allocation18 + $0x1c8] sm:$0xf] }
 0xbb5   :  { %v4509_v16 = vor.u32 %v4880_v44, %v4506_v17  ;;  %v4860_v44 = vld [vmem:[#allocation18 + $0x124] sm:$0xf] }
 0xbb6   :  { %v2451_v33 = vadd.f32 %v5062_v47, %v2450_v32  ;;  %v4883_v32 = vld [vmem:[#allocation18 + $0x1d4] sm:$0xf0] }
 0xbb7   :  { %2885 = vmatpush.bf16.msra.mxu3 %v4509_v16  ;;  %v4863_v16 = vld [vmem:[#allocation18 + $0x134] sm:$0xf0] }
 0xbb8   :  { %v2455_v49 = vsel %vm2454_vm4, %v5062_v47, %v2451_v33  ;;  %2898 = vmatpush.bf16.msrb.mxu0 %v4529_v59  ;;  %v4504_v47 = vld [vmem:[#allocation18 + $0x1c0] sm:$0xf]  ;;  %v4513_v33 = vor.u32 %v4883_v32, %v4512_v58  ;;  %v4449_v59 = vor.u32 %v4867_v27, %v4448_v46  ;;  %v4426_v58 = vld [vmem:[#allocation18 + $0x130] sm:$0xf0]  ;;  %v4432_v32 = vld [vmem:[#allocation18 + $0x128] sm:$0xf] }
 0xbb9   :  { %v2460_v20 = vsel %vm2457_vm5, %v2459_v55, %v2455_v49  ;;  %v4505_v25 = vor.u32 %v4882_v30, %v4504_v47  ;;  %v4881_v55 = vld [vmem:[#allocation18 + $0x1cc] sm:$0xf]  ;;  %v4514_v49 = vld [vmem:[#allocation18 + $0x1d8] sm:$0xf0]  ;;  %v4424_v47 = vld [vmem:[#allocation18 + $0x120] sm:$0xf] }
 0xbba   :  { %v2461_v22 = vmul.f32 %v6235_v5, %v2460_v20  ;;  %v4853_v5 = vld [vmem:[#allocation14 + $0x68] sm:$0xff]  ;;  %v4517_v20 = vor.u32 %v4881_v55, %v4514_v49  ;;  %v4862_v30 = vld [vmem:[#allocation18 + $0x12c] sm:$0xf0]  ;;  %v4429_v55 = vor.u32 %v4860_v44, %v4426_v58  ;;  %v4433_v49 = vor.u32 %v4863_v16, %v4432_v32 }
 0xbbb   :  { %2597 = vmatpush.bf16.msrb.mxu1 %v4853_v5  ;;  %v4472_v5 = vld [vmem:[#allocation18 + $0x180] sm:$0xf]  ;;  %v4425_v17 = vor.u32 %v4862_v30, %v4424_v47 }
 0xbbc   :  { %v2327_v50 = vpop.f32.mrf.mxu3  ;;  %v2463_v34 = vpack.c.bf16 %v2461_v22, %v2461_v22  ;;  %2899 = vmatpush.bf16.msrb.mxu0 %v4513_v33  ;;  %v4488_v22 = vld [vmem:[#allocation18 + $0x1a0] sm:$0xf] }
 0xbbd   :  { %2350 = vst.msk [vmem:[#allocation2] sm:$0xff] %vm597_vm7, %v2327_v50  ;;  %v4878_v50 = vld [vmem:[#allocation18 + $0x1ac] sm:$0xf0] }
 0xbbe   :  { %4371 = vmatmul.msk.bf16.vlgmr.msra.gmra.mxu0 %vm646_vm9, %v2463_v34  ;;  %v4876_v34 = vld [vmem:[#allocation18 + $0x1a4] sm:$0xf] }
 0xbbf   :  { %2598 = vmatpush.bf16.msrb.mxu1 %v4852_v56  ;;  %v4874_v56 = vld [vmem:[#allocation18 + $0x18c] sm:$0xf0] }
 0xbc3   :  { %2599 = vmatpush.bf16.msrb.mxu1 %v4851_v41  ;;  %v4872_v41 = vld [vmem:[#allocation18 + $0x184] sm:$0xf] }
 0xbc4   :  { %v2329_v36 = vpop.f32.mrf.mxu3  ;;  %v2346_v28 = vpop.f32.mrf.mxu0 }
 0xbc5   :  { %2351 = vst.msk [vmem:[#allocation2 + $0x8] sm:$0xff] %vm597_vm7, %v2346_v28  ;;  %v4489_v36 = vor.u32 %v4878_v50, %v4488_v22  ;;  %v4490_v28 = vld [vmem:[#allocation18 + $0x1b0] sm:$0xf0]  ;;  %v4434_v22 = vld [vmem:[#allocation18 + $0x138] sm:$0xf0] }
 0xbc6   :  { %v4493_v13 = vor.u32 %v4876_v34, %v4490_v28  ;;  %v4408_v50 = vld [vmem:[#allocation18 + $0x100] sm:$0xf]  ;;  %v4856_v28 = vld [vmem:[#allocation18 + $0x104] sm:$0xf] }
 0xbc7   :  { %2600 = vmatpush.bf16.msrb.mxu1 %v4850_v45  ;;  %v4473_v45 = vor.u32 %v4874_v56, %v4472_v5  ;;  %v4857_v5 = vld [vmem:[#allocation18 + $0x10c] sm:$0xf]  ;;  %v4418_v56 = vld [vmem:[#allocation18 + $0x118] sm:$0xf0] }
 0xbc8   :  { %2886 = vmatpush.bf16.msra.mxu3 %v4493_v13 }
 0xbcb   :  { %2601 = vmatpush.bf16.msrb.mxu1 %v4849_v52  ;;  %v4474_v52 = vld [vmem:[#allocation18 + $0x190] sm:$0xf0] }
 0xbcc   :  { %v2348_v31 = vpop.f32.mrf.mxu0 }
 0xbcd   :  { %v4496_v31 = vld [vmem:[#allocation18 + $0x1a8] sm:$0xf] }
 0xbcf   :  { %2602 = vmatpush.bf16.msrb.mxu1 %v4848_v57  ;;  %v4480_v57 = vld [vmem:[#allocation18 + $0x188] sm:$0xf] }
 0xbd3   :  { %2912 = vmatpush.bf16.msra.mxu1 %v4533_v29  ;;  %v4453_v29 = vor.u32 %v4865_v1, %v4450_v40 }
 0xbd7   :  { %2913 = vmatpush.bf16.msra.mxu1 %v4517_v20  ;;  %v4861_v20 = vld [vmem:[#allocation18 + $0x12c] sm:$0xf] }
 0xbd8   :  { %v4437_v34 = vor.u32 %v4861_v20, %v4434_v22 }
 0xc33   :  { %v2484_v14 = vpop.f32.mrf.mxu3 }
 0xc34   :  { %2514 = vrot.lane.b32.xlu0 %v2484_v14, %s5585_s4  ;;  %v4497_v14 = vor.u32 %v4879_v60, %v4496_v31  ;;  %v4410_v31 = vld [vmem:[#allocation18 + $0x110] sm:$0xf0] }
 0xc36   :  { %2900 = vmatpush.bf16.msrb.mxu0 %v4497_v14  ;;  %v4416_v14 = vld [vmem:[#allocation18 + $0x108] sm:$0xf] }
 0xc3b   :  { %v2486_v38 = vpop.f32.mrf.mxu3  ;;  %v2508_v42 = vpop.f32.mrf.mxu0 }
 0xc3c   :  { %2516 = vrot.lane.b32.xlu2 %v2508_v42, %s5585_s4  ;;  %v4877_v38 = vld [vmem:[#allocation18 + $0x1ac] sm:$0xf]  ;;  %v4498_v42 = vld [vmem:[#allocation18 + $0x1b8] sm:$0xf0] }
 0xc43   :  { %v2510_v43 = vpop.f32.mrf.mxu0 }
 0xc44   :  { %v4501_v43 = vor.u32 %v4877_v38, %v4498_v42  ;;  %v4859_v38 = vld [vmem:[#allocation18 + $0x114] sm:$0xf0]  ;;  %v4413_v42 = vor.u32 %v4856_v28, %v4410_v31 }
 0xc46   :  { %2914 = vmatpush.bf16.msra.mxu1 %v4501_v43  ;;  %v4417_v43 = vor.u32 %v4859_v38, %v4416_v14 }
 0xc96   :  { %v2517_v26 = vpop.permute.xlu2 %2516 }
 0xc97   :  { %2521 = vst.msk [vmem:[#allocation2 + $0x8] sm:$0xff] %vm906_vm13, %v2517_v26  ;;  %v4875_v26 = vld [vmem:[#allocation18 + $0x194] sm:$0xf0] }
 0xc9e   :  { %v2523_v37 = vld [vmem:[#allocation2 + $0x8] sm:$0xff] }
 0xca6   :  { %v2515_v53 = vpop.permute.xlu0 %2514 }
 0xca7   :  { %2520 = vst.msk [vmem:[#allocation2] sm:$0xff] %vm906_vm13, %v2515_v53  ;;  %v4477_v53 = vor.u32 %v4872_v41, %v4474_v52  ;;  %v4421_v41 = vor.u32 %v4857_v5, %v4418_v56 }
 0xca9   :  { %2887 = vmatpush.bf16.msra.mxu3 %v4477_v53 }
 0xcae   :  { %v2522_v62 = vld [vmem:[#allocation2] sm:$0xff] }
 0xcaf   :  { %v2524_v61 = vpack.c.bf16 %v2523_v37, %v2522_v62  ;;  %v4481_v62 = vor.u32 %v4875_v26, %v4480_v57  ;;  %v4873_v37 = vld [vmem:[#allocation18 + $0x18c] sm:$0xf] }
 0xcb1   :  { %2603 = vmatmul.bf16.vlgmr.msrb.gmra.mxu1 %v2524_v61  ;;  %v4482_v61 = vld [vmem:[#allocation18 + $0x198] sm:$0xf0]  ;;  %2901 = vmatpush.bf16.msrb.mxu0 %v4481_v62 }
 0xd2e   :  { %v2604_v3 = vpop.f32.mrf.mxu1 }
 0xd2f   :  { %v2605_v0 = vadd.f32 %v4977_v15, %v2604_v3  ;;  %v4456_v3 = vld [vmem:[#allocation18 + $0x160] sm:$0xf] }
 0xd31   :  { %v2609_v35 = vadd.f32 %v2605_v0, %v6197_v24  ;;  %v4870_v0 = vld [vmem:[#allocation18 + $0x16c] sm:$0xf0] }
 0xd33   :  { %2615 = vadd.xlane.f32.xlu0 %v2609_v35 }
 0xd36   :  { %v2606_v6 = vpop.f32.mrf.mxu1 }
 0xd37   :  { %v2607_v63 = vadd.f32 %v4977_v15, %v2606_v6  ;;  %v4485_v15 = vor.u32 %v4873_v37, %v4482_v61  ;;  %v4457_v6 = vor.u32 %v4870_v0, %v4456_v3 }
 0xd39   :  { %v2610_v9 = vadd.f32 %v2607_v63, %v6199_v51  ;;  %v4520_v51 = vld [vmem:[#allocation18 + $0x1e0] sm:$0xf]  ;;  %2915 = vmatpush.bf16.msra.mxu1 %v4485_v15  ;;  %v4458_v63 = vld [vmem:[#allocation18 + $0x170] sm:$0xf0] }
 0xd3a   :  { %v4521_v54 = vor.u32 %v4886_v7, %v4520_v51  ;;  %v4440_v51 = vld [vmem:[#allocation18 + $0x140] sm:$0xf]  ;;  %v4866_v7 = vld [vmem:[#allocation18 + $0x14c] sm:$0xf0] }
 0xd3b   :  { %2617 = vadd.xlane.f32.xlu1 %v2610_v9 }
 0xd3c   :  { %2870 = vmatpush.bf16.msrb.mxu2 %v4521_v54  ;;  %v4441_v54 = vor.u32 %v4866_v7, %v4440_v51  ;;  %v4979_v51 = vld [vmem:[#allocation17 + $0x1] ss:$0 sm:$0xff] }
 0xd40   :  { %2871 = vmatpush.bf16.msrb.mxu2 %v4505_v25 }
 0xd44   :  { %2872 = vmatpush.bf16.msrb.mxu2 %v4489_v36  ;;  %v4858_v36 = vld [vmem:[#allocation18 + $0x10c] sm:$0xf0] }
 0xd45   :  { %v4409_v13 = vor.u32 %v4858_v36, %v4408_v50 }
 0xd48   :  { %2873 = vmatpush.bf16.msrb.mxu2 %v4473_v45 }
 0xd4c   :  { %2874 = vmatpush.bf16.msrb.mxu2 %v4457_v6 }
 0xd50   :  { %2875 = vmatpush.bf16.msrb.mxu2 %v4441_v54 }
 0xd54   :  { %2876 = vmatpush.bf16.msrb.mxu2 %v4425_v17 }
 0xd58   :  { %2877 = vmatpush.bf16.msrb.mxu2 %v4409_v13 }
 0xda6   :  { %v2616_v12 = vpop.xlane.xlu0 %2615 }
 0xda7   :  { %v2619_v48 = vmul.f32 %v2616_v12, %v5789_v8  ;;  %v4871_v12 = vld [vmem:[#allocation18 + $0x174] sm:$0xf0] }
 0xda9   :  { %v6261_v11 = vsub.f32 %v2609_v35, %v2619_v48  ;;  %v4868_v35 = vld [vmem:[#allocation18 + $0x164] sm:$0xf] }
 0xdaa   :  { %v4461_v48 = vor.u32 %v4868_v35, %v4458_v63 }
 0xdab   :  { %v2623_v10 = vmul.f32 %v6261_v11, %v6261_v11 }
 0xdac   :  { %2888 = vmatpush.bf16.msra.mxu3 %v4461_v48  ;;  %v4978_v48 = vld [vmem:[#allocation15 + $0x1] ss:$0 sm:$0xff] }
 0xdad   :  { %2625 = vadd.xlane.f32.xlu2 %v2623_v10 }
 0xdae   :  { %v2618_v39 = vpop.xlane.xlu1 %2617 }
 0xdaf   :  { %v2620_v23 = vmul.f32 %v2618_v39, %v5789_v8  ;;  %v4869_v39 = vld [vmem:[#allocation18 + $0x16c] sm:$0xf] }
 0xdb0   :  { %2889 = vmatpush.bf16.msra.mxu3 %v4445_v4 }
 0xdb1   :  { %v6266_v2 = vsub.f32 %v2610_v9, %v2620_v23  ;;  %v4464_v9 = vld [vmem:[#allocation18 + $0x168] sm:$0xf]  ;;  %v4466_v23 = vld [vmem:[#allocation18 + $0x178] sm:$0xf0] }
 0xdb2   :  { %v4465_v10 = vor.u32 %v4871_v12, %v4464_v9 }
 0xdb3   :  { %v2624_v24 = vmul.f32 %v6266_v2, %v6266_v2 }
 0xdb4   :  { %2902 = vmatpush.bf16.msrb.mxu0 %v4465_v10  ;;  %2890 = vmatpush.bf16.msra.mxu3 %v4429_v55 }
 0xdb5   :  { %2627 = vadd.xlane.f32.xlu0 %v2624_v24  ;;  %v4469_v24 = vor.u32 %v4869_v39, %v4466_v23 }
 0xdb7   :  { %2916 = vmatpush.bf16.msra.mxu1 %v4469_v24 }
 0xdb8   :  { %2903 = vmatpush.bf16.msrb.mxu0 %v4449_v59  ;;  %2891 = vmatpush.bf16.msra.mxu3 %v4413_v42 }
 0xdbb   :  { %2917 = vmatpush.bf16.msra.mxu1 %v4453_v29 }
 0xdbc   :  { %2904 = vmatpush.bf16.msrb.mxu0 %v4433_v49 }
 0xdbf   :  { %2918 = vmatpush.bf16.msra.mxu1 %v4437_v34 }
 0xdc0   :  { %2905 = vmatpush.bf16.msrb.mxu0 %v4417_v43 }
 0xdc3   :  { %2919 = vmatpush.bf16.msra.mxu1 %v4421_v41 }
 0xe20   :  { %v2626_v25 = vpop.xlane.xlu2 %2625 }
 0xe21   :  { %v2629_v33 = vmul.f32 %v2626_v25, %v5789_v8 }
 0xe23   :  { %v2631_v60 = vadd.f32 1e-12, %v2629_v33 }
 0xe25   :  { %5063 = vrsqrt.f32 %v2631_v60  ;;  %vm2639_vm8 = vweird.f32 %v2631_v60 }
 0xe28   :  { %v2628_v45 = vpop.xlane.xlu0 %2627 }
 0xe29   :  { %v2630_v52 = vmul.f32 %v2628_v45, %v5789_v8 }
 0xe2b   :  { %v5064_v57 = vpop.eup %5063  ;;  %v2632_v26 = vadd.f32 1e-12, %v2630_v52 }
 0xe2c   :  { %v2634_v53 = vmul.f32 %v5064_v57, %v2631_v60  ;;  %vm2640_vm7 = vweird.f32 %v5064_v57 }
 0xe2d   :  { %5065 = vrsqrt.f32 %v2632_v26  ;;  %vm2641_vm9 = vmor %vm2639_vm8, %vm2640_vm7  ;;  %vm2649_vm6 = vweird.f32 %v2632_v26 }
 0xe2e   :  { %v2635_v62 = vmul.f32 %v5064_v57, %v2634_v53 }
 0xe30   :  { %v2636_v37 = vmul.f32 0.5, %v2635_v62 }
 0xe32   :  { %v2637_v61 = vsub.f32 1.5, %v2636_v37 }
 0xe33   :  { %v5066_v15 = vpop.eup %5065 }
 0xe34   :  { %v2638_v3 = vmul.f32 %v5064_v57, %v2637_v61  ;;  %v2644_v0 = vmul.f32 %v5066_v15, %v2632_v26  ;;  %vm2650_vm13 = vweird.f32 %v5066_v15 }
 0xe35   :  { %vm2651_vm10 = vmor %vm2649_vm6, %vm2650_vm13 }
 0xe36   :  { %v2645_v35 = vmul.f32 %v5066_v15, %v2644_v0  ;;  %v2642_v6 = vsel %vm2641_vm9, %v5064_v57, %v2638_v3 }
 0xe37   :  { %v2653_v12 = vmul.f32 %v2642_v6, %v6261_v11  ;;  %v6283_v11 = vld [vmem:[%s6606_s11 + $0x4] sm:$0xf] }
 0xe38   :  { %v2646_v63 = vmul.f32 0.5, %v2645_v35  ;;  %v2705_v46 = vperm.slane %v6283_v11, 3  ;;  %v2702_v40 = vperm.slane %v6283_v11, 0  ;;  %v2703_v29 = vperm.slane %v6283_v11, 1 }
 0xe39   :  { %v2658_v24 = vmul.f32 %v4978_v48, %v2653_v12 }
 0xe3a   :  { %v2647_v9 = vsub.f32 1.5, %v2646_v63 }
 0xe3b   :  { %v6274_v19 = vadd.f32 %v4979_v51, %v2658_v24 }
 0xe3c   :  { %v2648_v10 = vmul.f32 %v5066_v15, %v2647_v9 }
 0xe3e   :  { %v2652_v39 = vsel %vm2651_vm10, %v5066_v15, %v2648_v10 }
 0xe3f   :  { %v2654_v23 = vmul.f32 %v2652_v39, %v6266_v2  ;;  %v2704_v2 = vperm.slane %v6283_v11, 2 }
 0xe41   :  { %v2659_v7 = vmul.f32 %v4978_v48, %v2654_v23 }
 0xe43   :  { %v6276_v54 = vadd.f32 %v4979_v51, %v2659_v7 }
 0xe45   :  { %v2665_v18 = vpack.c.bf16 %v6276_v54, %v6274_v19 }
 0xe47   :  { %2878 = vmatmul.bf16.vlgmr.msrb.gmra.mxu2 %v2665_v18  ;;  %2892 = vmatmul.bf16.vlgmr.msra.gmra.mxu3 %v2665_v18 }
 0xe48   :  { %2906 = vmatmul.bf16.vlgmr.msrb.gmra.mxu0 %v2665_v18  ;;  %2920 = vmatmul.bf16.vlgmr.msra.gmra.mxu1 %v2665_v18 }
 0xec5   :  { %v2907_v27 = vpop.f32.mrf.mxu0  ;;  %v2921_v4 = vpop.f32.mrf.mxu1 }
 0xec6   :  { %v6287_v59 = vadd.f32 %v2907_v27, %v2704_v2  ;;  %v6291_v1 = vadd.f32 %v2921_v4, %v2705_v46 }
 0xec8   :  { %v6296_v47 = vmul.f32 0.70710677, %v6287_v59  ;;  %v6299_v30 = vmul.f32 0.70710677, %v6291_v1 }
 0xeca   :  { %v6302_v44 = vand.u32 2147483647, %v6296_v47  ;;  %v6305_v25 = vand.u32 2147483647, %v6299_v30  ;;  %v2879_v17 = vpop.f32.mrf.mxu2  ;;  %v2893_v58 = vpop.f32.mrf.mxu3  ;;  %vm2944_vm8 = vcmp.ge.f32.partialorder %v6296_v47, 0.0 }
 0xecb   :  { %v6309_v32 = vadd.f32 %v2879_v17, %v2702_v40  ;;  %v6313_v16 = vadd.f32 %v2893_v58, %v2703_v29 }
 0xecc   :  { %v2968_v33 = vmul.f32 0.3275911, %v6302_v44  ;;  %v2969_v55 = vmul.f32 0.3275911, %v6305_v25 }
 0xecd   :  { %v6318_v49 = vmul.f32 0.70710677, %v6309_v32  ;;  %v6321_v50 = vmul.f32 0.70710677, %v6313_v16  ;;  %v2909_v14 = vpop.f32.mrf.mxu0  ;;  %v2923_v12 = vpop.f32.mrf.mxu1 }
 0xece   :  { %v2976_v20 = vadd.f32 1.0, %v2968_v33  ;;  %v2977_v22 = vadd.f32 1.0, %v2969_v55  ;;  %v6334_v56 = vadd.f32 %v2909_v14, %v2704_v2  ;;  %v6357_v18 = vadd.f32 %v2923_v12, %v2705_v46 }
 0xecf   :  { %v6324_v34 = vand.u32 2147483647, %v6318_v49  ;;  %v6327_v36 = vand.u32 2147483647, %v6321_v50 }
 0xed0   :  { %5067 = vrcp.f32 %v2976_v20  ;;  %v3023_v41 = vand.u32 2147483648, %v2976_v20  ;;  %v3021_v26 = vand.u32 2147483647, %v2976_v20  ;;  %vm3017_vm12 = vweird.f32 %v2976_v20 }
 0xed1   :  { %5069 = vrcp.f32 %v2977_v22  ;;  %v2966_v28 = vmul.f32 0.3275911, %v6324_v34  ;;  %v2967_v13 = vmul.f32 0.3275911, %v6327_v36  ;;  %v3038_v62 = vand.u32 2147483648, %v2977_v22 }
 0xed2   :  { %vm3032_vm15 = vweird.f32 %v2977_v22  ;;  %v3036_v15 = vand.u32 2147483647, %v2977_v22  ;;  %v6341_v3 = vmul.f32 0.70710677, %v6334_v56  ;;  %v3024_v0 = vor.u32 1.1754944e-38, %v3023_v41 }
 0xed3   :  { %v6330_v31 = vadd.f32 1.0, %v2966_v28  ;;  %v6336_v52 = vadd.f32 1.0, %v2967_v13  ;;  %vm3022_vm1 = vcmp.eq.f32.partialorder %v3021_v26, 8.507059e+37  ;;  %v3039_v39 = vor.u32 1.1754944e-38, %v3038_v62 }
 0xed4   :  { %v6347_v9 = vand.u32 2147483647, %v6341_v3  ;;  %vm3037_vm3 = vcmp.eq.f32.partialorder %v3036_v15, 8.507059e+37  ;;  %v6365_v55 = vmul.f32 0.70710677, %v6357_v18  ;;  %v3176_v28 = vsub.f32 0.0, %v6302_v44 }
 0xed5   :  { %5071 = vrcp.f32 %v6330_v31  ;;  %v2993_v13 = vand.u32 2147483648, %v6330_v31  ;;  %vm2987_vm5 = vweird.f32 %v6330_v31  ;;  %v2991_v14 = vand.u32 2147483647, %v6330_v31 }
 0xed6   :  { %v5068_v60 = vpop.eup %5067  ;;  %5073 = vrcp.f32 %v6336_v52  ;;  %v2972_v51 = vmul.f32 0.3275911, %v6347_v9  ;;  %v3177_v26 = vsub.f32 0.0, %v6305_v25  ;;  %v6424_v41 = vsel %vm2944_vm8, 1.0, %v5593_v21 }
 0xed7   :  { %v5070_v38 = vpop.eup %5069  ;;  %v3013_v42 = vmul.f32 %v5068_v60, %v2976_v20  ;;  %vm3018_vm11 = vweird.f32 %v5068_v60  ;;  %vm2992_vm9 = vcmp.eq.f32.partialorder %v2991_v14, 8.507059e+37  ;;  %v3006_v14 = vand.u32 2147483647, %v6336_v52 }
 0xed8   :  { %v3028_v43 = vmul.f32 %v5070_v38, %v2977_v22  ;;  %vm3033_vm14 = vweird.f32 %v5070_v38  ;;  %vm3019_vm0 = vmor %vm3017_vm12, %vm3018_vm11  ;;  %v2980_v27 = vadd.f32 1.0, %v2972_v51 }
 0xed9   :  { %v3014_v5 = vsub.f32 1.0, %v3013_v42  ;;  %vm3034_vm2 = vmor %vm3032_vm15, %vm3033_vm14  ;;  %vm3002_vm14 = vweird.f32 %v6336_v52 }
 0xeda   :  { %v3029_v45 = vsub.f32 1.0, %v3028_v43  ;;  %5075 = vrcp.f32 %v2980_v27  ;;  %v6379_v43 = vmul.f32 0.5, %v6287_v59  ;;  %v3184_v59 = vmul.f32 %v3176_v28, %v6302_v44 }
 0xedb   :  { %v3015_v57 = vmul.f32 %v5068_v60, %v3014_v5  ;;  %v6338_v37 = vpop.eup %5071  ;;  %v3185_v44 = vmul.f32 %v3177_v26, %v6305_v25  ;;  %vm3077_vm10 = vweird.f32 %v2980_v27  ;;  %v4910_v26 = vld [vmem:[#allocation20 + $0x1b0] sm:$0xff] }
 0xedc   :  { %v3030_v53 = vmul.f32 %v5070_v38, %v3029_v45  ;;  %v2983_v6 = vmul.f32 %v6338_v37, %v6330_v31  ;;  %v6359_v4 = vpop.eup %5073  ;;  %vm2988_vm4 = vweird.f32 %v6338_v37 }
 0xedd   :  { %v3016_v61 = vadd.f32 %v5068_v60, %v3015_v57  ;;  %v2998_v22 = vmul.f32 %v6359_v4, %v6336_v52  ;;  %vm6382_vm7 = vmor %vm2987_vm5, %vm2988_vm4  ;;  %v2881_v57 = vpop.f32.mrf.mxu2  ;;  %vm3003_vm6 = vweird.f32 %v6359_v4  ;;  %v6413_v28 = vmul.f32 1.442695, %v3185_v44 }
 0xede   :  { %v3031_v35 = vadd.f32 %v5070_v38, %v3030_v53  ;;  %v2984_v23 = vsub.f32 1.0, %v2983_v6  ;;  %v6396_v6 = vadd.f32 %v2881_v57, %v2702_v40  ;;  %vm6428_vm15 = vmor %vm3002_vm14, %vm3003_vm6  ;;  %v3174_v44 = vsub.f32 0.0, %v6324_v34 }
 0xedf   :  { %v3020_v63 = vsel %vm3019_vm0, %v5068_v60, %v3016_v61  ;;  %v2999_v45 = vsub.f32 1.0, %v2998_v22  ;;  %v2994_v61 = vor.u32 1.1754944e-38, %v2993_v13  ;;  %vm2945_vm0 = vcmp.ge.f32.partialorder %v6299_v30, 0.0 }
 0xee0   :  { %v6349_v48 = vsel %vm3022_vm1, %v3024_v0, %v3020_v63  ;;  %v3035_v10 = vsel %vm3034_vm2, %v5070_v38, %v3031_v35  ;;  %v2985_v17 = vmul.f32 %v6338_v37, %v2984_v23  ;;  %v6376_v38 = vand.u32 2147483647, %v6365_v55  ;;  %v5076_v42 = vpop.eup %5075 }
 0xee1   :  { %v3104_v24 = vmul.f32 1.0614054, %v6349_v48  ;;  %v6353_v7 = vsel %vm3037_vm3, %v3039_v39, %v3035_v10  ;;  %v3073_v53 = vmul.f32 %v5076_v42, %v2980_v27  ;;  %v3083_v35 = vand.u32 2147483648, %v2980_v27 }
 0xee2   :  { %v3105_v33 = vmul.f32 1.0614054, %v6353_v7  ;;  %v2986_v46 = vadd.f32 %v6338_v37, %v2985_v17  ;;  %v2973_v15 = vmul.f32 0.3275911, %v6376_v38  ;;  %vm3078_vm13 = vweird.f32 %v5076_v42 }
 0xee3   :  { %v3112_v2 = vadd.f32 -1.4531521, %v3104_v24  ;;  %v3074_v0 = vsub.f32 1.0, %v3073_v53  ;;  %v3081_v23 = vand.u32 2147483647, %v2980_v27  ;;  %vm3079_vm11 = vmor %vm3077_vm10, %vm3078_vm13  ;;  %v3084_v22 = vor.u32 1.1754944e-38, %v3083_v35 }
 0xee4   :  { %v3113_v60 = vadd.f32 -1.4531521, %v3105_v33  ;;  %v2990_v31 = vsel %vm6382_vm7, %v6338_v37, %v2986_v46  ;;  %v3000_v37 = vmul.f32 %v6359_v4, %v2999_v45  ;;  %v6401_v10 = vadd.f32 1.0, %v2973_v15  ;;  %v4919_v33 = vld [vmem:[#allocation20 + $0x1f8] sm:$0xff] }
 0xee5   :  { %v3120_v58 = vmul.f32 %v3112_v2, %v6349_v48  ;;  %v6398_v12 = vsel %vm2992_vm9, %v2994_v61, %v2990_v31  ;;  %v3075_v39 = vmul.f32 %v5076_v42, %v3074_v0  ;;  %v3194_v24 = vmul.f32 1.442695, %v3184_v59  ;;  %3554 = vmatpush.bf16.msrb.mxu1 %v4919_v33  ;;  %v4895_v35 = vld [vmem:[#allocation20 + $0x138] sm:$0xff] }
 0xee6   :  { %v3121_v62 = vmul.f32 %v3113_v60, %v6353_v7  ;;  %v3180_v2 = vsub.f32 0.0, %v6347_v9  ;;  %5077 = vrcp.f32 %v6401_v10  ;;  %v3102_v40 = vmul.f32 1.0614054, %v6398_v12  ;;  %3512 = vmatpush.bf16.msra.mxu2 %v4895_v35  ;;  %v4901_v35 = vld [vmem:[#allocation20 + $0x168] sm:$0xff] }
 0xee7   :  { %v3128_v20 = vadd.f32 1.4214138, %v3120_v58  ;;  %v3076_v17 = vadd.f32 %v5076_v42, %v3075_v39  ;;  %v4911_v58 = vld [vmem:[#allocation20 + $0x1b8] sm:$0xff]  ;;  %v3001_v25 = vadd.f32 %v6359_v4, %v3000_v37  ;;  %v6411_v46 = vmul.f32 0.70710677, %v6396_v6 }
 0xee8   :  { %v3129_v51 = vadd.f32 1.4214138, %v3121_v62  ;;  %v3008_v60 = vand.u32 2147483648, %v6336_v52  ;;  %vm3082_vm12 = vcmp.eq.f32.partialorder %v3081_v23, 8.507059e+37  ;;  %3540 = vmatpush.bf16.msra.mxu0 %v4911_v58  ;;  %v3110_v45 = vadd.f32 -1.4531521, %v3102_v40 }
 0xee9   :  { %v3136_v5 = vmul.f32 %v3128_v20, %v6349_v48  ;;  %v3080_v13 = vsel %vm3079_vm11, %v5076_v42, %v3076_v17  ;;  %v3005_v47 = vsel %vm6428_vm15, %v6359_v4, %v3001_v25  ;;  %v3188_v53 = vmul.f32 %v3180_v2, %v6347_v9  ;;  %v4918_v62 = vld [vmem:[#allocation20 + $0x1f0] sm:$0xff]  ;;  %v4909_v2 = vld [vmem:[#allocation20 + $0x1a8] sm:$0xff] }
 0xeea   :  { %v3137_v27 = vmul.f32 %v3129_v51, %v6353_v7  ;;  %v6441_v59 = vand.u32 2147483647, %v6411_v46  ;;  %5079 = vpow2.f32 %v3194_v24  ;;  %v3009_v61 = vor.u32 1.1754944e-38, %v3008_v60  ;;  %3555 = vmatpush.bf16.msrb.mxu1 %v4918_v62  ;;  %v2895_v51 = vpop.f32.mrf.mxu3  ;;  %v4917_v40 = vld [vmem:[#allocation20 + $0x1e8] sm:$0xff] }
 0xeeb   :  { %v3144_v63 = vadd.f32 -0.28449672, %v3136_v5  ;;  %v6419_v5 = vsel %vm3082_vm12, %v3084_v22, %v3080_v13  ;;  %vm3007_vm1 = vcmp.eq.f32.partialorder %v3006_v14, 8.507059e+37  ;;  %v3118_v9 = vmul.f32 %v3110_v45, %v6398_v12  ;;  %v4894_v13 = vld [vmem:[#allocation20 + $0x130] sm:$0xff] }
 0xeec   :  { %v3108_v57 = vmul.f32 1.0614054, %v6419_v5  ;;  %v6433_v31 = vpop.eup %5077  ;;  %3541 = vmatpush.bf16.msra.mxu0 %v4910_v26  ;;  %v3145_v37 = vadd.f32 -0.28449672, %v3137_v27  ;;  %v2970_v4 = vmul.f32 0.3275911, %v6441_v59  ;;  %v6448_v39 = vsel %vm3007_vm1, %v3009_v61, %v3005_v47  ;;  %3513 = vmatpush.bf16.msra.mxu2 %v4894_v13 }
 0xeed   :  { %v3152_v20 = vmul.f32 %v3144_v63, %v6349_v48  ;;  %v3088_v0 = vmul.f32 %v6433_v31, %v6401_v10  ;;  %v4903_v63 = vld [vmem:[#allocation20 + $0x178] sm:$0xff]  ;;  %v3202_v58 = vmul.f32 1.442695, %v3188_v53  ;;  %v3098_v33 = vand.u32 2147483648, %v6401_v10  ;;  %v4902_v27 = vld [vmem:[#allocation20 + $0x170] sm:$0xff]  ;;  %v4908_v47 = vld [vmem:[#allocation20 + $0x1a0] sm:$0xff] }
 0xeee   :  { %v3116_v15 = vadd.f32 -1.4531521, %v3108_v57  ;;  %3526 = vmatpush.bf16.msrb.mxu3 %v4903_v63  ;;  %vm3093_vm2 = vweird.f32 %v6433_v31  ;;  %v3096_v60 = vand.u32 2147483647, %v6401_v10  ;;  %v3153_v14 = vmul.f32 %v3145_v37, %v6353_v7  ;;  %3556 = vmatpush.bf16.msrb.mxu1 %v4917_v40  ;;  %v4916_v53 = vld [vmem:[#allocation20 + $0x1e0] sm:$0xff] }
 0xeef   :  { %v3160_v52 = vadd.f32 0.2548296, %v3152_v20  ;;  %v3089_v24 = vsub.f32 1.0, %v3088_v0  ;;  %v6453_v20 = vadd.f32 1.0, %v2970_v4  ;;  %v3103_v45 = vmul.f32 1.0614054, %v6448_v39 }
 0xef0   :  { %v3124_v23 = vmul.f32 %v3116_v15, %v6419_v5  ;;  %3542 = vmatpush.bf16.msra.mxu0 %v4909_v2  ;;  %v5080_v42 = vpop.eup %5079  ;;  %v3126_v57 = vadd.f32 1.4214138, %v3118_v9  ;;  %vm3092_vm3 = vweird.f32 %v6401_v10  ;;  %v3182_v61 = vmul.f32 %v3174_v44, %v6324_v34  ;;  %v4893_v10 = vld [vmem:[#allocation20 + $0x128] sm:$0xff] }
 0xef1   :  { %v3168_v17 = vmul.f32 %v3160_v52, %v6349_v48  ;;  %v3090_v22 = vmul.f32 %v6433_v31, %v3089_v24  ;;  %5081 = vrcp.f32 %v6453_v20  ;;  %v6463_v48 = vadd.f32 %v2895_v51, %v2703_v29  ;;  %vm3094_vm4 = vmor %vm3092_vm3, %vm3093_vm2  ;;  %3514 = vmatpush.bf16.msra.mxu2 %v4893_v10  ;;  %v4907_v24 = vld [vmem:[#allocation20 + $0x198] sm:$0xff] }
 0xef2   :  { %v3132_v25 = vadd.f32 1.4214138, %v3124_v23  ;;  %3527 = vmatpush.bf16.msrb.mxu3 %v4902_v27  ;;  %5083 = vpow2.f32 %v3202_v58  ;;  %v3099_v11 = vor.u32 1.1754944e-38, %v3098_v33  ;;  %vm3097_vm5 = vcmp.eq.f32.partialorder %v3096_v60, 8.507059e+37  ;;  %3557 = vmatpush.bf16.msrb.mxu1 %v4916_v53  ;;  %v4915_v51 = vld [vmem:[#allocation20 + $0x1d8] sm:$0xff]  ;;  %v4900_v60 = vld [vmem:[#allocation20 + $0x160] sm:$0xff] }
 0xef3   :  { %v3091_v52 = vadd.f32 %v6433_v31, %v3090_v22  ;;  %v3208_v62 = vmul.f32 %v5080_v42, %v3168_v17  ;;  %v3181_v0 = vsub.f32 0.0, %v6376_v38  ;;  %v3161_v63 = vadd.f32 0.2548296, %v3153_v14  ;;  %v4892_v22 = vld [vmem:[#allocation20 + $0x120] sm:$0xff]  ;;  %v4914_v53 = vld [vmem:[#allocation20 + $0x1d0] sm:$0xff] }
 0xef4   :  { %v3140_v26 = vmul.f32 %v3132_v25, %v6419_v5  ;;  %3543 = vmatpush.bf16.msra.mxu0 %v4908_v47  ;;  %v3111_v37 = vadd.f32 -1.4531521, %v3103_v45  ;;  %v6476_v34 = vmul.f32 0.70710677, %v6463_v48  ;;  %v6481_v44 = vsel %vm2945_vm0, 1.0, %v5593_v21  ;;  %v4906_v47 = vld [vmem:[#allocation20 + $0x190] sm:$0xff] }
 0xef5   :  { %v3095_v15 = vsel %vm3094_vm4, %v6433_v31, %v3091_v52  ;;  %v3134_v31 = vmul.f32 %v3126_v57, %v6398_v12  ;;  %v3216_v40 = vsub.f32 1.0, %v3208_v62  ;;  %v6488_v17 = vmul.f32 1.442695, %v3182_v61  ;;  %3515 = vmatpush.bf16.msra.mxu2 %v4892_v22 }
 0xef6   :  { %v3148_v29 = vadd.f32 -0.28449672, %v3140_v26  ;;  %v6473_v4 = vsel %vm3097_vm5, %v3099_v11, %v3095_v15  ;;  %3528 = vmatpush.bf16.msrb.mxu3 %v4901_v35  ;;  %vm2948_vm7 = vcmp.ge.f32.partialorder %v6341_v3, 0.0  ;;  %v6492_v30 = vand.u32 2147483647, %v6476_v34  ;;  %3558 = vmatpush.bf16.msrb.mxu1 %v4915_v51 }
 0xef7   :  { %v3109_v23 = vmul.f32 1.0614054, %v6473_v4  ;;  %v6486_v2 = vpop.eup %5081  ;;  %5085 = vpow2.f32 %v6413_v28  ;;  %v3169_v27 = vmul.f32 %v3161_v63, %v6353_v7  ;;  %v3119_v14 = vmul.f32 %v3111_v37, %v6448_v39 }
 0xef8   :  { %v3156_v9 = vmul.f32 %v3148_v29, %v6419_v5  ;;  %v3043_v25 = vmul.f32 %v6486_v2, %v6453_v20  ;;  %3544 = vmatpush.bf16.msra.mxu0 %v4907_v24  ;;  %v5084_v13 = vpop.eup %5083  ;;  %v3189_v45 = vmul.f32 %v3181_v0, %v6376_v38  ;;  %v2971_v42 = vmul.f32 0.3275911, %v6492_v30  ;;  %v4899_v0 = vld [vmem:[#allocation20 + $0x158] sm:$0xff]  ;;  %v4913_v24 = vld [vmem:[#allocation20 + $0x1c8] sm:$0xff] }
 0xef9   :  { %v3117_v33 = vadd.f32 -1.4531521, %v3109_v23  ;;  %v3142_v57 = vadd.f32 -0.28449672, %v3134_v31  ;;  %v3224_v62 = vmul.f32 %v3216_v40, %v6424_v41  ;;  %v3051_v7 = vand.u32 2147483647, %v6453_v20 }
 0xefa   :  { %v3164_v58 = vadd.f32 0.2548296, %v3156_v9  ;;  %v3044_v52 = vsub.f32 1.0, %v3043_v25  ;;  %3529 = vmatpush.bf16.msrb.mxu3 %v4900_v60  ;;  %v3053_v61 = vand.u32 2147483648, %v6453_v20  ;;  %v6506_v38 = vadd.f32 1.0, %v2971_v42  ;;  %3559 = vmatpush.bf16.msrb.mxu1 %v4914_v53  ;;  %v4905_v23 = vld [vmem:[#allocation20 + $0x188] sm:$0xff] }
 0xefb   :  { %v3125_v26 = vmul.f32 %v3117_v33, %v6473_v4  ;;  %vm3048_vm8 = vweird.f32 %v6486_v2  ;;  %v3127_v10 = vadd.f32 1.4214138, %v3119_v14  ;;  %v2956_v41 = vsel %vm2948_vm7, 1.0, %v5593_v21  ;;  %v4890_v60 = vld [vmem:[#allocation20 + $0x110] sm:$0xff] }
 0xefc   :  { %v3172_v28 = vmul.f32 %v3164_v58, %v6419_v5  ;;  %v3045_v15 = vmul.f32 %v6486_v2, %v3044_v52  ;;  %3545 = vmatpush.bf16.msra.mxu0 %v4906_v47  ;;  %v4891_v5 = vld [vmem:[#allocation20 + $0x118] sm:$0xff]  ;;  %v3204_v35 = vmul.f32 1.442695, %v3189_v45  ;;  %5087 = vrcp.f32 %v6506_v38 }
 0xefd   :  { %v3133_v29 = vadd.f32 1.4214138, %v3125_v26  ;;  %v5086_v63 = vpop.eup %5085  ;;  %vm3047_vm9 = vweird.f32 %v6453_v20  ;;  %3516 = vmatpush.bf16.msra.mxu2 %v4891_v5  ;;  %v3232_v51 = vadd.f32 1.0, %v3224_v62  ;;  %v3150_v3 = vmul.f32 %v3142_v57, %v6398_v12  ;;  %v4898_v20 = vld [vmem:[#allocation20 + $0x150] sm:$0xff]  ;;  %v4912_v26 = vld [vmem:[#allocation20 + $0x1c0] sm:$0xff] }
 0xefe   :  { %v3212_v11 = vmul.f32 %v5084_v13, %v3172_v28  ;;  %v3046_v9 = vadd.f32 %v6486_v2, %v3045_v15  ;;  %3530 = vmatpush.bf16.msrb.mxu3 %v4899_v0  ;;  %v3209_v40 = vmul.f32 %v5086_v63, %v3169_v27  ;;  %vm3049_vm13 = vmor %vm3047_vm9, %vm3048_vm8  ;;  %v3054_v58 = vor.u32 1.1754944e-38, %v3053_v61  ;;  %3560 = vmatpush.bf16.msrb.mxu1 %v4913_v24  ;;  %v4897_v15 = vld [vmem:[#allocation20 + $0x148] sm:$0xff] }
 0xeff   :  { %v3141_v31 = vmul.f32 %v3133_v29, %v6473_v4  ;;  %vm3052_vm6 = vcmp.eq.f32.partialorder %v3051_v7, 8.507059e+37  ;;  %v3135_v13 = vmul.f32 %v3127_v10, %v6448_v39  ;;  %5089 = vpow2.f32 %v3204_v35  ;;  %v4889_v29 = vld [vmem:[#allocation20 + $0x108] sm:$0xff] }
 0xf00   :  { %v3220_v37 = vsub.f32 1.0, %v3212_v11  ;;  %v3050_v22 = vsel %vm3049_vm13, %v6486_v2, %v3046_v9  ;;  %3546 = vmatpush.bf16.msra.mxu0 %v4905_v23  ;;  %v3178_v27 = vsub.f32 0.0, %v6441_v59  ;;  %v2932_v45 = vmul.f32 0.5, %v6334_v56  ;;  %v4904_v2 = vld [vmem:[#allocation20 + $0x180] sm:$0xff] }
 0xf01   :  { %v3149_v25 = vadd.f32 -0.28449672, %v3141_v31  ;;  %v6522_v14 = vsel %vm3052_vm6, %v3054_v58, %v3050_v22  ;;  %3517 = vmatpush.bf16.msra.mxu2 %v4890_v60  ;;  %v3240_v47 = vmul.f32 %v3232_v51, %v6379_v43  ;;  %v3217_v53 = vsub.f32 1.0, %v3209_v40  ;;  %v4896_v40 = vld [vmem:[#allocation20 + $0x140] sm:$0xff] }
 0xf02   :  { %v3228_v33 = vmul.f32 %v3220_v37, %v2956_v41  ;;  %v3106_v28 = vmul.f32 1.0614054, %v6522_v14  ;;  %3531 = vmatpush.bf16.msrb.mxu3 %v4898_v20  ;;  %v5088_v52 = vpop.eup %5087  ;;  %v3158_v62 = vadd.f32 0.2548296, %v3150_v3  ;;  %5091 = vpow2.f32 %v6488_v17  ;;  %3561 = vmatpush.bf16.msrb.mxu1 %v4912_v26 }
 0xf03   :  { %v3157_v57 = vmul.f32 %v3149_v25, %v6473_v4  ;;  %v3058_v56 = vmul.f32 %v5088_v52, %v6506_v38  ;;  %v3143_v5 = vadd.f32 -0.28449672, %v3135_v13  ;;  %v3175_v0 = vsub.f32 0.0, %v6327_v36 }
 0xf04   :  { %v3236_v42 = vadd.f32 1.0, %v3228_v33  ;;  %v3114_v11 = vadd.f32 -1.4531521, %v3106_v28  ;;  %3547 = vmatpush.bf16.msra.mxu0 %v4904_v2  ;;  %vm2949_vm10 = vcmp.ge.f32.partialorder %v6365_v55, 0.0  ;;  %v3186_v10 = vmul.f32 %v3178_v27, %v6441_v59 }
 0xf05   :  { %v3165_v61 = vadd.f32 0.2548296, %v3157_v57  ;;  %v3059_v35 = vsub.f32 1.0, %v3058_v56  ;;  %3518 = vmatpush.bf16.msra.mxu2 %v4889_v29  ;;  %v5090_v63 = vpop.eup %5089  ;;  %v3225_v37 = vmul.f32 %v3217_v53, %v6481_v44  ;;  %v3166_v31 = vmul.f32 %v3158_v62, %v6398_v12 }
 0xf06   :  { %v3244_v7 = vmul.f32 %v3236_v42, %v2932_v45  ;;  %v3122_v17 = vmul.f32 %v3114_v11, %v6522_v14  ;;  %3532 = vmatpush.bf16.msrb.mxu3 %v4897_v15  ;;  %v3066_v9 = vand.u32 2147483647, %v6506_v38  ;;  %v3068_v23 = vand.u32 2147483648, %v6506_v38 }
 0xf07   :  { %v3173_v41 = vmul.f32 %v3165_v61, %v6473_v4  ;;  %v3060_v51 = vmul.f32 %v5088_v52, %v3059_v35  ;;  %vm3063_vm11 = vweird.f32 %v5088_v52  ;;  %v4888_v4 = vld [vmem:[#allocation20 + $0x100] sm:$0xff]  ;;  %v2929_v58 = vmul.f32 0.5, %v6291_v1 }
 0xf08   :  { %v3248_v43 = vpack.c.bf16 %v3244_v7, %v3240_v47  ;;  %v3130_v59 = vadd.f32 1.4214138, %v3122_v17  ;;  %v5092_v3 = vpop.eup %5091  ;;  %v3183_v33 = vmul.f32 %v3175_v0, %v6327_v36  ;;  %v2957_v12 = vsel %vm2949_vm10, 1.0, %v5593_v21 }
 0xf09   :  { %v3213_v24 = vmul.f32 %v5090_v63, %v3173_v41  ;;  %v3198_v44 = vmul.f32 1.442695, %v3186_v10  ;;  %v3061_v60 = vadd.f32 %v5088_v52, %v3060_v51  ;;  %vm3062_vm12 = vweird.f32 %v6506_v38  ;;  %3519 = vmatpush.bf16.msra.mxu2 %v4888_v4 }
 0xf0a   :  { %3548 = vmatmul.bf16.vlgmr.msra.gmra.mxu0 %v3248_v43  ;;  %v3138_v22 = vmul.f32 %v3130_v59, %v6522_v14  ;;  %3533 = vmatpush.bf16.msrb.mxu3 %v4896_v40  ;;  %v3233_v20 = vadd.f32 1.0, %v3225_v37  ;;  %v3206_v13 = vmul.f32 %v5092_v3, %v3166_v31  ;;  %v3151_v27 = vmul.f32 %v3143_v5, %v6448_v39  ;;  %vm3064_vm14 = vmor %vm3062_vm12, %vm3063_vm11 }
 0xf0b   :  { %v3221_v25 = vsub.f32 1.0, %v3213_v24  ;;  %v3069_v1 = vor.u32 1.1754944e-38, %v3068_v23  ;;  %v3065_v55 = vsel %vm3064_vm14, %v5088_v52, %v3061_v60  ;;  %vm3067_vm15 = vcmp.eq.f32.partialorder %v3066_v9, 8.507059e+37 }
 0xf0c   :  { %v3146_v45 = vadd.f32 -0.28449672, %v3138_v22  ;;  %v3192_v42 = vmul.f32 1.442695, %v3183_v33  ;;  %5093 = vpow2.f32 %v3198_v44  ;;  %v3179_v28 = vsub.f32 0.0, %v6492_v30 }
 0xf0d   :  { %v3229_v36 = vmul.f32 %v3221_v25, %v2957_v12  ;;  %v3070_v57 = vsel %vm3067_vm15, %v3069_v1, %v3065_v55  ;;  %v2933_v38 = vmul.f32 0.5, %v6357_v18  ;;  %v3241_v53 = vmul.f32 %v3233_v20, %v2929_v58 }
 0xf0e   :  { %v3154_v26 = vmul.f32 %v3146_v45, %v6522_v14  ;;  %v3107_v47 = vmul.f32 1.0614054, %v3070_v57  ;;  %vm2942_vm0 = vcmp.ge.f32.partialorder %v6318_v49, 0.0  ;;  %v3159_v62 = vadd.f32 0.2548296, %v3151_v27 }
 0xf0f   :  { %v3237_v2 = vadd.f32 1.0, %v3229_v36  ;;  %v3214_v7 = vsub.f32 1.0, %v3206_v13  ;;  %5095 = vpow2.f32 %v3192_v42  ;;  %v3187_v56 = vmul.f32 %v3179_v28, %v6492_v30 }
 0xf10   :  { %v3162_v11 = vadd.f32 0.2548296, %v3154_v26  ;;  %v3115_v52 = vadd.f32 -1.4531521, %v3107_v47  ;;  %v2950_v0 = vsel %vm2942_vm0, 1.0, %v5593_v21  ;;  %vm2946_vm1 = vcmp.ge.f32.partialorder %v6411_v46, 0.0 }
 0xf11   :  { %v3245_v61 = vmul.f32 %v3237_v2, %v2933_v38  ;;  %v3222_v10 = vmul.f32 %v3214_v7, %v2950_v0  ;;  %v3167_v49 = vmul.f32 %v3159_v62, %v6448_v39  ;;  %v3200_v17 = vmul.f32 1.442695, %v3187_v56 }
 0xf12   :  { %v3170_v15 = vmul.f32 %v3162_v11, %v6522_v14  ;;  %v3123_v5 = vmul.f32 %v3115_v52, %v3070_v57  ;;  %v5094_v18 = vpop.eup %5093  ;;  %v2954_v30 = vsel %vm2946_vm1, 1.0, %v5593_v21  ;;  %v2926_v24 = vmul.f32 0.5, %v6309_v32 }
 0xf13   :  { %v3249_v29 = vpack.c.bf16 %v3245_v61, %v3241_v53  ;;  %v3230_v31 = vadd.f32 1.0, %v3222_v10  ;;  %5097 = vpow2.f32 %v3200_v17  ;;  %v2930_v46 = vmul.f32 0.5, %v6396_v6  ;;  %v4925_v17 = vld [vmem:[#allocation23 + $0x28] sm:$0xff] }
 0xf14   :  { %v3210_v43 = vmul.f32 %v5094_v18, %v3170_v15  ;;  %v3131_v41 = vadd.f32 1.4214138, %v3123_v5  ;;  %vm2943_vm2 = vcmp.ge.f32.partialorder %v6321_v50, 0.0  ;;  %vm2947_vm3 = vcmp.ge.f32.partialorder %v6476_v34, 0.0  ;;  %v4980_v34 = vld [vmem:[%s6608_s13 + $0x1] ss:$0 sm:$0xff] }
 0xf15   :  { %3562 = vmatmul.bf16.vlgmr.msrb.gmra.mxu1 %v3249_v29  ;;  %v5096_v37 = vpop.eup %5095  ;;  %v3238_v51 = vmul.f32 %v3230_v31, %v2926_v24  ;;  %v2951_v44 = vsel %vm2943_vm2, 1.0, %v5593_v21  ;;  %v2955_v6 = vsel %vm2947_vm3, 1.0, %v5593_v21  ;;  %v2927_v50 = vmul.f32 0.5, %v6313_v16  ;;  %v4920_v24 = vld [vmem:[#allocation23] sm:$0xff] }
 0xf16   :  { %v3218_v35 = vsub.f32 1.0, %v3210_v43  ;;  %v3139_v63 = vmul.f32 %v3131_v41, %v3070_v57  ;;  %v3207_v14 = vmul.f32 %v5096_v37, %v3167_v49  ;;  %v2931_v13 = vmul.f32 0.5, %v6463_v48  ;;  %v4927_v43 = vld [vmem:[#allocation23 + $0x38] sm:$0xff]  ;;  %v4926_v41 = vld [vmem:[#allocation23 + $0x30] sm:$0xff] }
 0xf17   :  { %3703 = vmatpush.bf16.msrb.mxu2 %v4927_v43  ;;  %vm3651_vm6 = vcmask 1041409   ;;  %vm3806_vm11 = vcmask 1041408   ;;  %vm3833_vm12 = vcmask 0  }
 0xf18   :  { %v3226_v9 = vmul.f32 %v3218_v35, %v2954_v30  ;;  %v3147_v23 = vadd.f32 -0.28449672, %v3139_v63  ;;  %v3215_v4 = vsub.f32 1.0, %v3207_v14  ;;  %v4923_v63 = vld [vmem:[#allocation23 + $0x18] sm:$0xff]  ;;  %v4922_v30 = vld [vmem:[#allocation23 + $0x10] sm:$0xff]  ;;  %v4921_v14 = vld [vmem:[#allocation23 + $0x8] sm:$0xff] }
 0xf19   :  { %v5098_v12 = vpop.eup %5097 }
 0xf1a   :  { %v3234_v59 = vadd.f32 1.0, %v3226_v9  ;;  %v3155_v39 = vmul.f32 %v3147_v23, %v3070_v57  ;;  %v3223_v25 = vmul.f32 %v3215_v4, %v2951_v44  ;;  %v4935_v4 = vld [vmem:[#allocation26 + $0x38] sm:$0xff] }
 0xf1b   :  { %3704 = vmatpush.bf16.msrb.mxu2 %v4926_v41  ;;  %3786 = vmatpush.bf16.msra.mxu3 %v4935_v4 }
 0xf1c   :  { %v3242_v40 = vmul.f32 %v3234_v59, %v2930_v46  ;;  %v3163_v3 = vadd.f32 0.2548296, %v3155_v39  ;;  %v3231_v60 = vadd.f32 1.0, %v3223_v25 }
 0xf1e   :  { %v3246_v58 = vpack.c.bf16 %v3242_v40, %v3238_v51  ;;  %v3171_v33 = vmul.f32 %v3163_v3, %v3070_v57  ;;  %v3239_v1 = vmul.f32 %v3231_v60, %v2927_v50  ;;  %v4934_v3 = vld [vmem:[#allocation26 + $0x30] sm:$0xff]  ;;  %v4981_v60 = vld [vmem:[#allocation21 + $0x1] ss:$0 sm:$0xff] }
 0xf1f   :  { %3705 = vmatpush.bf16.msrb.mxu2 %v4925_v17  ;;  %3787 = vmatpush.bf16.msra.mxu3 %v4934_v3 }
 0xf20   :  { %v3211_v22 = vmul.f32 %v5098_v12, %v3171_v33  ;;  %3520 = vmatmul.bf16.vlgmr.msra.gmra.mxu2 %v3246_v58 }
 0xf22   :  { %v3219_v32 = vsub.f32 1.0, %v3211_v22 }
 0xf24   :  { %v3227_v20 = vmul.f32 %v3219_v32, %v2955_v6  ;;  %v4932_v6 = vld [vmem:[#allocation26 + $0x20] sm:$0xff] }
 0xf26   :  { %v3235_v27 = vadd.f32 1.0, %v3227_v20 }
 0xf28   :  { %v3243_v36 = vmul.f32 %v3235_v27, %v2931_v13  ;;  %v4931_v27 = vld [vmem:[#allocation26 + $0x18] sm:$0xff] }
 0xf2a   :  { %v3247_v45 = vpack.c.bf16 %v3243_v36, %v3239_v1  ;;  %v4982_v36 = vld [vmem:[%s6610_s15 + $0x1] ss:$0 sm:$0xff] }
 0xf2c   :  { %3534 = vmatmul.bf16.vlgmr.msrb.gmra.mxu3 %v3247_v45 }
 0xf87   :  { %v3549_v57 = vpop.f32.mrf.mxu0 }
 0xf8f   :  { %v3551_v7 = vpop.f32.mrf.mxu0 }
 0xf92   :  { %v3563_v38 = vpop.f32.mrf.mxu1 }
 0xf9a   :  { %v3565_v11 = vpop.f32.mrf.mxu1 }
 0xfa3   :  { %v3521_v55 = vpop.f32.mrf.mxu2 }
 0xfa4   :  { %v3522_v42 = vadd.f32 %v4980_v34, %v3521_v55 }
 0xfab   :  { %v3523_v2 = vpop.f32.mrf.mxu2 }
 0xfac   :  { %v3524_v16 = vadd.f32 %v4980_v34, %v3523_v2 }
 0xfaf   :  { %v3535_v28 = vpop.f32.mrf.mxu3 }
 0xfb0   :  { %v3536_v21 = vadd.f32 %v3535_v28, %v3522_v42 }
 0xfb2   :  { %v3550_v26 = vadd.f32 %v3549_v57, %v3536_v21 }
 0xfb4   :  { %v3564_v47 = vadd.f32 %v3563_v38, %v3550_v26 }
 0xfb6   :  { %v3568_v48 = vadd.f32 %v3564_v47, %v6274_v19 }
 0xfb7   :  { %v3537_v53 = vpop.f32.mrf.mxu3 }
 0xfb8   :  { %v3538_v62 = vadd.f32 %v3537_v53, %v3524_v16  ;;  %3574 = vadd.xlane.f32.xlu2 %v3568_v48  ;;  %v4929_v53 = vld [vmem:[#allocation26 + $0x8] sm:$0xff] }
 0xfba   :  { %v3552_v61 = vadd.f32 %v3551_v7, %v3538_v62  ;;  %v4928_v62 = vld [vmem:[#allocation26] sm:$0xff]  ;;  %v4983_v7 = vld [vmem:[#allocation24] ss:$0 sm:$0xff] }
 0xfbc   :  { %v3566_v52 = vadd.f32 %v3565_v11, %v3552_v61 }
 0xfbe   :  { %v3569_v56 = vadd.f32 %v3566_v52, %v6276_v54  ;;  %v4924_v54 = vld [vmem:[#allocation23 + $0x20] sm:$0xff] }
 0xfbf   :  { %3706 = vmatpush.bf16.msrb.mxu2 %v4924_v54 }
 0xfc0   :  { %3576 = vadd.xlane.f32.xlu1 %v3569_v56 }
 0xfc3   :  { %3707 = vmatpush.bf16.msrb.mxu2 %v4923_v63 }
 0xfc7   :  { %3708 = vmatpush.bf16.msrb.mxu2 %v4922_v30 }
 0xfcb   :  { %3709 = vmatpush.bf16.msrb.mxu2 %v4921_v14 }
 0xfcf   :  { %3710 = vmatpush.bf16.msrb.mxu2 %v4920_v24 }
0x102b   :  { %v3575_v29 = vpop.xlane.xlu2 %3574 }
0x102c   :  { %v3578_v15 = vmul.f32 %v3575_v29, %v5789_v8 }
0x102e   :  { %v3580_v5 = vsub.f32 %v3568_v48, %v3578_v15  ;;  %v4930_v48 = vld [vmem:[#allocation26 + $0x10] sm:$0xff]  ;;  %v3802_v15 = vlaneseq }
0x1030   :  { %v3582_v18 = vmul.f32 %v3580_v5, %v3580_v5 }
0x1032   :  { %3584 = vadd.xlane.f32.xlu1 %v3582_v18  ;;  %v3803_v18 = vand.u32 127, %v3802_v15 }
0x1033   :  { %v3577_v0 = vpop.xlane.xlu1 %3576 }
0x1034   :  { %v3579_v10 = vmul.f32 %v3577_v0, %v5789_v8  ;;  %vm3804_vm10 = vcmp.lt.s32.totalorder %v3803_v18, 7 }
0x1036   :  { %v3581_v19 = vsub.f32 %v3569_v56, %v3579_v10  ;;  %v3799_v10 = vld [vmem:[%s6615_s20] sm:$0x3] }
0x1038   :  { %v3583_v49 = vmul.f32 %v3581_v19, %v3581_v19 }
0x103a   :  { %3586 = vadd.xlane.f32.xlu0 %v3583_v49  ;;  %v3819_v49 = vld [vmem:[%s6650_s17] sm:$0x3] }
0x10a5   :  { %v3585_v35 = vpop.xlane.xlu1 %3584 }
0x10a6   :  { %v3588_v37 = vmul.f32 %v3585_v35, %v5789_v8 }
0x10a8   :  { %v3590_v31 = vadd.f32 1e-12, %v3588_v37 }
0x10aa   :  { %5099 = vrsqrt.f32 %v3590_v31  ;;  %vm3598_vm5 = vweird.f32 %v3590_v31 }
0x10ad   :  { %v3587_v9 = vpop.xlane.xlu0 %3586 }
0x10ae   :  { %v3589_v23 = vmul.f32 %v3587_v9, %v5789_v8  ;;  %v4933_v8 = vld [vmem:[#allocation26 + $0x28] sm:$0xff] }
0x10af   :  { %3788 = vmatpush.bf16.msra.mxu3 %v4933_v8 }
0x10b0   :  { %v5100_v46 = vpop.eup %5099  ;;  %v3591_v59 = vadd.f32 1e-12, %v3589_v23 }
0x10b1   :  { %v3593_v39 = vmul.f32 %v5100_v46, %v3590_v31  ;;  %vm3599_vm4 = vweird.f32 %v5100_v46 }
0x10b2   :  { %5101 = vrsqrt.f32 %v3591_v59  ;;  %vm3600_vm7 = vmor %vm3598_vm5, %vm3599_vm4  ;;  %vm3608_vm9 = vweird.f32 %v3591_v59 }
0x10b3   :  { %v3594_v51 = vmul.f32 %v5100_v46, %v3593_v39  ;;  %3789 = vmatpush.bf16.msra.mxu3 %v4932_v6 }
0x10b5   :  { %v3595_v40 = vmul.f32 0.5, %v3594_v51 }
0x10b7   :  { %v3596_v58 = vsub.f32 1.5, %v3595_v40  ;;  %3790 = vmatpush.bf16.msra.mxu3 %v4931_v27 }
0x10b8   :  { %v5102_v33 = vpop.eup %5101 }
0x10b9   :  { %v3597_v12 = vmul.f32 %v5100_v46, %v3596_v58  ;;  %v3603_v44 = vmul.f32 %v5102_v33, %v3591_v59  ;;  %vm3609_vm8 = vweird.f32 %v5102_v33 }
0x10ba   :  { %vm3610_vm13 = vmor %vm3608_vm9, %vm3609_vm8 }
0x10bb   :  { %v3601_v25 = vsel %vm3600_vm7, %v5100_v46, %v3597_v12  ;;  %v3604_v22 = vmul.f32 %v5102_v33, %v3603_v44  ;;  %3791 = vmatpush.bf16.msra.mxu3 %v4930_v48 }
0x10bc   :  { %v3612_v20 = vmul.f32 %v3601_v25, %v3580_v5  ;;  %v4984_v5 = vld [vmem:[#allocation27] ss:$0 sm:$0xff] }
0x10bd   :  { %v3605_v32 = vmul.f32 0.5, %v3604_v22 }
0x10be   :  { %v3617_v1 = vmul.f32 %v4981_v60, %v3612_v20 }
0x10bf   :  { %v3606_v50 = vsub.f32 1.5, %v3605_v32  ;;  %3792 = vmatpush.bf16.msra.mxu3 %v4929_v53 }
0x10c0   :  { %v3622_v42 = vadd.f32 %v4982_v36, %v3617_v1 }
0x10c1   :  { %v3607_v13 = vmul.f32 %v5102_v33, %v3606_v50 }
0x10c2   :  { %v3624_v28 = vpack.c.bf16 %v3622_v42, %v3622_v42 }
0x10c3   :  { %v3611_v45 = vsel %vm3610_vm13, %v5102_v33, %v3607_v13  ;;  %3793 = vmatpush.bf16.msra.mxu3 %v4928_v62 }
0x10c4   :  { %v3613_v55 = vmul.f32 %v3611_v45, %v3581_v19  ;;  %v3648_v2 = vunpack.c.l.b16 %v3624_v28 }
0x10c6   :  { %v3618_v34 = vmul.f32 %v4981_v60, %v3613_v55 }
0x10c8   :  { %v3623_v57 = vadd.f32 %v4982_v36, %v3618_v34 }
0x10ca   :  { %v3625_v21 = vpack.c.bf16 %v3623_v57, %v3623_v57 }
0x10cc   :  { %v3649_v38 = vunpack.c.l.b16 %v3625_v21 }
0x10ce   :  { %v3650_v26 = vrot.slane %v3649_v38, 7 }
0x10d0   :  { %v3652_v16 = vsel %vm3651_vm6, %v3650_v26, %v3648_v2 }
0x10d1   :  { %v3653_v47 = vpack.c.b16 %v3652_v16, %v3652_v16 }
0x10d3   :  { %3711 = vmatmul.bf16.vlgmr.msrb.gmra.mxu2 %v3653_v47 }
0x1156   :  { %v3712_v61 = vpop.f32.mrf.mxu2 }
0x1157   :  { %v3713_v11 = vadd.f32 %v4983_v7, %v3712_v61 }
0x1159   :  { %5103 = vtanh.f32 %v3713_v11 }
0x115e   :  { %v3714_v52 = vpop.f32.mrf.mxu2 }
0x115f   :  { %v5104_v56 = vpop.eup %5103 }
0x1160   :  { %v3717_v29 = vpack.c.bf16 %v5104_v56, %v5104_v56 }
0x1162   :  { %3794 = vmatmul.bf16.vlgmr.msra.gmra.mxu3 %v3717_v29 }
0x11e5   :  { %v3795_v0 = vpop.f32.mrf.mxu3 }
0x11e6   :  { %v3796_v19 = vadd.f32 %v4984_v5, %v3795_v0 }
0x11e8   :  { %v3800_v43 = vmul.f32 %v3799_v10, %v3796_v19 }
0x11ea   :  { %3801 = vst [vmem:[#allocation29] sm:$0x3] %v3800_v43  ;;  %v3805_v41 = vsel %vm3804_vm10, %v3800_v43, -1e+30  ;;  %v3820_v17 = vmul.f32 %v3819_v49, %v3800_v43 }
0x11eb   :  { %v3807_v54 = vsel %vm3806_vm11, %v3805_v41, -inf  ;;  %3845 = dma.vmem_to_hbm [thread:$0]  %s3841_s1, 32, %s3843_s16, [#allocation5]  }
0x11ec   :  { %3808 = vmax.xlane.f32.xlu2 %v3807_v54  ;;  %v3821_v35 = vsel %vm3806_vm11, %v3820_v17, 0.0 }
0x11ed   :  { %v3797_v63 = vpop.f32.mrf.mxu3  ;;  %3822 = vadd.xlane.f32.xlu1 %v3821_v35 }
0x125f   :  { %v3809_v37 = vpop.xlane.xlu2 %3808 }
0x1260   :  { %v3810_v30 = vsub.f32 %v3805_v41, %v3809_v37  ;;  %v3823_v39 = vpop.xlane.xlu1 %3822 }
0x1262   :  { %v3811_v31 = vmul.f32 1.442695, %v3810_v30 }
0x1264   :  { %5105 = vpow2.f32 %v3811_v31 }
0x126a   :  { %v5106_v14 = vpop.eup %5105 }
0x126b   :  { %v3813_v9 = vsel %vm3806_vm11, %v5106_v14, 0.0 }
0x126c   :  { %3814 = vadd.xlane.f32.xlu0 %v3813_v9 }
0x12df   :  { %v3815_v23 = vpop.xlane.xlu0 %3814 }
0x12e0   :  { %5107 = vlog2.f32 %v3815_v23 }
0x12e6   :  { %v5108_v24 = vpop.eup %5107 }
0x12e7   :  { %v3817_v46 = vmul.f32 0.6931472, %v5108_v24 }
0x12e9   :  { %v3818_v59 = vadd.f32 %v3817_v46, %v3809_v37 }
0x12eb   :  { %v3824_v51 = vsub.f32 %v3818_v59, %v3823_v39 }
0x12ed   :  { %v3825_v4 = vsel %vm3806_vm11, %v3824_v51, 0.0 }
0x12ee   :  { %v3826_v40 = vrot.slane %v3825_v4, 4 }
0x12f0   :  { %v3827_v3 = vadd.f32 %v3826_v40, %v3825_v4 }
0x12f2   :  { %v3828_v58 = vrot.slane %v3827_v3, 2 }
0x12f4   :  { %v3829_v33 = vadd.f32 %v3828_v58, %v3827_v3 }
0x12f6   :  { %v3830_v12 = vrot.slane %v3829_v33, 1 }
0x12f8   :  { %v3831_v44 = vadd.f32 %v3830_v12, %v3829_v33 }
0x12fa   :  { %v3832_v8 = vmul.f32 0.5, %v3831_v44 }
0x12fc   :  { %3834 = vst.msk [vmem:[#allocation30] sm:$0x1] %vm3833_vm12, %v3832_v8 }
0x12fd   :  { %3856 = dma.vmem_to_hbm [thread:$0]  %s3852_s18, 16, %s3854_s21, [#allocation31]  }
0x12fe   :  { %5561 = dma.done.wait [#allocation5], 32  }
0x12ff   :  { %5562 = vsyncadd [#allocation5], 4294967264 }
0x1300   :  { %5563 = dma.done.wait [#allocation31], 16  }
0x1301   :  { %5564 = vsyncadd [#allocation31], 4294967280 }
0x1302   :  { %3865 = vsyncpa [#allocation4], 1 }
0x1303   :  { %3866 = vsyncpa [#allocation7], 1 }
0x1304   :  { %3867 = vsyncpa [#allocation10], 1 }
0x1305   :  { %3868 = vsyncpa [#allocation13], 1 }
0x1306   :  { %3869 = vsyncpa [#allocation16], 1 }
0x1307   :  { %3870 = vsyncpa [#allocation19], 1 }
0x1308   :  { %3871 = vsyncpa [#allocation22], 1 }
0x1309   :  { %3872 = vsyncpa [#allocation25], 1 }
0x130a   :  { %3873 = vsyncpa [#allocation28], 1 }
0x130b   :  { %3874 = vsyncpa [#allocation5], 1 }
0x130c   :  { %3875 = vsyncpa [#allocation31], 1 }

</bundles_post_ra>
